<compile_context>
chip_gen: v5e
topology: v5e:2x2
jax: 0.10.0
libtpu: 0.0.40
codegen_flags: <defaults>
</compile_context>

<pallas_src>
import functools

import jax
import jax.numpy as jnp
from jax.experimental import pallas as pl
from jax.experimental.pallas import tpu as pltpu


# ----------------------------- fused Pallas kernel ----------------------------- #

def _smote_rgat_kernel(feat_ref, negb_ref,
                       w1_ref, a1s_ref, a1d_ref, b1_ref,
                       w2_ref, a2s_ref, a2d_ref, b2_ref,
                       w12_ref, a12s_ref, a12d_ref, b12_ref,
                       w22_ref, a22s_ref, a22d_ref, b22_ref,
                       o_ref, *, heads, head_dim):
    """Fused: gat1/gat2 (4 heads) -> (eval dropout) -> gat1_2/gat2_2 (1 head) -> sum."""
    negb = negb_ref[...]                       # (N, N) f32 additive mask (0 / -1e30)

    feat = feat_ref[...]                       # (N, 2304) bf16
    xa = feat[:, :768]                         # shared first 768 features
    xb = feat[:, 768:1536]                     # branch-1 second half
    xc = feat[:, 1536:2304]                    # branch-2 second half

    def gat(h, a_src_blk, a_dst_blk, bias, n_heads, d):
        # h: (N, n_heads*d) f32 = x @ W  (already computed).
        # GATConv semantics: e_ij = LeakyReLU_0.2(a_dst.h_i + a_src.h_j),
        # softmax over incoming edges j (self-loops included), out_i = sum_j alpha_ij h_j, + bias.
        s_src = jnp.dot(h, a_src_blk, preferred_element_type=jnp.float32)   # (N, H)
        s_dst = jnp.dot(h, a_dst_blk, preferred_element_type=jnp.float32)   # (N, H)
        h_bf = h.astype(jnp.bfloat16)
        outs = []
        for hd in range(n_heads):
            e = s_dst[:, hd:hd + 1] + jnp.transpose(s_src[:, hd:hd + 1])    # (N, N)
            e = jnp.where(e > 0, e, 0.2 * e)                                # LeakyReLU(0.2)
            e = e + negb                                                    # mask non-edges
            m = jnp.max(e, axis=-1, keepdims=True)
            p = jnp.exp(e - m)
            inv = pl.reciprocal(jnp.sum(p, axis=-1, keepdims=True), approx=True)
            alpha = p * inv                                                 # row softmax (f32)
            out_h = jnp.dot(alpha.astype(jnp.bfloat16),
                            h_bf[:, hd * d:(hd + 1) * d],
                            preferred_element_type=jnp.float32)             # (N, d)
            outs.append(out_h)
        out = outs[0] if n_heads == 1 else jnp.concatenate(outs, axis=1)    # (N, H*d)
        return out + bias

    hidden = heads * head_dim

    # ---- branch 1: gat1(feature1) -> dropout(eval) -> gat1_2 ----
    w1 = w1_ref[...]
    h1 = (jnp.dot(xa, w1[:768, :], preferred_element_type=jnp.float32)
          + jnp.dot(xb, w1[768:, :], preferred_element_type=jnp.float32))
    x1 = gat(h1, a1s_ref[...], a1d_ref[...], b1_ref[...], heads, head_dim)
    # TODO(synk): training-mode dropout (p=0.3) not applied (eval identity); use pltpu.prng_* for training.
    h12 = jnp.dot(x1.astype(jnp.bfloat16), w12_ref[...],
                  preferred_element_type=jnp.float32)
    x1 = gat(h12, a12s_ref[...], a12d_ref[...], b12_ref[...], 1, hidden)

    # ---- branch 2: gat2(feature2) -> dropout(eval) -> gat2_2 ----
    w2 = w2_ref[...]
    h2 = (jnp.dot(xa, w2[:768, :], preferred_element_type=jnp.float32)
          + jnp.dot(xc, w2[768:, :], preferred_element_type=jnp.float32))
    x2 = gat(h2, a2s_ref[...], a2d_ref[...], b2_ref[...], heads, head_dim)
    h22 = jnp.dot(x2.astype(jnp.bfloat16), w22_ref[...],
                  preferred_element_type=jnp.float32)
    x2 = gat(h22, a22s_ref[...], a22d_ref[...], b22_ref[...], 1, hidden)

    # single lane-dense store of the final (N, hidden) result
    o_ref[...] = x1 + x2


# ------------------------------ glue / parameters ------------------------------ #

def build_attention_bias(edge_index, num_nodes):
    """Additive attention bias: 0 where edge dst<-src exists (self-loops added), else -1e30."""
    src = edge_index[0]
    dst = edge_index[1]
    adj = jnp.zeros((num_nodes, num_nodes), jnp.float32)
    adj = adj.at[dst, src].set(1.0)
    adj = jnp.maximum(adj, jnp.eye(num_nodes, dtype=jnp.float32))
    return jnp.where(adj > 0, 0.0, -1e30).astype(jnp.float32)


def block_att(a, heads, head_dim):
    """(heads, head_dim) -> (heads*head_dim, heads) block matrix so that
    (x @ W) @ block_att(a) gives all per-head attention scores in one MXU matmul."""
    eye = jnp.eye(heads, dtype=a.dtype)                      # (H, H)
    blk = a[:, :, None] * eye[:, None, :]                    # (H, D, H)
    return blk.reshape(heads * head_dim, heads)


def _gat_layer_params(key, f_in, heads, head_dim, scale=0.1):
    ks = jax.random.split(key, 4)
    a_src = jax.random.normal(ks[1], (heads, head_dim), jnp.float32) * scale
    a_dst = jax.random.normal(ks[2], (heads, head_dim), jnp.float32) * scale
    return {
        # weights stored once in bf16 (MXU-native); softmax/attention math stays f32
        "w": (jax.random.normal(ks[0], (f_in, heads * head_dim), jnp.float32) * scale
              ).astype(jnp.bfloat16),
        "a_src_blk": block_att(a_src, heads, head_dim),      # (H*D, H) f32
        "a_dst_blk": block_att(a_dst, heads, head_dim),      # (H*D, H) f32
        "b": jax.random.normal(ks[3], (1, heads * head_dim), jnp.float32) * scale,
    }


def init_params(key, hidden=128, heads=4):
    head_dim = hidden // heads
    ks = jax.random.split(key, 4)
    return {
        "gat1":   _gat_layer_params(ks[0], 768 * 2, heads, head_dim),
        "gat2":   _gat_layer_params(ks[1], 768 * 2, heads, head_dim),
        "gat1_2": _gat_layer_params(ks[2], hidden, 1, hidden),
        "gat2_2": _gat_layer_params(ks[3], hidden, 1, hidden),
        # NOTE: linear_output1/linear_output2 exist in the PyTorch module but are
        # not used in its forward pass, so they are omitted here.
        "heads": heads,
        "head_dim": head_dim,
    }


def smote_rgat_forward(params, feature, edge_index, edge_type):
    # NOTE: edge_type is accepted but unused, matching the PyTorch forward.
    del edge_type
    n = feature.shape[0]
    heads, head_dim = params["heads"], params["head_dim"]
    hidden = heads * head_dim

    neg_bias = build_attention_bias(edge_index, n)

    kernel = functools.partial(_smote_rgat_kernel, heads=heads, head_dim=head_dim)
    num_inputs = 18
    vmem_specs = [pl.BlockSpec(memory_space=pltpu.MemorySpace.VMEM)
                  for _ in range(num_inputs)]

    g1, g2, g12, g22 = params["gat1"], params["gat2"], params["gat1_2"], params["gat2_2"]
    # TODO(synk): for N >~ 1-2K nodes the dense (N,N) attention should be tiled
    # flash-style over src blocks (with a "parallel" dst-row grid axis for v7x's 2 TCs).
    return pl.pallas_call(
        kernel,
        out_shape=jax.ShapeDtypeStruct((n, hidden), jnp.float32),
        in_specs=vmem_specs,
        out_specs=pl.BlockSpec(memory_space=pltpu.MemorySpace.VMEM),
    )(feature.astype(jnp.bfloat16), neg_bias,
      g1["w"], g1["a_src_blk"], g1["a_dst_blk"], g1["b"],
      g2["w"], g2["a_src_blk"], g2["a_dst_blk"], g2["b"],
      g12["w"], g12["a_src_blk"], g12["a_dst_blk"], g12["b"],
      g22["w"], g22["a_src_blk"], g22["a_dst_blk"], g22["b"])


if __name__ == "__main__":
    key = jax.random.PRNGKey(0)
    k_feat, k_edge, k_param = jax.random.split(key, 3)

    N, E = 32, 64
    HIDDEN, HEADS = 128, 4          # gat1/gat2: out = hidden/4 per head, 4 heads

    # forward slices feature[:, :768], [:, 768:1536], [:, 1536:2304] -> needs 2304 columns
    feature = jax.random.normal(k_feat, (N, 768 * 3), jnp.float32)
    edge_index = jax.random.randint(k_edge, (2, E), 0, N, dtype=jnp.int32)
    edge_type = jnp.zeros((E,), jnp.int32)   # unused by the forward pass

    params = init_params(k_param, HIDDEN, HEADS)

    out = smote_rgat_forward(params, feature, edge_index, edge_type)
    out = jax.block_until_ready(out)
    assert out.shape == (N, HIDDEN), out.shape
    assert bool(jnp.all(jnp.isfinite(out)))
    print("KERNEL_OK")
</pallas_src>

<mosaic_0001>
module attributes {stable_mosaic.version = 11 : i64} {
  func.func @_smote_rgat_kernel(%arg0: memref<32x2304xbf16, #tpu.memory_space<vmem>>, %arg1: memref<32x32xf32, #tpu.memory_space<vmem>>, %arg2: memref<1536x128xbf16, #tpu.memory_space<vmem>>, %arg3: memref<128x4xf32, #tpu.memory_space<vmem>>, %arg4: memref<128x4xf32, #tpu.memory_space<vmem>>, %arg5: memref<1x128xf32, #tpu.memory_space<vmem>>, %arg6: memref<1536x128xbf16, #tpu.memory_space<vmem>>, %arg7: memref<128x4xf32, #tpu.memory_space<vmem>>, %arg8: memref<128x4xf32, #tpu.memory_space<vmem>>, %arg9: memref<1x128xf32, #tpu.memory_space<vmem>>, %arg10: memref<128x128xbf16, #tpu.memory_space<vmem>>, %arg11: memref<128x1xf32, #tpu.memory_space<vmem>>, %arg12: memref<128x1xf32, #tpu.memory_space<vmem>>, %arg13: memref<1x128xf32, #tpu.memory_space<vmem>>, %arg14: memref<128x128xbf16, #tpu.memory_space<vmem>>, %arg15: memref<128x1xf32, #tpu.memory_space<vmem>>, %arg16: memref<128x1xf32, #tpu.memory_space<vmem>>, %arg17: memref<1x128xf32, #tpu.memory_space<vmem>>, %arg18: memref<32x128xf32, #tpu.memory_space<vmem>>) attributes {dimension_semantics = [], scalar_prefetch = 0 : i64, scratch_operands = 0 : i64, tpu.core_type = #tpu.core_type<tc>} {
    %c0 = arith.constant 0 : index
    %c0_0 = arith.constant 0 : index
    %0 = vector.load %arg1[%c0, %c0_0] : memref<32x32xf32, #tpu.memory_space<vmem>>, vector<32x32xf32>
    %c0_1 = arith.constant 0 : index
    %c0_2 = arith.constant 0 : index
    %1 = vector.load %arg0[%c0_1, %c0_2] : memref<32x2304xbf16, #tpu.memory_space<vmem>>, vector<32x2304xbf16>
    %2 = vector.extract_strided_slice %1 {offsets = [0, 0], sizes = [32, 768], strides = [1, 1]} : vector<32x2304xbf16> to vector<32x768xbf16>
    %3 = vector.extract_strided_slice %1 {offsets = [0, 768], sizes = [32, 768], strides = [1, 1]} : vector<32x2304xbf16> to vector<32x768xbf16>
    %4 = vector.extract_strided_slice %1 {offsets = [0, 1536], sizes = [32, 768], strides = [1, 1]} : vector<32x2304xbf16> to vector<32x768xbf16>
    %c0_3 = arith.constant 0 : index
    %c0_4 = arith.constant 0 : index
    %5 = vector.load %arg2[%c0_3, %c0_4] : memref<1536x128xbf16, #tpu.memory_space<vmem>>, vector<1536x128xbf16>
    %6 = vector.extract_strided_slice %5 {offsets = [0, 0], sizes = [768, 128], strides = [1, 1]} : vector<1536x128xbf16> to vector<768x128xbf16>
    %cst = arith.constant dense<0.000000e+00> : vector<32x128xf32>
    %7 = tpu.matmul %2, %6, %cst {dimension_numbers = #tpu.dot_dimension_numbers<[1], [0], [0], [1], [0, 0, 1, 1], [], []>} : vector<32x768xbf16>, vector<768x128xbf16>, vector<32x128xf32> -> vector<32x128xf32>
    %8 = vector.extract_strided_slice %5 {offsets = [768, 0], sizes = [768, 128], strides = [1, 1]} : vector<1536x128xbf16> to vector<768x128xbf16>
    %cst_5 = arith.constant dense<0.000000e+00> : vector<32x128xf32>
    %9 = tpu.matmul %3, %8, %cst_5 {dimension_numbers = #tpu.dot_dimension_numbers<[1], [0], [0], [1], [0, 0, 1, 1], [], []>} : vector<32x768xbf16>, vector<768x128xbf16>, vector<32x128xf32> -> vector<32x128xf32>
    %10 = arith.addf %7, %9 : vector<32x128xf32>
    %c0_6 = arith.constant 0 : index
    %c0_7 = arith.constant 0 : index
    %11 = vector.load %arg3[%c0_6, %c0_7] : memref<128x4xf32, #tpu.memory_space<vmem>>, vector<128x4xf32>
    %c0_8 = arith.constant 0 : index
    %c0_9 = arith.constant 0 : index
    %12 = vector.load %arg4[%c0_8, %c0_9] : memref<128x4xf32, #tpu.memory_space<vmem>>, vector<128x4xf32>
    %c0_10 = arith.constant 0 : index
    %c0_11 = arith.constant 0 : index
    %13 = vector.load %arg5[%c0_10, %c0_11] : memref<1x128xf32, #tpu.memory_space<vmem>>, vector<1x128xf32>
    %cst_12 = arith.constant dense<0.000000e+00> : vector<32x4xf32>
    %14 = tpu.matmul %10, %11, %cst_12 {dimension_numbers = #tpu.dot_dimension_numbers<[1], [0], [0], [1], [0, 0, 1, 1], [], []>} : vector<32x128xf32>, vector<128x4xf32>, vector<32x4xf32> -> vector<32x4xf32>
    %cst_13 = arith.constant dense<0.000000e+00> : vector<32x4xf32>
    %15 = tpu.matmul %10, %12, %cst_13 {dimension_numbers = #tpu.dot_dimension_numbers<[1], [0], [0], [1], [0, 0, 1, 1], [], []>} : vector<32x128xf32>, vector<128x4xf32>, vector<32x4xf32> -> vector<32x4xf32>
    %16 = arith.truncf %10 : vector<32x128xf32> to vector<32x128xbf16>
    %17 = vector.extract_strided_slice %15 {offsets = [0, 0], sizes = [32, 1], strides = [1, 1]} : vector<32x4xf32> to vector<32x1xf32>
    %18 = vector.extract_strided_slice %14 {offsets = [0, 0], sizes = [32, 1], strides = [1, 1]} : vector<32x4xf32> to vector<32x1xf32>
    %19 = tpu.transpose %18, [1, 0] : vector<32x1xf32> -> vector<1x32xf32>
    %20 = vector.broadcast %17 : vector<32x1xf32> to vector<32x32xf32>
    %21 = vector.broadcast %19 : vector<1x32xf32> to vector<32x32xf32>
    %22 = arith.addf %20, %21 : vector<32x32xf32>
    %cst_14 = arith.constant 0.000000e+00 : f32
    %23 = vector.broadcast %cst_14 : f32 to vector<32x32xf32>
    %24 = arith.cmpf ogt, %22, %23 : vector<32x32xf32>
    %cst_15 = arith.constant 2.000000e-01 : f32
    %25 = vector.broadcast %cst_15 : f32 to vector<32x32xf32>
    %26 = arith.mulf %25, %22 : vector<32x32xf32>
    %27 = arith.select %24, %22, %26 : vector<32x32xi1>, vector<32x32xf32>
    %28 = arith.addf %27, %0 : vector<32x32xf32>
    %cst_16 = arith.constant dense<0xFF800000> : vector<32xf32>
    %29 = vector.multi_reduction <maximumf>, %28, %cst_16 [1] : vector<32x32xf32> to vector<32xf32>
    %30 = vector.shape_cast %29 : vector<32xf32> to vector<32x1xf32>
    %31 = vector.broadcast %30 : vector<32x1xf32> to vector<32x32xf32>
    %32 = arith.subf %28, %31 : vector<32x32xf32>
    %33 = math.exp %32 : vector<32x32xf32>
    %cst_17 = arith.constant dense<0.000000e+00> : vector<32xf32>
    %34 = vector.multi_reduction <add>, %33, %cst_17 [1] : vector<32x32xf32> to vector<32xf32>
    %35 = vector.shape_cast %34 : vector<32xf32> to vector<32x1xf32>
    %36 = tpu.reciprocal %35 {approx = true} : vector<32x1xf32> -> vector<32x1xf32>
    %37 = vector.broadcast %36 : vector<32x1xf32> to vector<32x32xf32>
    %38 = arith.mulf %33, %37 : vector<32x32xf32>
    %39 = arith.truncf %38 : vector<32x32xf32> to vector<32x32xbf16>
    %40 = vector.extract_strided_slice %16 {offsets = [0, 0], sizes = [32, 32], strides = [1, 1]} : vector<32x128xbf16> to vector<32x32xbf16>
    %cst_18 = arith.constant dense<0.000000e+00> : vector<32x32xf32>
    %41 = tpu.matmul %39, %40, %cst_18 {dimension_numbers = #tpu.dot_dimension_numbers<[1], [0], [0], [1], [0, 0, 1, 1], [], []>} : vector<32x32xbf16>, vector<32x32xbf16>, vector<32x32xf32> -> vector<32x32xf32>
    %42 = vector.extract_strided_slice %15 {offsets = [0, 1], sizes = [32, 1], strides = [1, 1]} : vector<32x4xf32> to vector<32x1xf32>
    %43 = vector.extract_strided_slice %14 {offsets = [0, 1], sizes = [32, 1], strides = [1, 1]} : vector<32x4xf32> to vector<32x1xf32>
    %44 = tpu.transpose %43, [1, 0] : vector<32x1xf32> -> vector<1x32xf32>
    %45 = vector.broadcast %42 : vector<32x1xf32> to vector<32x32xf32>
    %46 = vector.broadcast %44 : vector<1x32xf32> to vector<32x32xf32>
    %47 = arith.addf %45, %46 : vector<32x32xf32>
    %cst_19 = arith.constant 0.000000e+00 : f32
    %48 = vector.broadcast %cst_19 : f32 to vector<32x32xf32>
    %49 = arith.cmpf ogt, %47, %48 : vector<32x32xf32>
    %cst_20 = arith.constant 2.000000e-01 : f32
    %50 = vector.broadcast %cst_20 : f32 to vector<32x32xf32>
    %51 = arith.mulf %50, %47 : vector<32x32xf32>
    %52 = arith.select %49, %47, %51 : vector<32x32xi1>, vector<32x32xf32>
    %53 = arith.addf %52, %0 : vector<32x32xf32>
    %cst_21 = arith.constant dense<0xFF800000> : vector<32xf32>
    %54 = vector.multi_reduction <maximumf>, %53, %cst_21 [1] : vector<32x32xf32> to vector<32xf32>
    %55 = vector.shape_cast %54 : vector<32xf32> to vector<32x1xf32>
    %56 = vector.broadcast %55 : vector<32x1xf32> to vector<32x32xf32>
    %57 = arith.subf %53, %56 : vector<32x32xf32>
    %58 = math.exp %57 : vector<32x32xf32>
    %cst_22 = arith.constant dense<0.000000e+00> : vector<32xf32>
    %59 = vector.multi_reduction <add>, %58, %cst_22 [1] : vector<32x32xf32> to vector<32xf32>
    %60 = vector.shape_cast %59 : vector<32xf32> to vector<32x1xf32>
    %61 = tpu.reciprocal %60 {approx = true} : vector<32x1xf32> -> vector<32x1xf32>
    %62 = vector.broadcast %61 : vector<32x1xf32> to vector<32x32xf32>
    %63 = arith.mulf %58, %62 : vector<32x32xf32>
    %64 = arith.truncf %63 : vector<32x32xf32> to vector<32x32xbf16>
    %65 = vector.extract_strided_slice %16 {offsets = [0, 32], sizes = [32, 32], strides = [1, 1]} : vector<32x128xbf16> to vector<32x32xbf16>
    %cst_23 = arith.constant dense<0.000000e+00> : vector<32x32xf32>
    %66 = tpu.matmul %64, %65, %cst_23 {dimension_numbers = #tpu.dot_dimension_numbers<[1], [0], [0], [1], [0, 0, 1, 1], [], []>} : vector<32x32xbf16>, vector<32x32xbf16>, vector<32x32xf32> -> vector<32x32xf32>
    %67 = vector.extract_strided_slice %15 {offsets = [0, 2], sizes = [32, 1], strides = [1, 1]} : vector<32x4xf32> to vector<32x1xf32>
    %68 = vector.extract_strided_slice %14 {offsets = [0, 2], sizes = [32, 1], strides = [1, 1]} : vector<32x4xf32> to vector<32x1xf32>
    %69 = tpu.transpose %68, [1, 0] : vector<32x1xf32> -> vector<1x32xf32>
    %70 = vector.broadcast %67 : vector<32x1xf32> to vector<32x32xf32>
    %71 = vector.broadcast %69 : vector<1x32xf32> to vector<32x32xf32>
    %72 = arith.addf %70, %71 : vector<32x32xf32>
    %cst_24 = arith.constant 0.000000e+00 : f32
    %73 = vector.broadcast %cst_24 : f32 to vector<32x32xf32>
    %74 = arith.cmpf ogt, %72, %73 : vector<32x32xf32>
    %cst_25 = arith.constant 2.000000e-01 : f32
    %75 = vector.broadcast %cst_25 : f32 to vector<32x32xf32>
    %76 = arith.mulf %75, %72 : vector<32x32xf32>
    %77 = arith.select %74, %72, %76 : vector<32x32xi1>, vector<32x32xf32>
    %78 = arith.addf %77, %0 : vector<32x32xf32>
    %cst_26 = arith.constant dense<0xFF800000> : vector<32xf32>
    %79 = vector.multi_reduction <maximumf>, %78, %cst_26 [1] : vector<32x32xf32> to vector<32xf32>
    %80 = vector.shape_cast %79 : vector<32xf32> to vector<32x1xf32>
    %81 = vector.broadcast %80 : vector<32x1xf32> to vector<32x32xf32>
    %82 = arith.subf %78, %81 : vector<32x32xf32>
    %83 = math.exp %82 : vector<32x32xf32>
    %cst_27 = arith.constant dense<0.000000e+00> : vector<32xf32>
    %84 = vector.multi_reduction <add>, %83, %cst_27 [1] : vector<32x32xf32> to vector<32xf32>
    %85 = vector.shape_cast %84 : vector<32xf32> to vector<32x1xf32>
    %86 = tpu.reciprocal %85 {approx = true} : vector<32x1xf32> -> vector<32x1xf32>
    %87 = vector.broadcast %86 : vector<32x1xf32> to vector<32x32xf32>
    %88 = arith.mulf %83, %87 : vector<32x32xf32>
    %89 = arith.truncf %88 : vector<32x32xf32> to vector<32x32xbf16>
    %90 = vector.extract_strided_slice %16 {offsets = [0, 64], sizes = [32, 32], strides = [1, 1]} : vector<32x128xbf16> to vector<32x32xbf16>
    %cst_28 = arith.constant dense<0.000000e+00> : vector<32x32xf32>
    %91 = tpu.matmul %89, %90, %cst_28 {dimension_numbers = #tpu.dot_dimension_numbers<[1], [0], [0], [1], [0, 0, 1, 1], [], []>} : vector<32x32xbf16>, vector<32x32xbf16>, vector<32x32xf32> -> vector<32x32xf32>
    %92 = vector.extract_strided_slice %15 {offsets = [0, 3], sizes = [32, 1], strides = [1, 1]} : vector<32x4xf32> to vector<32x1xf32>
    %93 = vector.extract_strided_slice %14 {offsets = [0, 3], sizes = [32, 1], strides = [1, 1]} : vector<32x4xf32> to vector<32x1xf32>
    %94 = tpu.transpose %93, [1, 0] : vector<32x1xf32> -> vector<1x32xf32>
    %95 = vector.broadcast %92 : vector<32x1xf32> to vector<32x32xf32>
    %96 = vector.broadcast %94 : vector<1x32xf32> to vector<32x32xf32>
    %97 = arith.addf %95, %96 : vector<32x32xf32>
    %cst_29 = arith.constant 0.000000e+00 : f32
    %98 = vector.broadcast %cst_29 : f32 to vector<32x32xf32>
    %99 = arith.cmpf ogt, %97, %98 : vector<32x32xf32>
    %cst_30 = arith.constant 2.000000e-01 : f32
    %100 = vector.broadcast %cst_30 : f32 to vector<32x32xf32>
    %101 = arith.mulf %100, %97 : vector<32x32xf32>
    %102 = arith.select %99, %97, %101 : vector<32x32xi1>, vector<32x32xf32>
    %103 = arith.addf %102, %0 : vector<32x32xf32>
    %cst_31 = arith.constant dense<0xFF800000> : vector<32xf32>
    %104 = vector.multi_reduction <maximumf>, %103, %cst_31 [1] : vector<32x32xf32> to vector<32xf32>
    %105 = vector.shape_cast %104 : vector<32xf32> to vector<32x1xf32>
    %106 = vector.broadcast %105 : vector<32x1xf32> to vector<32x32xf32>
    %107 = arith.subf %103, %106 : vector<32x32xf32>
    %108 = math.exp %107 : vector<32x32xf32>
    %cst_32 = arith.constant dense<0.000000e+00> : vector<32xf32>
    %109 = vector.multi_reduction <add>, %108, %cst_32 [1] : vector<32x32xf32> to vector<32xf32>
    %110 = vector.shape_cast %109 : vector<32xf32> to vector<32x1xf32>
    %111 = tpu.reciprocal %110 {approx = true} : vector<32x1xf32> -> vector<32x1xf32>
    %112 = vector.broadcast %111 : vector<32x1xf32> to vector<32x32xf32>
    %113 = arith.mulf %108, %112 : vector<32x32xf32>
    %114 = arith.truncf %113 : vector<32x32xf32> to vector<32x32xbf16>
    %115 = vector.extract_strided_slice %16 {offsets = [0, 96], sizes = [32, 32], strides = [1, 1]} : vector<32x128xbf16> to vector<32x32xbf16>
    %cst_33 = arith.constant dense<0.000000e+00> : vector<32x32xf32>
    %116 = tpu.matmul %114, %115, %cst_33 {dimension_numbers = #tpu.dot_dimension_numbers<[1], [0], [0], [1], [0, 0, 1, 1], [], []>} : vector<32x32xbf16>, vector<32x32xbf16>, vector<32x32xf32> -> vector<32x32xf32>
    %117 = tpu.concatenate %41, %66, %91, %116 in 1 : vector<32x32xf32>, vector<32x32xf32>, vector<32x32xf32>, vector<32x32xf32> -> vector<32x128xf32>
    %118 = vector.broadcast %13 : vector<1x128xf32> to vector<32x128xf32>
    %119 = arith.addf %117, %118 : vector<32x128xf32>
    %120 = arith.truncf %119 : vector<32x128xf32> to vector<32x128xbf16>
    %c0_34 = arith.constant 0 : index
    %c0_35 = arith.constant 0 : index
    %121 = vector.load %arg10[%c0_34, %c0_35] : memref<128x128xbf16, #tpu.memory_space<vmem>>, vector<128x128xbf16>
    %cst_36 = arith.constant dense<0.000000e+00> : vector<32x128xf32>
    %122 = tpu.matmul %120, %121, %cst_36 {dimension_numbers = #tpu.dot_dimension_numbers<[1], [0], [0], [1], [0, 0, 1, 1], [], []>} : vector<32x128xbf16>, vector<128x128xbf16>, vector<32x128xf32> -> vector<32x128xf32>
    %c0_37 = arith.constant 0 : index
    %c0_38 = arith.constant 0 : index
    %123 = vector.load %arg11[%c0_37, %c0_38] : memref<128x1xf32, #tpu.memory_space<vmem>>, vector<128x1xf32>
    %c0_39 = arith.constant 0 : index
    %c0_40 = arith.constant 0 : index
    %124 = vector.load %arg12[%c0_39, %c0_40] : memref<128x1xf32, #tpu.memory_space<vmem>>, vector<128x1xf32>
    %c0_41 = arith.constant 0 : index
    %c0_42 = arith.constant 0 : index
    %125 = vector.load %arg13[%c0_41, %c0_42] : memref<1x128xf32, #tpu.memory_space<vmem>>, vector<1x128xf32>
    %cst_43 = arith.constant dense<0.000000e+00> : vector<32x1xf32>
    %126 = tpu.matmul %122, %123, %cst_43 {dimension_numbers = #tpu.dot_dimension_numbers<[1], [0], [0], [1], [0, 0, 1, 1], [], []>} : vector<32x128xf32>, vector<128x1xf32>, vector<32x1xf32> -> vector<32x1xf32>
    %cst_44 = arith.constant dense<0.000000e+00> : vector<32x1xf32>
    %127 = tpu.matmul %122, %124, %cst_44 {dimension_numbers = #tpu.dot_dimension_numbers<[1], [0], [0], [1], [0, 0, 1, 1], [], []>} : vector<32x128xf32>, vector<128x1xf32>, vector<32x1xf32> -> vector<32x1xf32>
    %128 = arith.truncf %122 : vector<32x128xf32> to vector<32x128xbf16>
    %129 = tpu.transpose %126, [1, 0] : vector<32x1xf32> -> vector<1x32xf32>
    %130 = vector.broadcast %127 : vector<32x1xf32> to vector<32x32xf32>
    %131 = vector.broadcast %129 : vector<1x32xf32> to vector<32x32xf32>
    %132 = arith.addf %130, %131 : vector<32x32xf32>
    %cst_45 = arith.constant 0.000000e+00 : f32
    %133 = vector.broadcast %cst_45 : f32 to vector<32x32xf32>
    %134 = arith.cmpf ogt, %132, %133 : vector<32x32xf32>
    %cst_46 = arith.constant 2.000000e-01 : f32
    %135 = vector.broadcast %cst_46 : f32 to vector<32x32xf32>
    %136 = arith.mulf %135, %132 : vector<32x32xf32>
    %137 = arith.select %134, %132, %136 : vector<32x32xi1>, vector<32x32xf32>
    %138 = arith.addf %137, %0 : vector<32x32xf32>
    %cst_47 = arith.constant dense<0xFF800000> : vector<32xf32>
    %139 = vector.multi_reduction <maximumf>, %138, %cst_47 [1] : vector<32x32xf32> to vector<32xf32>
    %140 = vector.shape_cast %139 : vector<32xf32> to vector<32x1xf32>
    %141 = vector.broadcast %140 : vector<32x1xf32> to vector<32x32xf32>
    %142 = arith.subf %138, %141 : vector<32x32xf32>
    %143 = math.exp %142 : vector<32x32xf32>
    %cst_48 = arith.constant dense<0.000000e+00> : vector<32xf32>
    %144 = vector.multi_reduction <add>, %143, %cst_48 [1] : vector<32x32xf32> to vector<32xf32>
    %145 = vector.shape_cast %144 : vector<32xf32> to vector<32x1xf32>
    %146 = tpu.reciprocal %145 {approx = true} : vector<32x1xf32> -> vector<32x1xf32>
    %147 = vector.broadcast %146 : vector<32x1xf32> to vector<32x32xf32>
    %148 = arith.mulf %143, %147 : vector<32x32xf32>
    %149 = arith.truncf %148 : vector<32x32xf32> to vector<32x32xbf16>
    %cst_49 = arith.constant dense<0.000000e+00> : vector<32x128xf32>
    %150 = tpu.matmul %149, %128, %cst_49 {dimension_numbers = #tpu.dot_dimension_numbers<[1], [0], [0], [1], [0, 0, 1, 1], [], []>} : vector<32x32xbf16>, vector<32x128xbf16>, vector<32x128xf32> -> vector<32x128xf32>
    %151 = vector.broadcast %125 : vector<1x128xf32> to vector<32x128xf32>
    %152 = arith.addf %150, %151 : vector<32x128xf32>
    %c0_50 = arith.constant 0 : index
    %c0_51 = arith.constant 0 : index
    %153 = vector.load %arg6[%c0_50, %c0_51] : memref<1536x128xbf16, #tpu.memory_space<vmem>>, vector<1536x128xbf16>
    %154 = vector.extract_strided_slice %153 {offsets = [0, 0], sizes = [768, 128], strides = [1, 1]} : vector<1536x128xbf16> to vector<768x128xbf16>
    %cst_52 = arith.constant dense<0.000000e+00> : vector<32x128xf32>
    %155 = tpu.matmul %2, %154, %cst_52 {dimension_numbers = #tpu.dot_dimension_numbers<[1], [0], [0], [1], [0, 0, 1, 1], [], []>} : vector<32x768xbf16>, vector<768x128xbf16>, vector<32x128xf32> -> vector<32x128xf32>
    %156 = vector.extract_strided_slice %153 {offsets = [768, 0], sizes = [768, 128], strides = [1, 1]} : vector<1536x128xbf16> to vector<768x128xbf16>
    %cst_53 = arith.constant dense<0.000000e+00> : vector<32x128xf32>
    %157 = tpu.matmul %4, %156, %cst_53 {dimension_numbers = #tpu.dot_dimension_numbers<[1], [0], [0], [1], [0, 0, 1, 1], [], []>} : vector<32x768xbf16>, vector<768x128xbf16>, vector<32x128xf32> -> vector<32x128xf32>
    %158 = arith.addf %155, %157 : vector<32x128xf32>
    %c0_54 = arith.constant 0 : index
    %c0_55 = arith.constant 0 : index
    %159 = vector.load %arg7[%c0_54, %c0_55] : memref<128x4xf32, #tpu.memory_space<vmem>>, vector<128x4xf32>
    %c0_56 = arith.constant 0 : index
    %c0_57 = arith.constant 0 : index
    %160 = vector.load %arg8[%c0_56, %c0_57] : memref<128x4xf32, #tpu.memory_space<vmem>>, vector<128x4xf32>
    %c0_58 = arith.constant 0 : index
    %c0_59 = arith.constant 0 : index
    %161 = vector.load %arg9[%c0_58, %c0_59] : memref<1x128xf32, #tpu.memory_space<vmem>>, vector<1x128xf32>
    %cst_60 = arith.constant dense<0.000000e+00> : vector<32x4xf32>
    %162 = tpu.matmul %158, %159, %cst_60 {dimension_numbers = #tpu.dot_dimension_numbers<[1], [0], [0], [1], [0, 0, 1, 1], [], []>} : vector<32x128xf32>, vector<128x4xf32>, vector<32x4xf32> -> vector<32x4xf32>
    %cst_61 = arith.constant dense<0.000000e+00> : vector<32x4xf32>
    %163 = tpu.matmul %158, %160, %cst_61 {dimension_numbers = #tpu.dot_dimension_numbers<[1], [0], [0], [1], [0, 0, 1, 1], [], []>} : vector<32x128xf32>, vector<128x4xf32>, vector<32x4xf32> -> vector<32x4xf32>
    %164 = arith.truncf %158 : vector<32x128xf32> to vector<32x128xbf16>
    %165 = vector.extract_strided_slice %163 {offsets = [0, 0], sizes = [32, 1], strides = [1, 1]} : vector<32x4xf32> to vector<32x1xf32>
    %166 = vector.extract_strided_slice %162 {offsets = [0, 0], sizes = [32, 1], strides = [1, 1]} : vector<32x4xf32> to vector<32x1xf32>
    %167 = tpu.transpose %166, [1, 0] : vector<32x1xf32> -> vector<1x32xf32>
    %168 = vector.broadcast %165 : vector<32x1xf32> to vector<32x32xf32>
    %169 = vector.broadcast %167 : vector<1x32xf32> to vector<32x32xf32>
    %170 = arith.addf %168, %169 : vector<32x32xf32>
    %cst_62 = arith.constant 0.000000e+00 : f32
    %171 = vector.broadcast %cst_62 : f32 to vector<32x32xf32>
    %172 = arith.cmpf ogt, %170, %171 : vector<32x32xf32>
    %cst_63 = arith.constant 2.000000e-01 : f32
    %173 = vector.broadcast %cst_63 : f32 to vector<32x32xf32>
    %174 = arith.mulf %173, %170 : vector<32x32xf32>
    %175 = arith.select %172, %170, %174 : vector<32x32xi1>, vector<32x32xf32>
    %176 = arith.addf %175, %0 : vector<32x32xf32>
    %cst_64 = arith.constant dense<0xFF800000> : vector<32xf32>
    %177 = vector.multi_reduction <maximumf>, %176, %cst_64 [1] : vector<32x32xf32> to vector<32xf32>
    %178 = vector.shape_cast %177 : vector<32xf32> to vector<32x1xf32>
    %179 = vector.broadcast %178 : vector<32x1xf32> to vector<32x32xf32>
    %180 = arith.subf %176, %179 : vector<32x32xf32>
    %181 = math.exp %180 : vector<32x32xf32>
    %cst_65 = arith.constant dense<0.000000e+00> : vector<32xf32>
    %182 = vector.multi_reduction <add>, %181, %cst_65 [1] : vector<32x32xf32> to vector<32xf32>
    %183 = vector.shape_cast %182 : vector<32xf32> to vector<32x1xf32>
    %184 = tpu.reciprocal %183 {approx = true} : vector<32x1xf32> -> vector<32x1xf32>
    %185 = vector.broadcast %184 : vector<32x1xf32> to vector<32x32xf32>
    %186 = arith.mulf %181, %185 : vector<32x32xf32>
    %187 = arith.truncf %186 : vector<32x32xf32> to vector<32x32xbf16>
    %188 = vector.extract_strided_slice %164 {offsets = [0, 0], sizes = [32, 32], strides = [1, 1]} : vector<32x128xbf16> to vector<32x32xbf16>
    %cst_66 = arith.constant dense<0.000000e+00> : vector<32x32xf32>
    %189 = tpu.matmul %187, %188, %cst_66 {dimension_numbers = #tpu.dot_dimension_numbers<[1], [0], [0], [1], [0, 0, 1, 1], [], []>} : vector<32x32xbf16>, vector<32x32xbf16>, vector<32x32xf32> -> vector<32x32xf32>
    %190 = vector.extract_strided_slice %163 {offsets = [0, 1], sizes = [32, 1], strides = [1, 1]} : vector<32x4xf32> to vector<32x1xf32>
    %191 = vector.extract_strided_slice %162 {offsets = [0, 1], sizes = [32, 1], strides = [1, 1]} : vector<32x4xf32> to vector<32x1xf32>
    %192 = tpu.transpose %191, [1, 0] : vector<32x1xf32> -> vector<1x32xf32>
    %193 = vector.broadcast %190 : vector<32x1xf32> to vector<32x32xf32>
    %194 = vector.broadcast %192 : vector<1x32xf32> to vector<32x32xf32>
    %195 = arith.addf %193, %194 : vector<32x32xf32>
    %cst_67 = arith.constant 0.000000e+00 : f32
    %196 = vector.broadcast %cst_67 : f32 to vector<32x32xf32>
    %197 = arith.cmpf ogt, %195, %196 : vector<32x32xf32>
    %cst_68 = arith.constant 2.000000e-01 : f32
    %198 = vector.broadcast %cst_68 : f32 to vector<32x32xf32>
    %199 = arith.mulf %198, %195 : vector<32x32xf32>
    %200 = arith.select %197, %195, %199 : vector<32x32xi1>, vector<32x32xf32>
    %201 = arith.addf %200, %0 : vector<32x32xf32>
    %cst_69 = arith.constant dense<0xFF800000> : vector<32xf32>
    %202 = vector.multi_reduction <maximumf>, %201, %cst_69 [1] : vector<32x32xf32> to vector<32xf32>
    %203 = vector.shape_cast %202 : vector<32xf32> to vector<32x1xf32>
    %204 = vector.broadcast %203 : vector<32x1xf32> to vector<32x32xf32>
    %205 = arith.subf %201, %204 : vector<32x32xf32>
    %206 = math.exp %205 : vector<32x32xf32>
    %cst_70 = arith.constant dense<0.000000e+00> : vector<32xf32>
    %207 = vector.multi_reduction <add>, %206, %cst_70 [1] : vector<32x32xf32> to vector<32xf32>
    %208 = vector.shape_cast %207 : vector<32xf32> to vector<32x1xf32>
    %209 = tpu.reciprocal %208 {approx = true} : vector<32x1xf32> -> vector<32x1xf32>
    %210 = vector.broadcast %209 : vector<32x1xf32> to vector<32x32xf32>
    %211 = arith.mulf %206, %210 : vector<32x32xf32>
    %212 = arith.truncf %211 : vector<32x32xf32> to vector<32x32xbf16>
    %213 = vector.extract_strided_slice %164 {offsets = [0, 32], sizes = [32, 32], strides = [1, 1]} : vector<32x128xbf16> to vector<32x32xbf16>
    %cst_71 = arith.constant dense<0.000000e+00> : vector<32x32xf32>
    %214 = tpu.matmul %212, %213, %cst_71 {dimension_numbers = #tpu.dot_dimension_numbers<[1], [0], [0], [1], [0, 0, 1, 1], [], []>} : vector<32x32xbf16>, vector<32x32xbf16>, vector<32x32xf32> -> vector<32x32xf32>
    %215 = vector.extract_strided_slice %163 {offsets = [0, 2], sizes = [32, 1], strides = [1, 1]} : vector<32x4xf32> to vector<32x1xf32>
    %216 = vector.extract_strided_slice %162 {offsets = [0, 2], sizes = [32, 1], strides = [1, 1]} : vector<32x4xf32> to vector<32x1xf32>
    %217 = tpu.transpose %216, [1, 0] : vector<32x1xf32> -> vector<1x32xf32>
    %218 = vector.broadcast %215 : vector<32x1xf32> to vector<32x32xf32>
    %219 = vector.broadcast %217 : vector<1x32xf32> to vector<32x32xf32>
    %220 = arith.addf %218, %219 : vector<32x32xf32>
    %cst_72 = arith.constant 0.000000e+00 : f32
    %221 = vector.broadcast %cst_72 : f32 to vector<32x32xf32>
    %222 = arith.cmpf ogt, %220, %221 : vector<32x32xf32>
    %cst_73 = arith.constant 2.000000e-01 : f32
    %223 = vector.broadcast %cst_73 : f32 to vector<32x32xf32>
    %224 = arith.mulf %223, %220 : vector<32x32xf32>
    %225 = arith.select %222, %220, %224 : vector<32x32xi1>, vector<32x32xf32>
    %226 = arith.addf %225, %0 : vector<32x32xf32>
    %cst_74 = arith.constant dense<0xFF800000> : vector<32xf32>
    %227 = vector.multi_reduction <maximumf>, %226, %cst_74 [1] : vector<32x32xf32> to vector<32xf32>
    %228 = vector.shape_cast %227 : vector<32xf32> to vector<32x1xf32>
    %229 = vector.broadcast %228 : vector<32x1xf32> to vector<32x32xf32>
    %230 = arith.subf %226, %229 : vector<32x32xf32>
    %231 = math.exp %230 : vector<32x32xf32>
    %cst_75 = arith.constant dense<0.000000e+00> : vector<32xf32>
    %232 = vector.multi_reduction <add>, %231, %cst_75 [1] : vector<32x32xf32> to vector<32xf32>
    %233 = vector.shape_cast %232 : vector<32xf32> to vector<32x1xf32>
    %234 = tpu.reciprocal %233 {approx = true} : vector<32x1xf32> -> vector<32x1xf32>
    %235 = vector.broadcast %234 : vector<32x1xf32> to vector<32x32xf32>
    %236 = arith.mulf %231, %235 : vector<32x32xf32>
    %237 = arith.truncf %236 : vector<32x32xf32> to vector<32x32xbf16>
    %238 = vector.extract_strided_slice %164 {offsets = [0, 64], sizes = [32, 32], strides = [1, 1]} : vector<32x128xbf16> to vector<32x32xbf16>
    %cst_76 = arith.constant dense<0.000000e+00> : vector<32x32xf32>
    %239 = tpu.matmul %237, %238, %cst_76 {dimension_numbers = #tpu.dot_dimension_numbers<[1], [0], [0], [1], [0, 0, 1, 1], [], []>} : vector<32x32xbf16>, vector<32x32xbf16>, vector<32x32xf32> -> vector<32x32xf32>
    %240 = vector.extract_strided_slice %163 {offsets = [0, 3], sizes = [32, 1], strides = [1, 1]} : vector<32x4xf32> to vector<32x1xf32>
    %241 = vector.extract_strided_slice %162 {offsets = [0, 3], sizes = [32, 1], strides = [1, 1]} : vector<32x4xf32> to vector<32x1xf32>
    %242 = tpu.transpose %241, [1, 0] : vector<32x1xf32> -> vector<1x32xf32>
    %243 = vector.broadcast %240 : vector<32x1xf32> to vector<32x32xf32>
    %244 = vector.broadcast %242 : vector<1x32xf32> to vector<32x32xf32>
    %245 = arith.addf %243, %244 : vector<32x32xf32>
    %cst_77 = arith.constant 0.000000e+00 : f32
    %246 = vector.broadcast %cst_77 : f32 to vector<32x32xf32>
    %247 = arith.cmpf ogt, %245, %246 : vector<32x32xf32>
    %cst_78 = arith.constant 2.000000e-01 : f32
    %248 = vector.broadcast %cst_78 : f32 to vector<32x32xf32>
    %249 = arith.mulf %248, %245 : vector<32x32xf32>
    %250 = arith.select %247, %245, %249 : vector<32x32xi1>, vector<32x32xf32>
    %251 = arith.addf %250, %0 : vector<32x32xf32>
    %cst_79 = arith.constant dense<0xFF800000> : vector<32xf32>
    %252 = vector.multi_reduction <maximumf>, %251, %cst_79 [1] : vector<32x32xf32> to vector<32xf32>
    %253 = vector.shape_cast %252 : vector<32xf32> to vector<32x1xf32>
    %254 = vector.broadcast %253 : vector<32x1xf32> to vector<32x32xf32>
    %255 = arith.subf %251, %254 : vector<32x32xf32>
    %256 = math.exp %255 : vector<32x32xf32>
    %cst_80 = arith.constant dense<0.000000e+00> : vector<32xf32>
    %257 = vector.multi_reduction <add>, %256, %cst_80 [1] : vector<32x32xf32> to vector<32xf32>
    %258 = vector.shape_cast %257 : vector<32xf32> to vector<32x1xf32>
    %259 = tpu.reciprocal %258 {approx = true} : vector<32x1xf32> -> vector<32x1xf32>
    %260 = vector.broadcast %259 : vector<32x1xf32> to vector<32x32xf32>
    %261 = arith.mulf %256, %260 : vector<32x32xf32>
    %262 = arith.truncf %261 : vector<32x32xf32> to vector<32x32xbf16>
    %263 = vector.extract_strided_slice %164 {offsets = [0, 96], sizes = [32, 32], strides = [1, 1]} : vector<32x128xbf16> to vector<32x32xbf16>
    %cst_81 = arith.constant dense<0.000000e+00> : vector<32x32xf32>
    %264 = tpu.matmul %262, %263, %cst_81 {dimension_numbers = #tpu.dot_dimension_numbers<[1], [0], [0], [1], [0, 0, 1, 1], [], []>} : vector<32x32xbf16>, vector<32x32xbf16>, vector<32x32xf32> -> vector<32x32xf32>
    %265 = tpu.concatenate %189, %214, %239, %264 in 1 : vector<32x32xf32>, vector<32x32xf32>, vector<32x32xf32>, vector<32x32xf32> -> vector<32x128xf32>
    %266 = vector.broadcast %161 : vector<1x128xf32> to vector<32x128xf32>
    %267 = arith.addf %265, %266 : vector<32x128xf32>
    %268 = arith.truncf %267 : vector<32x128xf32> to vector<32x128xbf16>
    %c0_82 = arith.constant 0 : index
    %c0_83 = arith.constant 0 : index
    %269 = vector.load %arg14[%c0_82, %c0_83] : memref<128x128xbf16, #tpu.memory_space<vmem>>, vector<128x128xbf16>
    %cst_84 = arith.constant dense<0.000000e+00> : vector<32x128xf32>
    %270 = tpu.matmul %268, %269, %cst_84 {dimension_numbers = #tpu.dot_dimension_numbers<[1], [0], [0], [1], [0, 0, 1, 1], [], []>} : vector<32x128xbf16>, vector<128x128xbf16>, vector<32x128xf32> -> vector<32x128xf32>
    %c0_85 = arith.constant 0 : index
    %c0_86 = arith.constant 0 : index
    %271 = vector.load %arg15[%c0_85, %c0_86] : memref<128x1xf32, #tpu.memory_space<vmem>>, vector<128x1xf32>
    %c0_87 = arith.constant 0 : index
    %c0_88 = arith.constant 0 : index
    %272 = vector.load %arg16[%c0_87, %c0_88] : memref<128x1xf32, #tpu.memory_space<vmem>>, vector<128x1xf32>
    %c0_89 = arith.constant 0 : index
    %c0_90 = arith.constant 0 : index
    %273 = vector.load %arg17[%c0_89, %c0_90] : memref<1x128xf32, #tpu.memory_space<vmem>>, vector<1x128xf32>
    %cst_91 = arith.constant dense<0.000000e+00> : vector<32x1xf32>
    %274 = tpu.matmul %270, %271, %cst_91 {dimension_numbers = #tpu.dot_dimension_numbers<[1], [0], [0], [1], [0, 0, 1, 1], [], []>} : vector<32x128xf32>, vector<128x1xf32>, vector<32x1xf32> -> vector<32x1xf32>
    %cst_92 = arith.constant dense<0.000000e+00> : vector<32x1xf32>
    %275 = tpu.matmul %270, %272, %cst_92 {dimension_numbers = #tpu.dot_dimension_numbers<[1], [0], [0], [1], [0, 0, 1, 1], [], []>} : vector<32x128xf32>, vector<128x1xf32>, vector<32x1xf32> -> vector<32x1xf32>
    %276 = arith.truncf %270 : vector<32x128xf32> to vector<32x128xbf16>
    %277 = tpu.transpose %274, [1, 0] : vector<32x1xf32> -> vector<1x32xf32>
    %278 = vector.broadcast %275 : vector<32x1xf32> to vector<32x32xf32>
    %279 = vector.broadcast %277 : vector<1x32xf32> to vector<32x32xf32>
    %280 = arith.addf %278, %279 : vector<32x32xf32>
    %cst_93 = arith.constant 0.000000e+00 : f32
    %281 = vector.broadcast %cst_93 : f32 to vector<32x32xf32>
    %282 = arith.cmpf ogt, %280, %281 : vector<32x32xf32>
    %cst_94 = arith.constant 2.000000e-01 : f32
    %283 = vector.broadcast %cst_94 : f32 to vector<32x32xf32>
    %284 = arith.mulf %283, %280 : vector<32x32xf32>
    %285 = arith.select %282, %280, %284 : vector<32x32xi1>, vector<32x32xf32>
    %286 = arith.addf %285, %0 : vector<32x32xf32>
    %cst_95 = arith.constant dense<0xFF800000> : vector<32xf32>
    %287 = vector.multi_reduction <maximumf>, %286, %cst_95 [1] : vector<32x32xf32> to vector<32xf32>
    %288 = vector.shape_cast %287 : vector<32xf32> to vector<32x1xf32>
    %289 = vector.broadcast %288 : vector<32x1xf32> to vector<32x32xf32>
    %290 = arith.subf %286, %289 : vector<32x32xf32>
    %291 = math.exp %290 : vector<32x32xf32>
    %cst_96 = arith.constant dense<0.000000e+00> : vector<32xf32>
    %292 = vector.multi_reduction <add>, %291, %cst_96 [1] : vector<32x32xf32> to vector<32xf32>
    %293 = vector.shape_cast %292 : vector<32xf32> to vector<32x1xf32>
    %294 = tpu.reciprocal %293 {approx = true} : vector<32x1xf32> -> vector<32x1xf32>
    %295 = vector.broadcast %294 : vector<32x1xf32> to vector<32x32xf32>
    %296 = arith.mulf %291, %295 : vector<32x32xf32>
    %297 = arith.truncf %296 : vector<32x32xf32> to vector<32x32xbf16>
    %cst_97 = arith.constant dense<0.000000e+00> : vector<32x128xf32>
    %298 = tpu.matmul %297, %276, %cst_97 {dimension_numbers = #tpu.dot_dimension_numbers<[1], [0], [0], [1], [0, 0, 1, 1], [], []>} : vector<32x32xbf16>, vector<32x128xbf16>, vector<32x128xf32> -> vector<32x128xf32>
    %299 = vector.broadcast %273 : vector<1x128xf32> to vector<32x128xf32>
    %300 = arith.addf %298, %299 : vector<32x128xf32>
    %301 = arith.addf %152, %300 : vector<32x128xf32>
    %c0_98 = arith.constant 0 : index
    %c0_99 = arith.constant 0 : index
    %302 = vector.load %arg18[%c0_98, %c0_99] : memref<32x128xf32, #tpu.memory_space<vmem>>, vector<32x128xf32>
    tpu.vector_store %arg18[%c0_98, %c0_99], %301 {strides = array<i32>} : memref<32x128xf32, #tpu.memory_space<vmem>>, vector<32x128xf32>,
    return
  }
}

</mosaic_0001>

<bundles_post_ra>
// kernel: tpu_custom_call.1
= control target key start
LH: loop header
LB: loop body
LE: loop exit
PB: predicated region body
PF: predicated region fallthrough
CT: control target
= control target key end

     0   :  { %s7621_s0 = inlined_call_operand.hbm [shape: bf16[32,2304], index: 0, kind: input, shape index: {}]   ;;  %s7622_s1 = inlined_call_operand.vmem [shape: f32[32,32], index: 1, kind: input, shape index: {}]   ;;  %s7623_s2 = inlined_call_operand.hbm [shape: bf16[1536,128], index: 2, kind: input, shape index: {}]   ;;  %s7624_s3 = inlined_call_operand.vmem [shape: f32[128,4], index: 3, kind: input, shape index: {}]   ;;  %s7625_s4 = inlined_call_operand.vmem [shape: f32[128,4], index: 4, kind: input, shape index: {}]   ;;  %s7626_s5 = inlined_call_operand.vmem [shape: f32[1,128], index: 5, kind: input, shape index: {}]   ;;  %s7627_s6 = inlined_call_operand.hbm [shape: bf16[1536,128], index: 6, kind: input, shape index: {}]   ;;  %s7628_s7 = inlined_call_operand.vmem [shape: f32[128,4], index: 7, kind: input, shape index: {}]   ;;  %s7629_s8 = inlined_call_operand.vmem [shape: f32[128,4], index: 8, kind: input, shape index: {}]   ;;  %s7630_s9 = inlined_call_operand.vmem [shape: f32[1,128], index: 9, kind: input, shape index: {}]   ;;  %s7631_s10 = inlined_call_operand.vmem [shape: bf16[128,128], index: 10, kind: input, shape index: {}]   ;;  %s7632_s11 = inlined_call_operand.vmem [shape: f32[128,1], index: 11, kind: input, shape index: {}]   ;;  %s7633_s12 = inlined_call_operand.vmem [shape: f32[128,1], index: 12, kind: input, shape index: {}]   ;;  %s7634_s13 = inlined_call_operand.vmem [shape: f32[1,128], index: 13, kind: input, shape index: {}]   ;;  %s7635_s14 = inlined_call_operand.vmem [shape: bf16[128,128], index: 14, kind: input, shape index: {}]   ;;  %s7636_s15 = inlined_call_operand.vmem [shape: f32[128,1], index: 15, kind: input, shape index: {}]   ;;  %s7637_s16 = inlined_call_operand.vmem [shape: f32[128,1], index: 16, kind: input, shape index: {}]   ;;  %s7638_s17 = inlined_call_operand.vmem [shape: f32[1,128], index: 17, kind: input, shape index: {}]   ;;  %s7639_s18 = inlined_call_operand.hbm [shape: f32[32,128], index: 18, kind: output, shape index: {}]  }
   0x1   :  { %7641 = sst [smem:[#allocation12_spill]] %s7621_s0 }
   0x2   :  { %7642 = sst [smem:[#allocation13_spill]] %s7622_s1 }
   0x3   :  { %7643 = sst [smem:[#allocation14_spill]] %s7623_s2 }
   0x4   :  { %7644 = sst [smem:[#allocation15_spill]] %s7639_s18 }
   0x5   :  { %23 = vsyncpa [#allocation3], 0 }
   0x6   :  { %24 = vsyncpa [#allocation6], 0  ;;  %s7645_s29 = sld [smem:[#allocation14_spill]] }
   0xc   :  { %s45_s30 = sshll.u32 %s7645_s29, 4  ;;  %s46_s30 = int_to_ptr.hbm [resolvable:$true] %s45_s30 }
   0xd   :  { %25 = vsyncpa [#allocation4], 0  ;;  %s6157_s0 = smov [#allocation5]   ;;  %s7646_s21 = sld [smem:[#allocation12_spill]] }
   0xe   :  { %s47_s19 = sshll.u32 %s6157_s0, 4  ;;  %s6158_s2 = smov 64   ;;  %s48_s19 = int_to_ptr.vmem [resolvable:$true] %s47_s19 }
   0xf   :  { %s6159_s23 = smov 4   ;;  %s6160_s24 = smov [#allocation2]  }
  0x10   :  { %53 = dma.hbm_to_vmem [thread:$0]  %s46_s30, 12288, %s48_s19, [#allocation6], %s6158_s2, %s6158_s2, %s6159_s23  }
  0x11   :  { %s32_s25 = sshll.u32 %s6160_s24, 4  ;;  %s6161_s26 = smov 1152   ;;  %s33_s25 = int_to_ptr.vmem [resolvable:$true] %s32_s25 }
  0x12   :  { %s6162_s27 = smov 72   ;;  %s64_s0 = sshll.u32 %s7627_s6, 4  ;;  %s65_s0 = int_to_ptr.hbm [resolvable:$true] %s64_s0 }
  0x13   :  { %s30_s22 = sshll.u32 %s7646_s21, 4  ;;  %s6163_s18 = smov [#allocation7]   ;;  %s31_s22 = int_to_ptr.hbm [resolvable:$true] %s30_s22 }
  0x14   :  { %38 = dma.hbm_to_vmem [thread:$0]  %s31_s22, 4608, %s33_s25, [#allocation3], %s6161_s26, %s6161_s26, %s6162_s27  }
  0x15   :  { %s66_s1 = sshll.u32 %s6163_s18, 4  ;;  %s67_s1 = int_to_ptr.vmem [resolvable:$true] %s66_s1 }
  0x16   :  { %72 = dma.hbm_to_vmem [thread:$0]  %s65_s0, 12288, %s67_s1, [#allocation6], %s6158_s2, %s6158_s2, %s6159_s23  }
  0x17   :  { %6151 = dma.done.wait [#allocation3], 4608  }
  0x18   :  { %6152 = vsyncadd [#allocation3], 4294962688 }
  0x19   :  { %6153 = dma.done.wait [#allocation6], 24576  }
  0x1a   :  { %6154 = vsyncadd [#allocation6], 4294942720  ;;  %v5680_v0 = vld [vmem:[#allocation5 + $0x1b8] sm:$0xff]  ;;  %v5679_v4 = vld [vmem:[#allocation5 + $0x1b0] sm:$0xff]  ;;  %s6169_s6 = smov 127   ;;  %s7647_s19 = sld [smem:[#allocation13_spill]] }
  0x1b   :  { %v5688_v1 = vld [vmem:[#allocation5 + $0x1f8] sm:$0xff]  ;;  %688 = vmatpush.bf16.msra.mxu0 %v5680_v0  ;;  %v5687_v5 = vld [vmem:[#allocation5 + $0x1f0] sm:$0xff]  ;;  %v5678_v8 = vld [vmem:[#allocation5 + $0x1a8] sm:$0xff]  ;;  %vm1432_vm2 = vcmask 261120   ;;  %s6171_s26 = smov 96   ;;  %s6172_s27 = smov 32  }
  0x1c   :  { %v5696_v2 = vld [vmem:[#allocation5 + $0x238] sm:$0xff]  ;;  %707 = vmatpush.bf16.msra.mxu1 %v5688_v1  ;;  %v5695_v6 = vld [vmem:[#allocation5 + $0x230] sm:$0xff]  ;;  %v5686_v9 = vld [vmem:[#allocation5 + $0x1e8] sm:$0xff]  ;;  %s7648_s25 = sld [smem:[#allocation15_spill]]  ;;  %s6174_s29 = smov 128  }
  0x1d   :  { %v5704_v3 = vld [vmem:[#allocation5 + $0x278] sm:$0xff]  ;;  %726 = vmatpush.bf16.msra.mxu2 %v5696_v2  ;;  %v5703_v7 = vld [vmem:[#allocation5 + $0x270] sm:$0xff]  ;;  %v5694_v10 = vld [vmem:[#allocation5 + $0x228] sm:$0xff] }
  0x1e   :  { %745 = vmatpush.bf16.msra.mxu3 %v5704_v3  ;;  %v5702_v11 = vld [vmem:[#allocation5 + $0x268] sm:$0xff]  ;;  %v5677_v12 = vld [vmem:[#allocation5 + $0x1a0] sm:$0xff]  ;;  %v5676_v16 = vld [vmem:[#allocation5 + $0x198] sm:$0xff] }
  0x1f   :  { %689 = vmatpush.bf16.msra.mxu0 %v5679_v4  ;;  %v5685_v13 = vld [vmem:[#allocation5 + $0x1e0] sm:$0xff]  ;;  %v5684_v17 = vld [vmem:[#allocation5 + $0x1d8] sm:$0xff]  ;;  %v5675_v20 = vld [vmem:[#allocation5 + $0x190] sm:$0xff] }
  0x20   :  { %708 = vmatpush.bf16.msra.mxu1 %v5687_v5  ;;  %v5693_v14 = vld [vmem:[#allocation5 + $0x220] sm:$0xff]  ;;  %v5692_v18 = vld [vmem:[#allocation5 + $0x218] sm:$0xff]  ;;  %v5683_v21 = vld [vmem:[#allocation5 + $0x1d0] sm:$0xff] }
  0x21   :  { %727 = vmatpush.bf16.msra.mxu2 %v5695_v6  ;;  %v5701_v15 = vld [vmem:[#allocation5 + $0x260] sm:$0xff]  ;;  %v5700_v19 = vld [vmem:[#allocation5 + $0x258] sm:$0xff]  ;;  %v5691_v22 = vld [vmem:[#allocation5 + $0x210] sm:$0xff] }
  0x22   :  { %746 = vmatpush.bf16.msra.mxu3 %v5703_v7  ;;  %v5699_v23 = vld [vmem:[#allocation5 + $0x250] sm:$0xff]  ;;  %v5674_v24 = vld [vmem:[#allocation5 + $0x188] sm:$0xff]  ;;  %v5673_v28 = vld [vmem:[#allocation5 + $0x180] sm:$0xff]  ;;  %s4579_s28 = sshll.u32 %s7648_s25, 4  ;;  %s4580_s28 = int_to_ptr.hbm [resolvable:$true] %s4579_s28 }
  0x23   :  { %690 = vmatpush.bf16.msra.mxu0 %v5678_v8  ;;  %v5682_v25 = vld [vmem:[#allocation5 + $0x1c8] sm:$0xff]  ;;  %v5681_v29 = vld [vmem:[#allocation5 + $0x1c0] sm:$0xff]  ;;  %v4595_v30 = vld [vmem:[#allocation2 + $0x18] sm:$0xf] }
  0x24   :  { %709 = vmatpush.bf16.msra.mxu1 %v5686_v9  ;;  %v5690_v26 = vld [vmem:[#allocation5 + $0x208] sm:$0xff]  ;;  %v5601_v31 = vld [vmem:[#allocation2 + $0x5c] sm:$0xf0]  ;;  %v5592_v32 = vld [vmem:[#allocation2 + $0x1c] sm:$0xf] }
  0x25   :  { %728 = vmatpush.bf16.msra.mxu2 %v5694_v10  ;;  %v5698_v27 = vld [vmem:[#allocation5 + $0x248] sm:$0xff]  ;;  %v5689_v33 = vld [vmem:[#allocation5 + $0x200] sm:$0xff]  ;;  %v5632_v40 = vld [vmem:[#allocation5 + $0x38] sm:$0xff]  ;;  %v4596_v42 = vor.u32 %v5601_v31, %v4595_v30 }
  0x26   :  { %747 = vmatpush.bf16.msra.mxu3 %v5702_v11  ;;  %v5697_v34 = vld [vmem:[#allocation5 + $0x240] sm:$0xff]  ;;  %v5602_v37 = vld [vmem:[#allocation2 + $0x64] sm:$0xf0]  ;;  %v4605_v39 = vld [vmem:[#allocation2 + $0x68] sm:$0xf0] }
  0x27   :  { %691 = vmatpush.bf16.msra.mxu0 %v5677_v12  ;;  %v4597_v35 = vld [vmem:[#allocation2 + $0x60] sm:$0xf0]  ;;  %v4603_v36 = vld [vmem:[#allocation2 + $0x20] sm:$0xf]  ;;  %v5712_v41 = vld [vmem:[#allocation5 + $0x2b8] sm:$0xff] }
  0x28   :  { %710 = vmatpush.bf16.msra.mxu1 %v5685_v13  ;;  %v5593_v38 = vld [vmem:[#allocation2 + $0x24] sm:$0xf]  ;;  %v4600_v43 = vor.u32 %v5592_v32, %v4597_v35  ;;  %v4604_v44 = vor.u32 %v5602_v37, %v4603_v36  ;;  %v5720_v46 = vld [vmem:[#allocation5 + $0x2f8] sm:$0xff]  ;;  %v5631_v48 = vld [vmem:[#allocation5 + $0x30] sm:$0xff] }
  0x29   :  { %729 = vmatpush.bf16.msra.mxu2 %v5693_v14  ;;  %v4608_v45 = vor.u32 %v5593_v38, %v4605_v39  ;;  %v5640_v47 = vld [vmem:[#allocation5 + $0x78] sm:$0xff]  ;;  %v5711_v49 = vld [vmem:[#allocation5 + $0x2b0] sm:$0xff]  ;;  %v5630_v52 = vld [vmem:[#allocation5 + $0x28] sm:$0xff] }
  0x2a   :  { %748 = vmatpush.bf16.msra.mxu3 %v5701_v15  ;;  %v5719_v50 = vld [vmem:[#allocation5 + $0x2f0] sm:$0xff]  ;;  %v5710_v53 = vld [vmem:[#allocation5 + $0x2a8] sm:$0xff]  ;;  %v5629_v56 = vld [vmem:[#allocation5 + $0x20] sm:$0xff] }
  0x2b   :  { %692 = vmatpush.bf16.msra.mxu0 %v5676_v16  ;;  %v5639_v51 = vld [vmem:[#allocation5 + $0x70] sm:$0xff]  ;;  %v5718_v54 = vld [vmem:[#allocation5 + $0x2e8] sm:$0xff]  ;;  %v5709_v57 = vld [vmem:[#allocation5 + $0x2a0] sm:$0xff] }
  0x2c   :  { %711 = vmatpush.bf16.msra.mxu1 %v5684_v17  ;;  %v5638_v55 = vld [vmem:[#allocation5 + $0x68] sm:$0xff]  ;;  %v5717_v58 = vld [vmem:[#allocation5 + $0x2e0] sm:$0xff]  ;;  %v5619_v61 = vld [vmem:[#allocation2 + $0xec] sm:$0xf0] }
  0x2d   :  { %730 = vmatpush.bf16.msra.mxu2 %v5692_v18  ;;  %v5637_v59 = vld [vmem:[#allocation5 + $0x60] sm:$0xff]  ;;  %v4619_v60 = vld [vmem:[#allocation2 + $0xa8] sm:$0xf]  ;;  %v5610_v62 = vld [vmem:[#allocation2 + $0xac] sm:$0xf] }
  0x2e   :  { %749 = vmatpush.bf16.msra.mxu3 %v5700_v19  ;;  %v4621_v63 = vld [vmem:[#allocation2 + $0xf0] sm:$0xf0]  ;;  %v4627_v0 = vld [vmem:[#allocation2 + $0xb0] sm:$0xf]  ;;  %v5620_v1 = vld [vmem:[#allocation2 + $0xf4] sm:$0xf0]  ;;  %v4620_v6 = vor.u32 %v5619_v61, %v4619_v60 }
  0x2f   :  { %693 = vmatpush.bf16.msra.mxu0 %v5675_v20  ;;  %v5611_v2 = vld [vmem:[#allocation2 + $0xb4] sm:$0xf]  ;;  %v4629_v3 = vld [vmem:[#allocation2 + $0xf8] sm:$0xf0]  ;;  %v4624_v7 = vor.u32 %v5610_v62, %v4621_v63  ;;  %v4628_v8 = vor.u32 %v5620_v1, %v4627_v0  ;;  %v5626_v16 = vld [vmem:[#allocation5 + $0x8] sm:$0xff] }
  0x30   :  { %712 = vmatpush.bf16.msra.mxu1 %v5683_v21  ;;  %v5628_v4 = vld [vmem:[#allocation5 + $0x18] sm:$0xff]  ;;  %v4632_v9 = vor.u32 %v5611_v2, %v4629_v3  ;;  %v5627_v12 = vld [vmem:[#allocation5 + $0x10] sm:$0xff]  ;;  %v5706_v17 = vld [vmem:[#allocation5 + $0x288] sm:$0xff] }
  0x31   :  { %731 = vmatpush.bf16.msra.mxu2 %v5691_v22  ;;  %v5708_v5 = vld [vmem:[#allocation5 + $0x298] sm:$0xff]  ;;  %v5707_v13 = vld [vmem:[#allocation5 + $0x290] sm:$0xff]  ;;  %v5714_v18 = vld [vmem:[#allocation5 + $0x2c8] sm:$0xff] }
  0x32   :  { %750 = vmatpush.bf16.msra.mxu3 %v5699_v23  ;;  %v5716_v10 = vld [vmem:[#allocation5 + $0x2d8] sm:$0xff]  ;;  %v5715_v14 = vld [vmem:[#allocation5 + $0x2d0] sm:$0xff]  ;;  %v5634_v19 = vld [vmem:[#allocation5 + $0x48] sm:$0xff] }
  0x33   :  { %694 = vmatpush.bf16.msra.mxu0 %v5674_v24  ;;  %v5636_v11 = vld [vmem:[#allocation5 + $0x58] sm:$0xff]  ;;  %v5635_v15 = vld [vmem:[#allocation5 + $0x50] sm:$0xff]  ;;  %v5625_v20 = vld [vmem:[#allocation5] sm:$0xff] }
  0x34   :  { %713 = vmatpush.bf16.msra.mxu1 %v5682_v25  ;;  %v5705_v21 = vld [vmem:[#allocation5 + $0x280] sm:$0xff]  ;;  %v4611_v24 = vld [vmem:[#allocation2 + $0x28] sm:$0xf]  ;;  %v5664_v25 = vld [vmem:[#allocation5 + $0x138] sm:$0xff] }
  0x35   :  { %732 = vmatpush.bf16.msra.mxu2 %v5690_v26  ;;  %v5713_v22 = vld [vmem:[#allocation5 + $0x2c0] sm:$0xff]  ;;  %v5648_v26 = vld [vmem:[#allocation5 + $0xb8] sm:$0xff]  ;;  %v5598_v31 = vld [vmem:[#allocation2 + $0x44] sm:$0xf0] }
  0x36   :  { %751 = vmatpush.bf16.msra.mxu3 %v5698_v27  ;;  %v5633_v23 = vld [vmem:[#allocation5 + $0x40] sm:$0xff]  ;;  %v5603_v27 = vld [vmem:[#allocation2 + $0x6c] sm:$0xf0]  ;;  %v5672_v35 = vld [vmem:[#allocation5 + $0x178] sm:$0xff] }
  0x37   :  { %695 = vmatpush.bf16.msra.mxu0 %v5673_v28  ;;  %v5594_v28 = vld [vmem:[#allocation2 + $0x2c] sm:$0xf]  ;;  %v4835_v30 = vld [vmem:[#allocation2] sm:$0xf]  ;;  %v5589_v32 = vld [vmem:[#allocation2 + $0x4] sm:$0xf]  ;;  %v4612_v36 = vor.u32 %v5603_v27, %v4611_v24 }
  0x38   :  { %714 = vmatpush.bf16.msra.mxu1 %v5681_v29  ;;  %v4613_v29 = vld [vmem:[#allocation2 + $0x70] sm:$0xf0]  ;;  %v6284_v39 = vor.u32 %v5598_v31, %v4835_v30  ;;  %v5644_v60 = vld [vmem:[#allocation5 + $0x98] sm:$0xff]  ;;  %v4875_v30 = vld [vmem:[#allocation2 + $0xa0] sm:$0xf] }
  0x39   :  { %733 = vmatpush.bf16.msra.mxu2 %v5689_v33  ;;  %v4837_v33 = vld [vmem:[#allocation2 + $0x48] sm:$0xf0]  ;;  %v5663_v37 = vld [vmem:[#allocation5 + $0x130] sm:$0xff]  ;;  %v4616_v38 = vor.u32 %v5594_v28, %v4613_v29  ;;  %v4861_v61 = vld [vmem:[#allocation2 + $0xd8] sm:$0xf0] }
  0x3a   :  { %752 = vmatpush.bf16.msra.mxu3 %v5697_v34  ;;  %696 = vmatmul.bf16.vlgmr.msra.gmra.mxu0 %v4596_v42  ;;  %v5656_v34 = vld [vmem:[#allocation5 + $0xf8] sm:$0xff]  ;;  %v5655_v42 = vld [vmem:[#allocation5 + $0xf0] sm:$0xff]  ;;  %v5617_v29 = vld [vmem:[#allocation2 + $0xdc] sm:$0xf0] }
  0x3b   :  { %764 = vmatpush.bf16.msrb.mxu0 %v5712_v41  ;;  %715 = vmatmul.bf16.vlgmr.msra.gmra.mxu1 %v4600_v43  ;;  %v5647_v41 = vld [vmem:[#allocation5 + $0xb0] sm:$0xff]  ;;  %v5652_v62 = vld [vmem:[#allocation5 + $0xd8] sm:$0xff]  ;;  %v5618_v31 = vld [vmem:[#allocation2 + $0xe4] sm:$0xf0] }
  0x3c   :  { %734 = vmatmul.bf16.vlgmr.msra.gmra.mxu2 %v4604_v44  ;;  %783 = vmatpush.bf16.msrb.mxu1 %v5720_v46  ;;  %v5671_v43 = vld [vmem:[#allocation5 + $0x170] sm:$0xff]  ;;  %v5662_v44 = vld [vmem:[#allocation5 + $0x128] sm:$0xff]  ;;  %v5668_v63 = vld [vmem:[#allocation5 + $0x158] sm:$0xff] }
  0x3d   :  { %1150 = vmatpush.bf16.msrb.mxu2 %v5632_v40  ;;  %753 = vmatmul.bf16.vlgmr.msra.gmra.mxu3 %v4608_v45  ;;  %v6286_v40 = vor.u32 %v5589_v32, %v4837_v33  ;;  %v5646_v45 = vld [vmem:[#allocation5 + $0xa8] sm:$0xff]  ;;  %v5659_v1 = vld [vmem:[#allocation5 + $0x110] sm:$0xff]  ;;  %v4867_v28 = vld [vmem:[#allocation2 + $0x98] sm:$0xf] }
  0x3e   :  { %1169 = vmatpush.bf16.msrb.mxu3 %v5640_v47  ;;  %v5654_v46 = vld [vmem:[#allocation5 + $0xe8] sm:$0xff]  ;;  %v5608_v32 = vld [vmem:[#allocation2 + $0x9c] sm:$0xf]  ;;  %v4869_v33 = vld [vmem:[#allocation2 + $0xe0] sm:$0xf0] }
  0x3f   :  { %765 = vmatpush.bf16.msrb.mxu0 %v5711_v49  ;;  %v5670_v47 = vld [vmem:[#allocation5 + $0x168] sm:$0xff]  ;;  %v5645_v49 = vld [vmem:[#allocation5 + $0xa0] sm:$0xff] }
  0x40   :  { %784 = vmatpush.bf16.msrb.mxu1 %v5719_v50  ;;  %v5653_v50 = vld [vmem:[#allocation5 + $0xe0] sm:$0xff] }
  0x41   :  { %1151 = vmatpush.bf16.msrb.mxu2 %v5631_v48  ;;  %v5661_v48 = vld [vmem:[#allocation5 + $0x120] sm:$0xff] }
  0x42   :  { %1170 = vmatpush.bf16.msrb.mxu3 %v5639_v51  ;;  %v5669_v51 = vld [vmem:[#allocation5 + $0x160] sm:$0xff] }
  0x43   :  { %766 = vmatpush.bf16.msrb.mxu0 %v5710_v53  ;;  %v5621_v53 = vld [vmem:[#allocation2 + $0xfc] sm:$0xf0] }
  0x44   :  { %785 = vmatpush.bf16.msrb.mxu1 %v5718_v54  ;;  %v5660_v54 = vld [vmem:[#allocation5 + $0x118] sm:$0xff] }
  0x45   :  { %1152 = vmatpush.bf16.msrb.mxu2 %v5630_v52  ;;  %v4635_v52 = vld [vmem:[#allocation2 + $0xb8] sm:$0xf] }
  0x46   :  { %1171 = vmatpush.bf16.msrb.mxu3 %v5638_v55  ;;  %v5612_v55 = vld [vmem:[#allocation2 + $0xbc] sm:$0xf]  ;;  %v4636_v0 = vor.u32 %v5621_v53, %v4635_v52  ;;  %v1294_v53 = vld [vmem:[%s7625_s4 + $0x70] sm:$0xff] }
  0x47   :  { %767 = vmatpush.bf16.msrb.mxu0 %v5709_v57  ;;  %v4859_v57 = vld [vmem:[#allocation2 + $0x90] sm:$0xf] }
  0x48   :  { %786 = vmatpush.bf16.msrb.mxu1 %v5717_v58  ;;  %v5616_v58 = vld [vmem:[#allocation2 + $0xd4] sm:$0xf0] }
  0x49   :  { %1153 = vmatpush.bf16.msrb.mxu2 %v5629_v56  ;;  %v4637_v56 = vld [vmem:[#allocation2 + $0x100] sm:$0xf0]  ;;  %v6290_v3 = vor.u32 %v5616_v58, %v4859_v57  ;;  %v1293_v57 = vld [vmem:[%s7625_s4 + $0x68] sm:$0xff] }
  0x4a   :  { %1172 = vmatpush.bf16.msrb.mxu3 %v5637_v59  ;;  %701 = vmatmul.bf16.gmra.mxu0 %v4620_v6  ;;  %v5607_v59 = vld [vmem:[#allocation2 + $0x94] sm:$0xf]  ;;  %v4640_v2 = vor.u32 %v5612_v55, %v4637_v56  ;;  %v1277_v56 = vld [vmem:[%s7624_s3 + $0x68] sm:$0xff]  ;;  %v1276_v58 = vld [vmem:[%s7624_s3 + $0x60] sm:$0xff] }
  0x4b   :  { %768 = vmatpush.bf16.msrb.mxu0 %v5708_v5  ;;  %720 = vmatmul.bf16.gmra.mxu1 %v4624_v7  ;;  %v5643_v5 = vld [vmem:[#allocation5 + $0x90] sm:$0xff] }
  0x4c   :  { %739 = vmatmul.bf16.gmra.mxu2 %v4628_v8  ;;  %787 = vmatpush.bf16.msrb.mxu1 %v5716_v10  ;;  %v5651_v6 = vld [vmem:[#allocation5 + $0xd0] sm:$0xff]  ;;  %v5658_v8 = vld [vmem:[#allocation5 + $0x108] sm:$0xff] }
  0x4d   :  { %1154 = vmatpush.bf16.msrb.mxu2 %v5628_v4  ;;  %758 = vmatmul.bf16.gmra.mxu3 %v4632_v9  ;;  %v6292_v4 = vor.u32 %v5607_v59, %v4861_v61  ;;  %v5667_v7 = vld [vmem:[#allocation5 + $0x150] sm:$0xff]  ;;  %v5642_v9 = vld [vmem:[#allocation5 + $0x88] sm:$0xff]  ;;  %v1292_v59 = vld [vmem:[%s7625_s4 + $0x60] sm:$0xff] }
  0x4e   :  { %1173 = vmatpush.bf16.msrb.mxu3 %v5636_v11  ;;  %v5650_v10 = vld [vmem:[#allocation5 + $0xc8] sm:$0xff]  ;;  %v1291_v61 = vld [vmem:[%s7625_s4 + $0x58] sm:$0xff] }
  0x4f   :  { %769 = vmatpush.bf16.msrb.mxu0 %v5707_v13  ;;  %v5666_v11 = vld [vmem:[#allocation5 + $0x148] sm:$0xff]  ;;  %v5641_v13 = vld [vmem:[#allocation5 + $0x80] sm:$0xff] }
  0x50   :  { %788 = vmatpush.bf16.msrb.mxu1 %v5715_v14  ;;  %v5649_v14 = vld [vmem:[#allocation5 + $0xc0] sm:$0xff] }
  0x51   :  { %1155 = vmatpush.bf16.msrb.mxu2 %v5627_v12  ;;  %v5657_v12 = vld [vmem:[#allocation5 + $0x100] sm:$0xff] }
  0x52   :  { %1174 = vmatpush.bf16.msrb.mxu3 %v5635_v15  ;;  %v5665_v15 = vld [vmem:[#allocation5 + $0x140] sm:$0xff] }
  0x53   :  { %770 = vmatpush.bf16.msrb.mxu0 %v5706_v17  ;;  %v5599_v17 = vld [vmem:[#allocation2 + $0x4c] sm:$0xf0] }
  0x54   :  { %789 = vmatpush.bf16.msrb.mxu1 %v5714_v18  ;;  %v5590_v18 = vld [vmem:[#allocation2 + $0xc] sm:$0xf] }
  0x55   :  { %1156 = vmatpush.bf16.msrb.mxu2 %v5626_v16  ;;  %v4843_v16 = vld [vmem:[#allocation2 + $0x8] sm:$0xf] }
  0x56   :  { %1175 = vmatpush.bf16.msrb.mxu3 %v5634_v19  ;;  %v4845_v19 = vld [vmem:[#allocation2 + $0x50] sm:$0xf0]  ;;  %v6296_v24 = vor.u32 %v5599_v17, %v4843_v16 }
  0x57   :  { %771 = vmatpush.bf16.msrb.mxu0 %v5705_v21  ;;  %v5600_v21 = vld [vmem:[#allocation2 + $0x54] sm:$0xf0] }
  0x58   :  { %790 = vmatpush.bf16.msrb.mxu1 %v5713_v22  ;;  %v5591_v22 = vld [vmem:[#allocation2 + $0x14] sm:$0xf] }
  0x59   :  { %1157 = vmatpush.bf16.msrb.mxu2 %v5625_v20  ;;  %v4851_v20 = vld [vmem:[#allocation2 + $0x10] sm:$0xf] }
  0x5a   :  { %1176 = vmatpush.bf16.msrb.mxu3 %v5633_v23  ;;  %772 = vmatmul.bf16.vlgmr.msrb.gmra.mxu0 %v4612_v36  ;;  %v4853_v23 = vld [vmem:[#allocation2 + $0x58] sm:$0xf0]  ;;  %v6308_v36 = vor.u32 %v5617_v29, %v4867_v28  ;;  %v1266_v28 = vld [vmem:[%s7624_s3 + $0x10] sm:$0xff] }
  0x5b   :  { %1188 = vmatpush.bf16.msra.mxu0 %v5648_v26  ;;  %791 = vmatmul.bf16.vlgmr.msrb.gmra.mxu1 %v4616_v38  ;;  %v6300_v26 = vor.u32 %v5600_v21, %v4851_v20  ;;  %v6302_v27 = vor.u32 %v5591_v22, %v4853_v23  ;;  %v6312_v38 = vor.u32 %v5608_v32, %v4869_v33  ;;  %v1268_v20 = vld [vmem:[%s7624_s3 + $0x20] sm:$0xff]  ;;  %v1267_v22 = vld [vmem:[%s7624_s3 + $0x18] sm:$0xff] }
  0x5c   :  { %1207 = vmatpush.bf16.msra.mxu1 %v5656_v34  ;;  %1158 = vmatmul.bf16.vlgmr.msrb.gmra.mxu2 %v6284_v39  ;;  %v5609_v34 = vld [vmem:[#allocation2 + $0xa4] sm:$0xf]  ;;  %v1283_v23 = vld [vmem:[%s7625_s4 + $0x18] sm:$0xff] }
  0x5d   :  { %1226 = vmatpush.bf16.msra.mxu2 %v5664_v25  ;;  %1177 = vmatmul.bf16.vlgmr.msrb.gmra.mxu3 %v6286_v40  ;;  %v6298_v25 = vor.u32 %v5590_v18, %v4845_v19  ;;  %v1269_v18 = vld [vmem:[%s7624_s3 + $0x28] sm:$0xff]  ;;  %v1284_v21 = vld [vmem:[%s7625_s4 + $0x20] sm:$0xff] }
  0x5e   :  { %1245 = vmatpush.bf16.msra.mxu3 %v5672_v35  ;;  %v4877_v35 = vld [vmem:[#allocation2 + $0xe8] sm:$0xf0] }
  0x5f   :  { %1189 = vmatpush.bf16.msra.mxu0 %v5647_v41  ;;  %v6314_v41 = vor.u32 %v5609_v34, %v4877_v35  ;;  %v1285_v19 = vld [vmem:[%s7625_s4 + $0x28] sm:$0xff] }
  0x60   :  { %1208 = vmatpush.bf16.msra.mxu1 %v5655_v42  ;;  %v1265_v34 = vld [vmem:[%s7624_s3 + $0x8] sm:$0xff] }
  0x61   :  { %1227 = vmatpush.bf16.msra.mxu2 %v5663_v37  ;;  %v6310_v37 = vor.u32 %v5618_v31, %v4875_v30  ;;  %v1282_v30 = vld [vmem:[%s7625_s4 + $0x10] sm:$0xff]  ;;  %v1281_v35 = vld [vmem:[%s7625_s4 + $0x8] sm:$0xff] }
  0x62   :  { %1246 = vmatpush.bf16.msra.mxu3 %v5671_v43 }
  0x63   :  { %1190 = vmatpush.bf16.msra.mxu0 %v5646_v45 }
  0x64   :  { %1209 = vmatpush.bf16.msra.mxu1 %v5654_v46 }
  0x65   :  { %1228 = vmatpush.bf16.msra.mxu2 %v5662_v44 }
  0x66   :  { %1247 = vmatpush.bf16.msra.mxu3 %v5670_v47 }
  0x67   :  { %1191 = vmatpush.bf16.msra.mxu0 %v5645_v49  ;;  %v1295_v49 = vld [vmem:[%s7625_s4 + $0x78] sm:$0xff] }
  0x68   :  { %1210 = vmatpush.bf16.msra.mxu1 %v5653_v50  ;;  %v1278_v50 = vld [vmem:[%s7624_s3 + $0x70] sm:$0xff] }
  0x69   :  { %1229 = vmatpush.bf16.msra.mxu2 %v5661_v48  ;;  %v1279_v48 = vld [vmem:[%s7624_s3 + $0x78] sm:$0xff] }
  0x6a   :  { %1248 = vmatpush.bf16.msra.mxu3 %v5669_v51  ;;  %777 = vmatmul.bf16.gmra.mxu0 %v4636_v0 }
  0x6b   :  { %1192 = vmatpush.bf16.msra.mxu0 %v5644_v60  ;;  %796 = vmatmul.bf16.gmra.mxu1 %v4640_v2  ;;  %v1275_v60 = vld [vmem:[%s7624_s3 + $0x58] sm:$0xff] }
  0x6c   :  { %1211 = vmatpush.bf16.msra.mxu1 %v5652_v62  ;;  %1163 = vmatmul.bf16.gmra.mxu2 %v6290_v3  ;;  %v1274_v62 = vld [vmem:[%s7624_s3 + $0x50] sm:$0xff] }
  0x6d   :  { %1230 = vmatpush.bf16.msra.mxu2 %v5660_v54  ;;  %1182 = vmatmul.bf16.gmra.mxu3 %v6292_v4 }
  0x6e   :  { %1249 = vmatpush.bf16.msra.mxu3 %v5668_v63 }
  0x6f   :  { %1193 = vmatpush.bf16.msra.mxu0 %v5643_v5 }
  0x70   :  { %1212 = vmatpush.bf16.msra.mxu1 %v5651_v6  ;;  %v1273_v6 = vld [vmem:[%s7624_s3 + $0x48] sm:$0xff] }
  0x71   :  { %1231 = vmatpush.bf16.msra.mxu2 %v5659_v1  ;;  %v1290_v1 = vld [vmem:[%s7625_s4 + $0x50] sm:$0xff] }
  0x72   :  { %1250 = vmatpush.bf16.msra.mxu3 %v5667_v7  ;;  %v1289_v7 = vld [vmem:[%s7625_s4 + $0x48] sm:$0xff] }
  0x73   :  { %1194 = vmatpush.bf16.msra.mxu0 %v5642_v9  ;;  %v1288_v9 = vld [vmem:[%s7625_s4 + $0x40] sm:$0xff] }
  0x74   :  { %1213 = vmatpush.bf16.msra.mxu1 %v5650_v10  ;;  %v1271_v10 = vld [vmem:[%s7624_s3 + $0x38] sm:$0xff] }
  0x75   :  { %1232 = vmatpush.bf16.msra.mxu2 %v5658_v8  ;;  %v1272_v8 = vld [vmem:[%s7624_s3 + $0x40] sm:$0xff] }
  0x76   :  { %1251 = vmatpush.bf16.msra.mxu3 %v5666_v11  ;;  %v1287_v11 = vld [vmem:[%s7625_s4 + $0x38] sm:$0xff] }
  0x77   :  { %1195 = vmatpush.bf16.msra.mxu0 %v5641_v13 }
  0x78   :  { %1214 = vmatpush.bf16.msra.mxu1 %v5649_v14 }
  0x79   :  { %1233 = vmatpush.bf16.msra.mxu2 %v5657_v12  ;;  %v1270_v12 = vld [vmem:[%s7624_s3 + $0x30] sm:$0xff] }
  0x7a   :  { %1252 = vmatpush.bf16.msra.mxu3 %v5665_v15  ;;  %1196 = vmatmul.bf16.vlgmr.msra.gmra.mxu0 %v6296_v24  ;;  %v1286_v15 = vld [vmem:[%s7625_s4 + $0x30] sm:$0xff] }
  0x7b   :  { %1215 = vmatmul.bf16.vlgmr.msra.gmra.mxu1 %v6298_v25  ;;  %1297 = vmatpush.msrb.mxu0 %v1279_v48  ;;  %v1264_v48 = vld [vmem:[%s7624_s3] sm:$0xff]  ;;  %s6167_s3 = smov 125  }
  0x7c   :  { %1234 = vmatmul.bf16.vlgmr.msra.gmra.mxu2 %v6300_v26  ;;  %1326 = vmatpush.msrb.mxu1 %v1295_v49  ;;  %v1280_v49 = vld [vmem:[%s7625_s4] sm:$0xff]  ;;  %s6168_s4 = smov 126  }
  0x7d   :  { %1253 = vmatmul.bf16.vlgmr.msra.gmra.mxu3 %v6302_v27  ;;  %1298 = vmatpush.msrb.mxu0 %v1278_v50 }
  0x7e   :  { %1327 = vmatpush.msrb.mxu1 %v1294_v53 }
  0x7f   :  { %1299 = vmatpush.msrb.mxu0 %v1277_v56 }
  0x80   :  { %1328 = vmatpush.msrb.mxu1 %v1293_v57 }
  0x81   :  { %1300 = vmatpush.msrb.mxu0 %v1276_v58 }
  0x82   :  { %1329 = vmatpush.msrb.mxu1 %v1292_v59 }
  0x83   :  { %1301 = vmatpush.msrb.mxu0 %v1275_v60 }
  0x84   :  { %1330 = vmatpush.msrb.mxu1 %v1291_v61 }
  0x85   :  { %1302 = vmatpush.msrb.mxu0 %v1274_v62 }
  0x86   :  { %1331 = vmatpush.msrb.mxu1 %v1290_v1 }
  0x87   :  { %1303 = vmatpush.msrb.mxu0 %v1273_v6 }
  0x88   :  { %1332 = vmatpush.msrb.mxu1 %v1289_v7 }
  0x89   :  { %1304 = vmatpush.msrb.mxu0 %v1272_v8 }
  0x8a   :  { %1201 = vmatmul.bf16.gmra.mxu0 %v6308_v36  ;;  %1333 = vmatpush.msrb.mxu1 %v1288_v9 }
  0x8b   :  { %1220 = vmatmul.bf16.gmra.mxu1 %v6312_v38  ;;  %1305 = vmatpush.msrb.mxu0 %v1271_v10 }
  0x8c   :  { %1239 = vmatmul.bf16.gmra.mxu2 %v6310_v37  ;;  %1334 = vmatpush.msrb.mxu1 %v1287_v11 }
  0x8d   :  { %1258 = vmatmul.bf16.gmra.mxu3 %v6314_v41  ;;  %1306 = vmatpush.msrb.mxu0 %v1270_v12 }
  0x8e   :  { %1335 = vmatpush.msrb.mxu1 %v1286_v15 }
  0x8f   :  { %1307 = vmatpush.msrb.mxu0 %v1269_v18 }
  0x90   :  { %1336 = vmatpush.msrb.mxu1 %v1285_v19 }
  0x91   :  { %1308 = vmatpush.msrb.mxu0 %v1268_v20 }
  0x92   :  { %1337 = vmatpush.msrb.mxu1 %v1284_v21 }
  0x93   :  { %1309 = vmatpush.msrb.mxu0 %v1267_v22 }
  0x94   :  { %1338 = vmatpush.msrb.mxu1 %v1283_v23 }
  0x95   :  { %1310 = vmatpush.msrb.mxu0 %v1266_v28 }
  0x96   :  { %1339 = vmatpush.msrb.mxu1 %v1282_v30 }
  0x97   :  { %1311 = vmatpush.msrb.mxu0 %v1265_v34 }
  0x98   :  { %1340 = vmatpush.msrb.mxu1 %v1281_v35 }
  0x99   :  { %1312 = vmatpush.msrb.mxu0 %v1264_v48 }
  0x9a   :  { %1341 = vmatpush.msrb.mxu1 %v1280_v49 }
  0xb7   :  { %v6320_v42 = vpop.f32.mrf.mxu0 }
  0xb8   :  { %v6322_v43 = vpop.f32.mrf.mxu1 }
  0xb9   :  { %v717_v50 = vadd.f32 %v6322_v43, %v6320_v42 }
  0xbf   :  { %v6324_v44 = vpop.f32.mrf.mxu2  ;;  %v6328_v46 = vpop.f32.mrf.mxu0 }
  0xc0   :  { %v6326_v45 = vpop.f32.mrf.mxu3  ;;  %v6330_v47 = vpop.f32.mrf.mxu1  ;;  %v736_v56 = vadd.f32 %v6324_v44, %v717_v50 }
  0xc1   :  { %v719_v61 = vadd.f32 %v6330_v47, %v6328_v46 }
  0xc2   :  { %v755_v60 = vadd.f32 %v6326_v45, %v736_v56 }
  0xc7   :  { %v6341_v51 = vpop.f32.mrf.mxu2  ;;  %v6348_v54 = vpop.f32.mrf.mxu0 }
  0xc8   :  { %v6343_v52 = vpop.f32.mrf.mxu3  ;;  %v6350_v55 = vpop.f32.mrf.mxu1  ;;  %v738_v6 = vadd.f32 %v6341_v51, %v719_v61 }
  0xc9   :  { %v722_v44 = vadd.f32 %v6350_v55, %v6348_v54 }
  0xca   :  { %v757_v42 = vadd.f32 %v6343_v52, %v738_v6 }
  0xcf   :  { %v6373_v63 = vpop.f32.mrf.mxu2  ;;  %v6380_v2 = vpop.f32.mrf.mxu0 }
  0xd0   :  { %v6375_v0 = vpop.f32.mrf.mxu3  ;;  %v6382_v5 = vpop.f32.mrf.mxu1  ;;  %v741_v45 = vadd.f32 %v6373_v63, %v722_v44 }
  0xd1   :  { %v724_v52 = vadd.f32 %v6382_v5, %v6380_v2 }
  0xd2   :  { %v760_v19 = vadd.f32 %v6375_v0, %v741_v45 }
  0xd7   :  { %v6405_v13 = vpop.f32.mrf.mxu2  ;;  %v773_v16 = vpop.f32.mrf.mxu0 }
  0xd8   :  { %v6407_v14 = vpop.f32.mrf.mxu3  ;;  %v792_v17 = vpop.f32.mrf.mxu1  ;;  %v774_v62 = vadd.f32 %v773_v16, %v755_v60  ;;  %v743_v54 = vadd.f32 %v6405_v13, %v724_v52  ;;  %v6165_v52 = vmov 1  }
  0xd9   :  { %5853 = vset.pattern.permute.xlu0 %v6165_v52 }
  0xda   :  { %v793_v10 = vadd.f32 %v792_v17, %v774_v62 }
  0xdf   :  { %v1159_v29 = vpop.f32.mrf.mxu2  ;;  %v775_v32 = vpop.f32.mrf.mxu0 }
  0xe0   :  { %v1178_v31 = vpop.f32.mrf.mxu3  ;;  %v794_v33 = vpop.f32.mrf.mxu1  ;;  %v1160_v43 = vadd.f32 %v1159_v29, %v793_v10  ;;  %v776_v11 = vadd.f32 %v775_v32, %v757_v42 }
  0xe2   :  { %v1179_v15 = vadd.f32 %v1178_v31, %v1160_v43  ;;  %v795_v18 = vadd.f32 %v794_v33, %v776_v11  ;;  %v762_v33 = vadd.f32 %v6407_v14, %v743_v54 }
  0xe7   :  { %v1161_v53 = vpop.f32.mrf.mxu2  ;;  %v778_v58 = vpop.f32.mrf.mxu0 }
  0xe8   :  { %v1180_v57 = vpop.f32.mrf.mxu3  ;;  %v797_v59 = vpop.f32.mrf.mxu1  ;;  %v1162_v20 = vadd.f32 %v1161_v53, %v795_v18  ;;  %v779_v17 = vadd.f32 %v778_v58, %v760_v19 }
  0xea   :  { %v1181_v55 = vadd.f32 %v1180_v57, %v1162_v20  ;;  %v798_v30 = vadd.f32 %v797_v59, %v779_v17  ;;  %v6164_v20 = vmov 2   ;;  %v6166_v17 = vmov 0  }
  0xeb   :  { %5854 = vset.pattern.permute.xlu2 %v6164_v20  ;;  %5856 = vset.pattern.permute.xlu1 %v6166_v17 }
  0xef   :  { %v1164_v1 = vpop.f32.mrf.mxu2  ;;  %v780_v8 = vpop.f32.mrf.mxu0 }
  0xf0   :  { %v1183_v7 = vpop.f32.mrf.mxu3  ;;  %v799_v9 = vpop.f32.mrf.mxu1  ;;  %v1165_v0 = vadd.f32 %v1164_v1, %v798_v30  ;;  %v781_v34 = vadd.f32 %v780_v8, %v762_v33 }
  0xf2   :  { %v1184_v35 = vadd.f32 %v1183_v7, %v1165_v0  ;;  %v800_v53 = vadd.f32 %v799_v9, %v781_v34 }
  0xf7   :  { %v1166_v12 = vpop.f32.mrf.mxu2  ;;  %v1197_v47 = vpop.f32.mrf.mxu0 }
  0xf8   :  { %v1185_v46 = vpop.f32.mrf.mxu3  ;;  %v1216_v16 = vpop.f32.mrf.mxu1  ;;  %v1198_v51 = vadd.f32 %v1197_v47, %v1179_v15  ;;  %v1167_v58 = vadd.f32 %v1166_v12, %v800_v53 }
  0xfa   :  { %v1217_v21 = vadd.f32 %v1216_v16, %v1198_v51  ;;  %v1186_v14 = vadd.f32 %v1185_v46, %v1167_v58 }
  0xff   :  { %v1235_v22 = vpop.f32.mrf.mxu2  ;;  %v1199_v28 = vpop.f32.mrf.mxu0 }
 0x100   :  { %v1236_v23 = vadd.f32 %v1235_v22, %v1217_v21  ;;  %v1254_v63 = vpop.f32.mrf.mxu3  ;;  %v1218_v29 = vpop.f32.mrf.mxu1  ;;  %v1200_v32 = vadd.f32 %v1199_v28, %v1181_v55  ;;  %v6170_v55 = vmov 3  }
 0x102   :  { %v1255_v31 = vadd.f32 %v1254_v63, %v1236_v23  ;;  %v1219_v2 = vadd.f32 %v1218_v29, %v1200_v32 }
 0x104   :  { %1313 = vmatmul.f32.vlgmr.msrb.gmra.mxu0 %v1255_v31  ;;  %1342 = vmatmul.f32.vlgmr.msrb.gmra.mxu1 %v1255_v31  ;;  %v1355_v15 = vpack.c.bf16 %v1255_v31, %v1255_v31 }
 0x106   :  { %v1483_v51 = vunpack.c.l.b16 %v1355_v15  ;;  %v6546_v15 = vld [vmem:[%s7647_s19] sm:$0xff] }
 0x107   :  { %v1237_v5 = vpop.f32.mrf.mxu2  ;;  %v1202_v13 = vpop.f32.mrf.mxu0 }
 0x108   :  { %v1238_v48 = vadd.f32 %v1237_v5, %v1219_v2  ;;  %v1256_v49 = vpop.f32.mrf.mxu3  ;;  %v1221_v50 = vpop.f32.mrf.mxu1  ;;  %v1203_v57 = vadd.f32 %v1202_v13, %v1184_v35 }
 0x10a   :  { %v1257_v56 = vadd.f32 %v1256_v49, %v1238_v48  ;;  %v1222_v59 = vadd.f32 %v1221_v50, %v1203_v57 }
 0x10c   :  { %1316 = vmatmul.f32.gmra.mxu0 %v1257_v56  ;;  %1345 = vmatmul.f32.gmra.mxu1 %v1257_v56  ;;  %v1356_v12 = vpack.c.bf16 %v1257_v56, %v1257_v56 }
 0x10e   :  { %v1484_v16 = vunpack.c.l.b16 %v1356_v12  ;;  %v6541_v12 = vld [vmem:[%s7647_s19 + $0x8] sm:$0xff] }
 0x10f   :  { %v1240_v60 = vpop.f32.mrf.mxu2  ;;  %v1204_v62 = vpop.f32.mrf.mxu0 }
 0x110   :  { %v1241_v61 = vadd.f32 %v1240_v60, %v1222_v59  ;;  %v1259_v1 = vpop.f32.mrf.mxu3  ;;  %v1205_v6 = vadd.f32 %v1204_v62, %v1186_v14  ;;  %v1223_v10 = vpop.f32.mrf.mxu1  ;;  %v6467_v19 = vpack.c.b16 %v1484_v16, %v1483_v51 }
 0x112   :  { %v1260_v8 = vadd.f32 %v1259_v1, %v1241_v61  ;;  %v1224_v7 = vadd.f32 %v1223_v10, %v1205_v6 }
 0x114   :  { %1319 = vmatmul.f32.gmra.mxu0 %v1260_v8  ;;  %1348 = vmatmul.f32.gmra.mxu1 %v1260_v8  ;;  %v1357_v44 = vpack.c.bf16 %v1260_v8, %v1260_v8 }
 0x116   :  { %v1485_v46 = vunpack.c.l.b16 %v1357_v44 }
 0x117   :  { %v1242_v42 = vpop.f32.mrf.mxu2 }
 0x118   :  { %v1243_v43 = vadd.f32 %v1242_v42, %v1224_v7  ;;  %v1261_v9 = vpop.f32.mrf.mxu3 }
 0x11a   :  { %v1262_v11 = vadd.f32 %v1261_v9, %v1243_v43 }
 0x11c   :  { %v1358_v45 = vpack.c.bf16 %v1262_v11, %v1262_v11  ;;  %1322 = vmatmul.f32.gmra.mxu0 %v1262_v11  ;;  %1351 = vmatmul.f32.gmra.mxu1 %v1262_v11 }
 0x11e   :  { %v1486_v47 = vunpack.c.l.b16 %v1358_v45 }
 0x120   :  { %v6464_v18 = vpack.c.b16 %v1486_v47, %v1485_v46 }
 0x122   :  { %1503 = vmatpush.bf16.msrb.mxu2 %v6464_v18 }
 0x126   :  { %1504 = vmatpush.bf16.msrb.mxu2 %v6467_v19 }
 0x181   :  { %v6473_v21 = vpop.f32.mrf.mxu0  ;;  %v1343_v22 = vpop.f32.mrf.mxu1 }
 0x182   :  { %1836 = vrot.lane.b32.xlu2 %v6473_v21, %s6167_s3  ;;  %1678 = vrot.lane.b32.xlu1 %v6473_v21, %s6168_s4 }
 0x183   :  { %1520 = vrot.lane.b32.xlu0 %v6473_v21, %s6169_s6 }
 0x189   :  { %v6481_v54 = vpop.f32.mrf.mxu0  ;;  %v1346_v23 = vpop.f32.mrf.mxu1 }
 0x18a   :  { %1723 = vperm.xlu2 %5854, %v1343_v22   ;;  %1393 = vperm.xlu1 %5856, %v1343_v22  }
 0x18b   :  { %1565 = vperm.xlu0 %5853, %v1343_v22  }
 0x191   :  { %v6490_v63 = vpop.f32.mrf.mxu0  ;;  %v1349_v28 = vpop.f32.mrf.mxu1 }
 0x192   :  { %5855 = vset.pattern.permute.xlu2 %v6170_v55  ;;  %1838 = vrot.lane.b32.xlu1 %v6481_v54, %s6167_s3 }
 0x193   :  { %1522 = vrot.lane.b32.xlu0 %v6481_v54, %s6169_s6  ;;  %1881 = vperm.xlu2 %5855, %v1343_v22  }
 0x194   :  { %5857 = vset.pattern.permute.xlu1 %v6165_v52  ;;  %5859 = vset.pattern.permute.xlu0 %v6170_v55 }
 0x199   :  { %v6507_v29 = vpop.f32.mrf.mxu0  ;;  %v1352_v30 = vpop.f32.mrf.mxu1 }
 0x19a   :  { %1569 = vperm.xlu1 %5857, %v1346_v23  }
 0x19b   :  { %1680 = vrot.lane.b32.xlu0 %v6481_v54, %s6168_s4  ;;  %1682 = vrot.lane.b32.xlu2 %v6490_v63, %s6168_s4 }
 0x19c   :  { %5862 = vset.pattern.permute.xlu2 %v6164_v20 }
 0x1a2   :  { %5858 = vset.pattern.permute.xlu1 %v6164_v20 }
 0x1a3   :  { %1885 = vperm.xlu0 %5859, %v1346_v23   ;;  %1727 = vperm.xlu1 %5858, %v1346_v23  }
 0x1a4   :  { %1731 = vperm.xlu2 %5862, %v1349_v28  }
 0x1ab   :  { %5860 = vset.pattern.permute.xlu0 %v6166_v17  ;;  %1524 = vrot.lane.b32.xlu1 %v6490_v63, %s6169_s6 }
 0x1ac   :  { %1398 = vperm.xlu0 %5860, %v1346_v23   ;;  %5863 = vset.pattern.permute.xlu2 %v6170_v55 }
 0x1ad   :  { %1889 = vperm.xlu2 %5863, %v1349_v28   ;;  %5861 = vset.pattern.permute.xlu1 %v6165_v52 }
 0x1b3   :  { %1573 = vperm.xlu1 %5861, %v1349_v28  }
 0x1b4   :  { %1840 = vrot.lane.b32.xlu0 %v6490_v63, %s6167_s3 }
 0x1b5   :  { %5864 = vset.pattern.permute.xlu2 %v6166_v17  ;;  %5866 = vset.pattern.permute.xlu0 %v6164_v20 }
 0x1b6   :  { %1403 = vperm.xlu2 %5864, %v1349_v28  }
 0x1bb   :  { %1684 = vrot.lane.b32.xlu1 %v6507_v29, %s6168_s4 }
 0x1bc   :  { %1735 = vperm.xlu0 %5866, %v1352_v30   ;;  %5868 = vset.pattern.permute.xlu1 %v6166_v17 }
 0x1be   :  { %1526 = vrot.lane.b32.xlu2 %v6507_v29, %s6169_s6 }
 0x1bf   :  { %5865 = vset.pattern.permute.xlu2 %v6165_v52 }
 0x1c3   :  { %1408 = vperm.xlu1 %5868, %v1352_v30  }
 0x1c6   :  { %1842 = vrot.lane.b32.xlu2 %v6507_v29, %s6167_s3 }
 0x1ce   :  { %1577 = vperm.xlu2 %5865, %v1352_v30  }
 0x1d6   :  { %5867 = vset.pattern.permute.xlu2 %v6170_v55 }
 0x1d7   :  { %1893 = vperm.xlu2 %5867, %v1352_v30  }
 0x1dc   :  { %v1837_v31 = vpop.permute.xlu2 %1836 }
 0x1e4   :  { %v6518_v32 = vpop.permute.xlu2 %1723 }
 0x1ed   :  { %v6520_v33 = vpop.permute.xlu2 %1881 }
 0x1f4   :  { %v1679_v0 = vpop.permute.xlu1 %1678 }
 0x1f5   :  { %v1521_v34 = vpop.permute.xlu0 %1520  ;;  %1690 = vxpose.xlu0.b32.start [1/4] (short) (narrow) %v1679_v0, 8  ;;  %v1683_v2 = vpop.permute.xlu2 %1682 }
 0x1f8   :  { %1532 = vxpose.xlu1.b32.start [1/4] (short) (narrow) %v1521_v34, 8 }
 0x1fc   :  { %v1394_v5 = vpop.permute.xlu1 %1393 }
 0x1fd   :  { %v1566_v35 = vpop.permute.xlu0 %1565  ;;  %1848 = vxpose.xlu2.b32.start [1/4] (short) (narrow) %v1837_v31, 8 }
 0x1fe   :  { %v6522_v13 = vpop.permute.xlu2 %1731 }
 0x204   :  { %v1839_v48 = vpop.permute.xlu1 %1838 }
 0x205   :  { %v1523_v49 = vpop.permute.xlu0 %1522  ;;  %1849 = vxpose.xlu2.b32.cont [2/4] (short) (narrow) %v1839_v48, 8 }
 0x206   :  { %1533 = vxpose.xlu1.b32.cont [2/4] (short) (narrow) %v1523_v49, 8 }
 0x207   :  { %v6524_v56 = vpop.permute.xlu2 %1889 }
 0x20c   :  { %v1570_v50 = vpop.permute.xlu1 %1569 }
 0x20d   :  { %v1681_v53 = vpop.permute.xlu0 %1680 }
 0x20e   :  { %1691 = vxpose.xlu0.b32.cont [2/4] (short) (narrow) %v1681_v53, 8 }
 0x210   :  { %v1404_v59 = vpop.permute.xlu2 %1403 }
 0x215   :  { %v6526_v57 = vpop.permute.xlu0 %1885  ;;  %v6528_v58 = vpop.permute.xlu1 %1727 }
 0x216   :  { %1692 = vxpose.xlu0.b32.cont [3/4] (short) (narrow) %v1683_v2, 8 }
 0x218   :  { %v1527_v61 = vpop.permute.xlu2 %1526 }
 0x21d   :  { %v1525_v60 = vpop.permute.xlu1 %1524 }
 0x21e   :  { %v1399_v14 = vpop.permute.xlu0 %1398  ;;  %1534 = vxpose.xlu1.b32.cont [3/4] (short) (narrow) %v1525_v60, 8 }
 0x220   :  { %v1843_v8 = vpop.permute.xlu2 %1842 }
 0x225   :  { %v6530_v62 = vpop.permute.xlu1 %1573 }
 0x226   :  { %v1841_v1 = vpop.permute.xlu0 %1840  ;;  %1535 = vxpose.xlu1.b32.end [4/4] (short) (narrow) %v1527_v61, 8  ;;  %v6582_v61 = vld [vmem:[%s7647_s19 + $0x10] sm:$0xff] }
 0x227   :  { %1850 = vxpose.xlu2.b32.cont [3/4] (short) (narrow) %v1841_v1, 8 }
 0x22d   :  { %v1685_v6 = vpop.permute.xlu1 %1684 }
 0x22e   :  { %1693 = vxpose.xlu0.b32.end [4/4] (short) (narrow) %v1685_v6, 8 }
 0x22f   :  { %1851 = vxpose.xlu2.b32.end [4/4] (short) (narrow) %v1843_v8, 8 }
 0x235   :  { %v1409_v10 = vpop.permute.xlu1 %1408 }
 0x291   :  { %5870 = vset.pattern.permute.xlu2 %v6166_v17 }
 0x295   :  { %5869 = vset.pattern.permute.xlu0 %v6166_v17 }
 0x2b2   :  { %v1548_v7 = vpop.trf.xlu1 }
 0x2b3   :  { %v6534_v42 = vperm.slane %v1548_v7, 0  ;;  %v1578_v7 = vpop.permute.xlu2 %1577 }
 0x2b5   :  { %v1582_v43 = vadd.f32 %v6534_v42, %v1570_v50  ;;  %v1581_v9 = vadd.f32 %v6534_v42, %v1566_v35 }
 0x2b7   :  { %vm1586_vm0 = vcmp.gt.f32.partialorder %v1582_v43, 0.0  ;;  %v1590_v44 = vmul.f32 0.2, %v1582_v43  ;;  %vm1585_vm1 = vcmp.gt.f32.partialorder %v1581_v9, 0.0  ;;  %v1589_v11 = vmul.f32 0.2, %v1581_v9 }
 0x2b9   :  { %v1594_v45 = vsel %vm1586_vm0, %v1582_v43, %v1590_v44  ;;  %v1593_v46 = vsel %vm1585_vm1, %v1581_v9, %v1589_v11  ;;  %v1736_v43 = vpop.permute.xlu0 %1735  ;;  %vm2046_vm1 = vcmask 523264  }
 0x2ba   :  { %v6549_v47 = vadd.f32 %v1594_v45, %v6541_v12  ;;  %v6552_v16 = vadd.f32 %v1593_v46, %v6546_v15 }
 0x2bb   :  { %v6600_v9 = vpop.permute.xlu2 %1893 }
 0x2bc   :  { %v1604_v51 = vsel %vm1432_vm2, %v6549_v47, -inf  ;;  %v1601_v22 = vsel %vm1432_vm2, %v6552_v16, -inf }
 0x2bd   :  { %1605 = vmax.xlane.f32.xlu1 %v1604_v51  ;;  %1602 = vmax.xlane.f32.xlu2 %v1601_v22 }
 0x2c1   :  { %v1706_v44 = vpop.trf.xlu0 }
 0x2c2   :  { %v1738_v11 = vperm.slane %v1706_v44, 0 }
 0x2c3   :  { %v1864_v46 = vpop.trf.xlu2 }
 0x2c4   :  { %v1739_v45 = vadd.f32 %v1738_v11, %v6518_v32  ;;  %v1896_v51 = vperm.slane %v1864_v46, 0  ;;  %v1583_v32 = vadd.f32 %v6534_v42, %v6530_v62 }
 0x2c6   :  { %v1747_v22 = vmul.f32 0.2, %v1739_v45  ;;  %vm1743_vm7 = vcmp.gt.f32.partialorder %v1739_v45, 0.0  ;;  %vm1587_vm9 = vcmp.gt.f32.partialorder %v1583_v32, 0.0 }
 0x2f7   :  { %1359 = vxpose.xlu1.b32.start [1/4] (short) (narrow) %v6473_v21, 8 }
 0x2ff   :  { %1360 = vxpose.xlu1.b32.cont [2/4] (short) (narrow) %v6481_v54, 8 }
 0x307   :  { %1361 = vxpose.xlu1.b32.cont [3/4] (short) (narrow) %v6490_v63, 8 }
 0x30f   :  { %1362 = vxpose.xlu1.b32.end [4/4] (short) (narrow) %v6507_v29, 8 }
 0x330   :  { %v6562_v23 = vpop.xlane.xlu1 %1605 }
 0x39b   :  { %v1375_v28 = vpop.trf.xlu1 }
 0x39c   :  { %v1411_v30 = vperm.slane %v1375_v28, 0  ;;  %v1751_v28 = vsel %vm1743_vm7, %v1739_v45, %v1747_v22  ;;  %v1603_v45 = vpop.xlane.xlu2 %1602 }
 0x39e   :  { %v1413_v31 = vadd.f32 %v1411_v30, %v1399_v14  ;;  %v1412_v0 = vadd.f32 %v1411_v30, %v1394_v5  ;;  %v1415_v34 = vadd.f32 %v1411_v30, %v1409_v10  ;;  %v1414_v2 = vadd.f32 %v1411_v30, %v1404_v59  ;;  %v6577_v14 = vld [vmem:[%s7647_s19 + $0x18] sm:$0xff] }
 0x39f   :  { %v1898_v30 = vadd.f32 %v1896_v51, %v6526_v57 }
 0x3a0   :  { %vm1417_vm3 = vcmp.gt.f32.partialorder %v1413_v31, 0.0  ;;  %v1421_v35 = vmul.f32 0.2, %v1413_v31  ;;  %vm1416_vm4 = vcmp.gt.f32.partialorder %v1412_v0, 0.0  ;;  %v1420_v48 = vmul.f32 0.2, %v1412_v0 }
 0x3a1   :  { %v1423_v50 = vmul.f32 0.2, %v1415_v34  ;;  %v1422_v54 = vmul.f32 0.2, %v1414_v2  ;;  %vm1419_vm5 = vcmp.gt.f32.partialorder %v1415_v34, 0.0  ;;  %vm1418_vm6 = vcmp.gt.f32.partialorder %v1414_v2, 0.0 }
 0x3a2   :  { %v1425_v49 = vsel %vm1417_vm3, %v1413_v31, %v1421_v35  ;;  %v1424_v21 = vsel %vm1416_vm4, %v1412_v0, %v1420_v48  ;;  %v6607_v31 = vadd.f32 %v1751_v28, %v6546_v15  ;;  %v1906_v0 = vmul.f32 0.2, %v1898_v30 }
 0x3a3   :  { %v6565_v63 = vadd.f32 %v1425_v49, %v6541_v12  ;;  %v6568_v29 = vadd.f32 %v1424_v21, %v6546_v15  ;;  %v1427_v59 = vsel %vm1419_vm5, %v1415_v34, %v1423_v50  ;;  %v1426_v60 = vsel %vm1418_vm6, %v1414_v2, %v1422_v54 }
 0x3a4   :  { %v6585_v1 = vadd.f32 %v1427_v59, %v6577_v14  ;;  %v6588_v6 = vadd.f32 %v1426_v60, %v6582_v61  ;;  %vm1902_vm8 = vcmp.gt.f32.partialorder %v1898_v30, 0.0  ;;  %v1759_v34 = vsel %vm1432_vm2, %v6607_v31, -inf }
 0x3a5   :  { %v1436_v5 = vsel %vm1432_vm2, %v6565_v63, -inf  ;;  %v1433_v53 = vsel %vm1432_vm2, %v6568_v29, -inf  ;;  %v1740_v35 = vadd.f32 %v1738_v11, %v6528_v58  ;;  %v1591_v48 = vmul.f32 0.2, %v1583_v32 }
 0x3a6   :  { %1437 = vmax.xlane.f32.xlu0 %v1436_v5  ;;  %1434 = vmax.xlane.f32.xlu2 %v1433_v53  ;;  %v1442_v8 = vsel %vm1432_vm2, %v6585_v1, -inf  ;;  %v1439_v10 = vsel %vm1432_vm2, %v6588_v6, -inf  ;;  %v1584_v50 = vadd.f32 %v6534_v42, %v1578_v7  ;;  %v1897_v5 = vadd.f32 %v1896_v51, %v6520_v33 }
 0x3a7   :  { %v1748_v49 = vmul.f32 0.2, %v1740_v35  ;;  %v1595_v21 = vsel %vm1587_vm9, %v1583_v32, %v1591_v48  ;;  %vm1744_vm10 = vcmp.gt.f32.partialorder %v1740_v35, 0.0  ;;  %v1741_v42 = vadd.f32 %v1738_v11, %v6522_v13 }
 0x3a8   :  { %v6621_v54 = vadd.f32 %v1595_v21, %v6582_v61  ;;  %v1592_v53 = vmul.f32 0.2, %v1584_v50  ;;  %vm1588_vm11 = vcmp.gt.f32.partialorder %v1584_v50, 0.0  ;;  %v1905_v60 = vmul.f32 0.2, %v1897_v5 }
 0x3a9   :  { %v1752_v62 = vsel %vm1744_vm10, %v1740_v35, %v1748_v49  ;;  %vm1901_vm12 = vcmp.gt.f32.partialorder %v1897_v5, 0.0  ;;  %v1749_v44 = vmul.f32 0.2, %v1741_v42  ;;  %vm1745_vm13 = vcmp.gt.f32.partialorder %v1741_v42, 0.0 }
 0x3aa   :  { %v6625_v58 = vadd.f32 %v1752_v62, %v6541_v12  ;;  %v1607_v59 = vsel %vm1432_vm2, %v6621_v54, -inf  ;;  %v1909_v7 = vsel %vm1901_vm12, %v1897_v5, %v1905_v60  ;;  %vm2051_vm3 = vcmask 785408  }
 0x3ab   :  { %v6637_v46 = vadd.f32 %v1909_v7, %v6546_v15  ;;  %v1753_v28 = vsel %vm1745_vm13, %v1741_v42, %v1749_v44  ;;  %v1614_v44 = vsub.f32 %v6549_v47, %v6562_v23 }
 0x3ae   :  { %1443 = vmax.xlane.f32.xlu0 %v1442_v8  ;;  %1440 = vmax.xlane.f32.xlu2 %v1439_v10  ;;  %v1596_v8 = vsel %vm1588_vm11, %v1584_v50, %v1592_v53  ;;  %v1762_v10 = vsel %vm1432_vm2, %v6625_v58, -inf }
 0x3af   :  { %v6633_v33 = vadd.f32 %v1596_v8, %v6577_v14 }
 0x3b1   :  { %v1610_v22 = vsel %vm1432_vm2, %v6633_v33, -inf }
 0x3c2   :  { %1807 = vrot.lane.b32.xlu0 %v6464_v18, %s6158_s2 }
 0x3c6   :  { %1649 = vrot.lane.b32.xlu2 %v6464_v18, %s6171_s26 }
 0x3ce   :  { %1647 = vrot.lane.b32.xlu2 %v6467_v19, %s6171_s26 }
 0x3d6   :  { %1965 = vrot.lane.b32.xlu2 %v6464_v18, %s6172_s27  ;;  %v1910_v18 = vsel %vm1902_vm8, %v1898_v30, %v1906_v0  ;;  %v1742_v30 = vadd.f32 %v1738_v11, %v1736_v43  ;;  %v1613_v0 = vsub.f32 %v6552_v16, %v1603_v45  ;;  %v1900_v16 = vadd.f32 %v1896_v51, %v6600_v9 }
 0x3d7   :  { %v6614_v2 = vadd.f32 %v1910_v18, %v6541_v12  ;;  %v1899_v12 = vadd.f32 %v1896_v51, %v6524_v56  ;;  %v6645_v56 = vadd.f32 %v1753_v28, %v6582_v61  ;;  %v1619_v45 = vmul.f32 1.442695, %v1614_v44 }
 0x3d8   :  { %v1750_v15 = vmul.f32 0.2, %v1742_v30  ;;  %v1617_v32 = vmul.f32 1.442695, %v1613_v0  ;;  %vm1746_vm15 = vcmp.gt.f32.partialorder %v1742_v30, 0.0  ;;  %vm1904_vm0 = vcmp.gt.f32.partialorder %v1900_v16, 0.0 }
 0x3d9   :  { %v1920_v57 = vsel %vm1432_vm2, %v6614_v2, -inf  ;;  %v1907_v13 = vmul.f32 0.2, %v1899_v12  ;;  %vm1903_vm14 = vcmp.gt.f32.partialorder %v1899_v12, 0.0  ;;  %v1765_v48 = vsel %vm1432_vm2, %v6645_v56, -inf }
 0x3da   :  { %v1754_v43 = vsel %vm1746_vm15, %v1742_v30, %v1750_v15  ;;  %5888 = vpow2.f32 %v1617_v32  ;;  %v1908_v49 = vmul.f32 0.2, %v1900_v16 }
 0x3db   :  { %v1911_v18 = vsel %vm1903_vm14, %v1899_v12, %v1907_v13  ;;  %5890 = vpow2.f32 %v1619_v45 }
 0x3dc   :  { %v6648_v35 = vadd.f32 %v1911_v18, %v6582_v61  ;;  %v1912_v62 = vsel %vm1904_vm0, %v1900_v16, %v1908_v49 }
 0x3dd   :  { %v6665_v51 = vadd.f32 %v1912_v62, %v6577_v14 }
 0x3de   :  { %v1923_v11 = vsel %vm1432_vm2, %v6648_v35, -inf }
 0x3df   :  { %v1926_v53 = vsel %vm1432_vm2, %v6665_v51, -inf }
 0x3e0   :  { %v6658_v21 = vpop.eup %5888 }
 0x3e1   :  { %v1625_v9 = vsel %vm1432_vm2, %v6658_v21, 0.0 }
 0x3ec   :  { %1760 = vmax.xlane.f32.xlu0 %v1759_v34  ;;  %v1917_v34 = vsel %vm1432_vm2, %v6637_v46, -inf }
 0x3f4   :  { %1921 = vmax.xlane.f32.xlu0 %v1920_v57  ;;  %v6656_v57 = vadd.f32 %v1754_v43, %v6577_v14 }
 0x3f6   :  { %v1768_v50 = vsel %vm1432_vm2, %v6656_v57, -inf }
 0x3fc   :  { %1608 = vmax.xlane.f32.xlu0 %v1607_v59 }
 0x3ff   :  { %1763 = vmax.xlane.f32.xlu2 %v1762_v10 }
 0x404   :  { %1611 = vmax.xlane.f32.xlu0 %v1610_v22  ;;  %v6683_v22 = vpop.eup %5890 }
 0x405   :  { %v1628_v13 = vsel %vm1432_vm2, %v6683_v22, 0.0 }
 0x407   :  { %1918 = vmax.xlane.f32.xlu2 %v1917_v34 }
 0x40c   :  { %1766 = vmax.xlane.f32.xlu0 %v1765_v48 }
 0x40f   :  { %1924 = vmax.xlane.f32.xlu2 %v1923_v11 }
 0x414   :  { %1769 = vmax.xlane.f32.xlu0 %v1768_v50 }
 0x417   :  { %1626 = vadd.xlane.f32.xlu2 %v1625_v9 }
 0x419   :  { %v6667_v5 = vpop.xlane.xlu2 %1434  ;;  %v6673_v60 = vpop.xlane.xlu0 %1437 }
 0x41c   :  { %1927 = vmax.xlane.f32.xlu0 %v1926_v53 }
 0x421   :  { %v6671_v59 = vpop.xlane.xlu2 %1440  ;;  %v6675_v42 = vpop.xlane.xlu0 %1443 }
 0x429   :  { %v1650_v8 = vpop.permute.xlu2 %1649 }
 0x42a   :  { %1665 = vmatpush.bf16.msrb.mxu3 %v1650_v8 }
 0x42f   :  { %1805 = vrot.lane.b32.xlu2 %v6467_v19, %s6158_s2 }
 0x430   :  { %1963 = vrot.lane.b32.xlu0 %v6467_v19, %s6172_s27 }
 0x431   :  { %v1648_v10 = vpop.permute.xlu2 %1647 }
 0x432   :  { %1666 = vmatpush.bf16.msrb.mxu3 %v1648_v10 }
 0x434   :  { %v1808_v7 = vpop.permute.xlu0 %1807 }
 0x435   :  { %1823 = vmatpush.bf16.msra.mxu0 %v1808_v7 }
 0x439   :  { %v1966_v12 = vpop.permute.xlu2 %1965 }
 0x43a   :  { %1981 = vmatpush.bf16.msra.mxu1 %v1966_v12 }
 0x45a   :  { %1629 = vadd.xlane.f32.xlu0 %v1628_v13 }
 0x45f   :  { %v1761_v28 = vpop.xlane.xlu0 %1760 }
 0x460   :  { %v1771_v19 = vsub.f32 %v6607_v31, %v1761_v28 }
 0x462   :  { %v1775_v30 = vmul.f32 1.442695, %v1771_v19 }
 0x464   :  { %5892 = vpow2.f32 %v1775_v30 }
 0x467   :  { %v1922_v0 = vpop.xlane.xlu0 %1921 }
 0x46a   :  { %v6688_v34 = vpop.eup %5892 }
 0x46b   :  { %v1783_v18 = vsel %vm1432_vm2, %v6688_v34, 0.0 }
 0x46c   :  { %1784 = vadd.xlane.f32.xlu0 %v1783_v18 }
 0x46f   :  { %v1609_v47 = vpop.xlane.xlu0 %1608 }
 0x470   :  { %v1615_v23 = vsub.f32 %v6621_v54, %v1609_v47  ;;  %v1930_v54 = vsub.f32 %v6614_v2, %v1922_v0 }
 0x472   :  { %v1621_v15 = vmul.f32 1.442695, %v1615_v23  ;;  %v1764_v32 = vpop.xlane.xlu2 %1763  ;;  %v1935_v10 = vmul.f32 1.442695, %v1930_v54 }
 0x473   :  { %v1772_v48 = vsub.f32 %v6625_v58, %v1764_v32 }
 0x474   :  { %5894 = vpow2.f32 %v1621_v15 }
 0x475   :  { %v1777_v43 = vmul.f32 1.442695, %v1772_v48  ;;  %v1445_v48 = vsub.f32 %v6568_v29, %v6667_v5  ;;  %v1446_v29 = vsub.f32 %v6565_v63, %v6673_v60 }
 0x477   :  { %5896 = vpow2.f32 %v1777_v43  ;;  %v1612_v31 = vpop.xlane.xlu0 %1611 }
 0x478   :  { %v1616_v44 = vsub.f32 %v6633_v33, %v1612_v31 }
 0x47a   :  { %v6694_v16 = vpop.eup %5894  ;;  %v1919_v11 = vpop.xlane.xlu2 %1918  ;;  %v1623_v28 = vmul.f32 1.442695, %v1616_v44 }
 0x47b   :  { %v1929_v49 = vsub.f32 %v6637_v46, %v1919_v11  ;;  %v1631_v50 = vsel %vm1432_vm2, %v6694_v16, 0.0 }
 0x47c   :  { %1632 = vadd.xlane.f32.xlu2 %v1631_v50 }
 0x47d   :  { %v6699_v62 = vpop.eup %5896  ;;  %v1933_v9 = vmul.f32 1.442695, %v1929_v49  ;;  %v1449_v49 = vmul.f32 1.442695, %v1445_v48 }
 0x47e   :  { %v1786_v58 = vsel %vm1432_vm2, %v6699_v62, 0.0 }
 0x47f   :  { %5898 = vpow2.f32 %v1933_v9  ;;  %v1767_v53 = vpop.xlane.xlu0 %1766  ;;  %1787 = vadd.xlane.f32.xlu1 %v1786_v58  ;;  %v1451_v9 = vmul.f32 1.442695, %v1446_v29 }
 0x480   :  { %v1773_v8 = vsub.f32 %v6645_v56, %v1767_v53 }
 0x482   :  { %v1779_v7 = vmul.f32 1.442695, %v1773_v8  ;;  %v1925_v46 = vpop.xlane.xlu2 %1924  ;;  %v1447_v8 = vsub.f32 %v6588_v6, %v6671_v59 }
 0x483   :  { %v1931_v33 = vsub.f32 %v6648_v35, %v1925_v46  ;;  %v1448_v46 = vsub.f32 %v6585_v1, %v6675_v42 }
 0x484   :  { %5900 = vpow2.f32 %v1779_v7  ;;  %v1453_v60 = vmul.f32 1.442695, %v1447_v8 }
 0x485   :  { %v6705_v12 = vpop.eup %5898  ;;  %5902 = vpow2.f32 %v1935_v10  ;;  %v1937_v15 = vmul.f32 1.442695, %v1931_v33 }
 0x486   :  { %v1941_v2 = vsel %vm1432_vm2, %v6705_v12, 0.0 }
 0x487   :  { %v1770_v45 = vpop.xlane.xlu0 %1769  ;;  %1942 = vadd.xlane.f32.xlu0 %v1941_v2  ;;  %v1455_v2 = vmul.f32 1.442695, %v1448_v46 }
 0x488   :  { %v1774_v13 = vsub.f32 %v6656_v57, %v1770_v45 }
 0x48a   :  { %v6711_v19 = vpop.eup %5900  ;;  %v1781_v56 = vmul.f32 1.442695, %v1774_v13  ;;  %v1627_v30 = vpop.xlane.xlu2 %1626 }
 0x48b   :  { %v6713_v0 = vpop.eup %5902  ;;  %v1789_v18 = vsel %vm1432_vm2, %v6711_v19, 0.0 }
 0x48c   :  { %5904 = vpow2.f32 %v1781_v56  ;;  %1790 = vadd.xlane.f32.xlu1 %v1789_v18  ;;  %v1944_v47 = vsel %vm1432_vm2, %v6713_v0, 0.0 }
 0x48d   :  { %5906 = vpow2.f32 %v1623_v28 }
 0x48f   :  { %v1928_v23 = vpop.xlane.xlu0 %1927  ;;  %1945 = vadd.xlane.f32.xlu0 %v1944_v47 }
 0x490   :  { %v1932_v57 = vsub.f32 %v6665_v51, %v1928_v23 }
 0x492   :  { %v6721_v32 = vpop.eup %5904  ;;  %v1939_v43 = vmul.f32 1.442695, %v1932_v57  ;;  %v1806_v31 = vpop.permute.xlu2 %1805 }
 0x493   :  { %v6725_v11 = vpop.eup %5906  ;;  %1824 = vmatpush.bf16.msra.mxu0 %v1806_v31  ;;  %v1792_v35 = vsel %vm1432_vm2, %v6721_v32, 0.0 }
 0x494   :  { %5908 = vpow2.f32 %v1939_v43  ;;  %1793 = vadd.xlane.f32.xlu2 %v1792_v35  ;;  %v1634_v51 = vsel %vm1432_vm2, %v6725_v11, 0.0 }
 0x495   :  { %5910 = vpow2.f32 %v1937_v15 }
 0x496   :  { %5912 = vpow2.f32 %v1449_v49 }
 0x497   :  { %1635 = vadd.xlane.f32.xlu0 %v1634_v51  ;;  %5914 = vpow2.f32 %v1451_v9 }
 0x498   :  { %5916 = vpow2.f32 %v1453_v60 }
 0x499   :  { %5918 = vpow2.f32 %v1455_v2 }
 0x49a   :  { %v6731_v50 = vpop.eup %5908  ;;  %5920 = vrcp.f32 %v1627_v30 }
 0x49b   :  { %v6735_v5 = vpop.eup %5910  ;;  %v1950_v54 = vsel %vm1432_vm2, %v6731_v50, 0.0 }
 0x49c   :  { %1951 = vadd.xlane.f32.xlu1 %v1950_v54  ;;  %v1947_v58 = vsel %vm1432_vm2, %v6735_v5, 0.0  ;;  %v6741_v53 = vpop.eup %5912 }
 0x49d   :  { %v1457_v63 = vsel %vm1432_vm2, %v6741_v53, 0.0  ;;  %v6747_v7 = vpop.eup %5914 }
 0x49e   :  { %v1460_v44 = vsel %vm1432_vm2, %v6747_v7, 0.0  ;;  %v6753_v45 = vpop.eup %5916 }
 0x49f   :  { %1948 = vadd.xlane.f32.xlu0 %v1947_v58  ;;  %v1463_v6 = vsel %vm1432_vm2, %v6753_v45, 0.0  ;;  %v6757_v59 = vpop.eup %5918 }
 0x4a0   :  { %v1466_v13 = vsel %vm1432_vm2, %v6757_v59, 0.0  ;;  %v5921_v42 = vpop.eup %5920 }
 0x4a1   :  { %v1641_v56 = vmul.f32 %v5921_v42, %v6658_v21 }
 0x4a2   :  { %v1964_v10 = vpop.permute.xlu0 %1963 }
 0x4a3   :  { %1982 = vmatpush.bf16.msra.mxu1 %v1964_v10 }
 0x4a4   :  { %1458 = vadd.xlane.f32.xlu1 %v1457_v63 }
 0x4ac   :  { %1461 = vadd.xlane.f32.xlu1 %v1460_v44 }
 0x4b4   :  { %1464 = vadd.xlane.f32.xlu1 %v1463_v6 }
 0x4bc   :  { %1467 = vadd.xlane.f32.xlu1 %v1466_v13 }
 0x4cd   :  { %v1630_v1 = vpop.xlane.xlu0 %1629 }
 0x4ce   :  { %5922 = vrcp.f32 %v1630_v1 }
 0x4d4   :  { %v5923_v28 = vpop.eup %5922 }
 0x4d5   :  { %v1642_v18 = vmul.f32 %v5923_v28, %v6683_v22 }
 0x4d7   :  { %v1645_v33 = vpack.c.bf16 %v1642_v18, %v1641_v56 }
 0x4d9   :  { %5075 = vmatmul.msk.bf16.vlgmr.msrb.gmra.mxu3 %vm1432_vm2, %v1645_v33 }
 0x4df   :  { %v1785_v47 = vpop.xlane.xlu0 %1784 }
 0x4e0   :  { %5924 = vrcp.f32 %v1785_v47 }
 0x4e6   :  { %v5925_v57 = vpop.eup %5924 }
 0x4e7   :  { %v1799_v48 = vmul.f32 %v5925_v57, %v6688_v34 }
 0x4ef   :  { %v1633_v21 = vpop.xlane.xlu2 %1632 }
 0x4f2   :  { %v1788_v23 = vpop.xlane.xlu1 %1787 }
 0x4f3   :  { %5926 = vrcp.f32 %v1788_v23 }
 0x4f9   :  { %v5927_v15 = vpop.eup %5926 }
 0x4fa   :  { %v1800_v30 = vmul.f32 %v5927_v15, %v6699_v62  ;;  %v1943_v43 = vpop.xlane.xlu0 %1942 }
 0x4fb   :  { %5928 = vrcp.f32 %v1943_v43 }
 0x4fc   :  { %v1803_v31 = vpack.c.bf16 %v1800_v30, %v1799_v48 }
 0x4fe   :  { %5077 = vmatmul.msk.bf16.vlgmr.msra.gmra.mxu0 %vm1432_vm2, %v1803_v31 }
 0x4ff   :  { %v1791_v35 = vpop.xlane.xlu1 %1790 }
 0x501   :  { %v5929_v49 = vpop.eup %5928 }
 0x502   :  { %v1946_v22 = vpop.xlane.xlu0 %1945  ;;  %v1957_v54 = vmul.f32 %v5929_v49, %v6705_v12 }
 0x503   :  { %5930 = vrcp.f32 %v1946_v22 }
 0x504   :  { %5932 = vrcp.f32 %v1791_v35 }
 0x507   :  { %v1794_v51 = vpop.xlane.xlu2 %1793 }
 0x508   :  { %5934 = vrcp.f32 %v1794_v51 }
 0x509   :  { %v5931_v29 = vpop.eup %5930  ;;  %5936 = vrcp.f32 %v1633_v21 }
 0x50a   :  { %v1958_v34 = vmul.f32 %v5931_v29, %v6713_v0  ;;  %v1636_v62 = vpop.xlane.xlu0 %1635  ;;  %v5933_v9 = vpop.eup %5932 }
 0x50b   :  { %5938 = vrcp.f32 %v1636_v62  ;;  %v1801_v60 = vmul.f32 %v5933_v9, %v6711_v19  ;;  %v5727_v62 = vld [vmem:[%s7631_s10 + $0x30] sm:$0xff]  ;;  %v5726_v9 = vld [vmem:[%s7631_s10 + $0x28] sm:$0xff] }
 0x50c   :  { %v1961_v58 = vpack.c.bf16 %v1958_v34, %v1957_v54  ;;  %v5728_v34 = vld [vmem:[%s7631_s10 + $0x38] sm:$0xff] }
 0x50d   :  { %2129 = vmatpush.bf16.msra.mxu2 %v5728_v34 }
 0x50e   :  { %v5935_v8 = vpop.eup %5934  ;;  %5079 = vmatmul.msk.bf16.vlgmr.msra.gmra.mxu1 %vm1432_vm2, %v1961_v58  ;;  %v5725_v58 = vld [vmem:[%s7631_s10 + $0x20] sm:$0xff] }
 0x50f   :  { %v5937_v10 = vpop.eup %5936  ;;  %v1952_v63 = vpop.xlane.xlu1 %1951  ;;  %v1802_v46 = vmul.f32 %v5935_v8, %v6721_v32  ;;  %v5724_v8 = vld [vmem:[%s7631_s10 + $0x18] sm:$0xff] }
 0x510   :  { %5940 = vrcp.f32 %v1952_v63  ;;  %v1643_v12 = vmul.f32 %v5937_v10, %v6694_v16  ;;  %v5723_v10 = vld [vmem:[%s7631_s10 + $0x10] sm:$0xff]  ;;  %v5722_v63 = vld [vmem:[%s7631_s10 + $0x8] sm:$0xff] }
 0x511   :  { %v5939_v44 = vpop.eup %5938  ;;  %v1804_v2 = vpack.c.bf16 %v1802_v46, %v1801_v60  ;;  %2130 = vmatpush.bf16.msra.mxu2 %v5727_v62  ;;  %v5721_v60 = vld [vmem:[%s7631_s10] sm:$0xff]  ;;  %v2170_v62 = vld [vmem:[%s7633_s12 + $0x30] sm:$0xff] }
 0x512   :  { %v1949_v6 = vpop.xlane.xlu0 %1948  ;;  %v1644_v0 = vmul.f32 %v5939_v44, %v6725_v11 }
 0x513   :  { %5942 = vrcp.f32 %v1949_v6  ;;  %5078 = vmatmul.msk.bf16.gmra.mxu0 %vm1432_vm2, %v1804_v2  ;;  %v2179_v6 = vld [vmem:[%s7633_s12 + $0x78] sm:$0xff] }
 0x514   :  { %v1646_v13 = vpack.c.bf16 %v1644_v0, %v1643_v12  ;;  %v2163_v12 = vld [vmem:[%s7632_s11 + $0x78] sm:$0xff]  ;;  %v2178_v0 = vld [vmem:[%s7633_s12 + $0x70] sm:$0xff]  ;;  %2210 = vmatpush.msrb.mxu0 %v2179_v6 }
 0x515   :  { %2131 = vmatpush.bf16.msra.mxu2 %v5726_v9  ;;  %2181 = vmatpush.msra.mxu3 %v2163_v12  ;;  %v2154_v9 = vld [vmem:[%s7632_s11 + $0x30] sm:$0xff]  ;;  %v2151_v6 = vld [vmem:[%s7632_s11 + $0x18] sm:$0xff] }
 0x516   :  { %5076 = vmatmul.msk.bf16.gmra.mxu3 %vm1432_vm2, %v1646_v13  ;;  %v5941_v1 = vpop.eup %5940  ;;  %v2162_v13 = vld [vmem:[%s7632_s11 + $0x70] sm:$0xff]  ;;  %2211 = vmatpush.msrb.mxu0 %v2178_v0 }
 0x517   :  { %v1459_v42 = vpop.xlane.xlu1 %1458  ;;  %v1960_v32 = vmul.f32 %v5941_v1, %v6731_v50  ;;  %2182 = vmatpush.msra.mxu3 %v2162_v13 }
 0x518   :  { %5944 = vrcp.f32 %v1459_v42  ;;  %v2177_v42 = vld [vmem:[%s7633_s12 + $0x68] sm:$0xff] }
 0x519   :  { %v5943_v28 = vpop.eup %5942  ;;  %2132 = vmatpush.bf16.msra.mxu2 %v5725_v58  ;;  %2212 = vmatpush.msrb.mxu0 %v2177_v42  ;;  %v2166_v42 = vld [vmem:[%s7633_s12 + $0x10] sm:$0xff] }
 0x51a   :  { %v1959_v19 = vmul.f32 %v5943_v28, %v6735_v5  ;;  %v2161_v28 = vld [vmem:[%s7632_s11 + $0x68] sm:$0xff] }
 0x51b   :  { %2183 = vmatpush.msra.mxu3 %v2161_v28  ;;  %v2150_v28 = vld [vmem:[%s7632_s11 + $0x10] sm:$0xff] }
 0x51c   :  { %v1962_v56 = vpack.c.bf16 %v1960_v32, %v1959_v19  ;;  %v2176_v32 = vld [vmem:[%s7633_s12 + $0x60] sm:$0xff] }
 0x51d   :  { %2133 = vmatpush.bf16.msra.mxu2 %v5724_v8  ;;  %2213 = vmatpush.msrb.mxu0 %v2176_v32  ;;  %v2169_v8 = vld [vmem:[%s7633_s12 + $0x28] sm:$0xff] }
 0x51e   :  { %5080 = vmatmul.msk.bf16.gmra.mxu1 %vm1432_vm2, %v1962_v56  ;;  %v5945_v11 = vpop.eup %5944  ;;  %v2160_v56 = vld [vmem:[%s7632_s11 + $0x60] sm:$0xff] }
 0x51f   :  { %v1462_v16 = vpop.xlane.xlu1 %1461  ;;  %v1473_v33 = vmul.f32 %v5945_v11, %v6741_v53  ;;  %2184 = vmatpush.msra.mxu3 %v2160_v56 }
 0x520   :  { %5946 = vrcp.f32 %v1462_v16 }
 0x521   :  { %2134 = vmatpush.bf16.msra.mxu2 %v5723_v10  ;;  %v2153_v10 = vld [vmem:[%s7632_s11 + $0x28] sm:$0xff] }
 0x525   :  { %2135 = vmatpush.bf16.msra.mxu2 %v5722_v63 }
 0x526   :  { %v5947_v18 = vpop.eup %5946 }
 0x527   :  { %v1474_v47 = vmul.f32 %v5947_v18, %v6747_v7  ;;  %v1465_v23 = vpop.xlane.xlu1 %1464 }
 0x528   :  { %5948 = vrcp.f32 %v1465_v23 }
 0x529   :  { %v1477_v57 = vpack.c.bf16 %v1474_v47, %v1473_v33  ;;  %2136 = vmatpush.bf16.msra.mxu2 %v5721_v60  ;;  %v2175_v33 = vld [vmem:[%s7633_s12 + $0x58] sm:$0xff]  ;;  %v2168_v60 = vld [vmem:[%s7633_s12 + $0x20] sm:$0xff] }
 0x52a   :  { %v2159_v47 = vld [vmem:[%s7632_s11 + $0x58] sm:$0xff]  ;;  %2214 = vmatpush.msrb.mxu0 %v2175_v33 }
 0x52b   :  { %5073 = vmatmul.msk.bf16.vlgmr.msrb.gmra.mxu2 %vm1432_vm2, %v1477_v57  ;;  %v6856_v57 = vld [vmem:[%s7626_s5] ss:$0 sm:$0xff]  ;;  %2185 = vmatpush.msra.mxu3 %v2159_v47 }
 0x52e   :  { %v5949_v50 = vpop.eup %5948 }
 0x52f   :  { %v1468_v5 = vpop.xlane.xlu1 %1467  ;;  %v1475_v48 = vmul.f32 %v5949_v50, %v6753_v45  ;;  %v2158_v50 = vld [vmem:[%s7632_s11 + $0x50] sm:$0xff] }
 0x530   :  { %5950 = vrcp.f32 %v1468_v5  ;;  %v2174_v5 = vld [vmem:[%s7633_s12 + $0x50] sm:$0xff]  ;;  %2186 = vmatpush.msra.mxu3 %v2158_v50  ;;  %v2148_v50 = vld [vmem:[%s7632_s11] sm:$0xff] }
 0x531   :  { %2215 = vmatpush.msrb.mxu0 %v2174_v5 }
 0x536   :  { %v5951_v15 = vpop.eup %5950 }
 0x537   :  { %v1476_v30 = vmul.f32 %v5951_v15, %v6757_v59 }
 0x539   :  { %v1478_v43 = vpack.c.bf16 %v1476_v30, %v1475_v48 }
 0x53b   :  { %5074 = vmatmul.msk.bf16.gmra.mxu2 %vm1432_vm2, %v1478_v43 }
 0x55c   :  { %v1668_v31 = vpop.f32.mrf.mxu3 }
 0x55d   :  { %1998 = vrot.lane.b32.xlu2 %v1668_v31, %s6172_s27  ;;  %v2173_v31 = vld [vmem:[%s7633_s12 + $0x48] sm:$0xff] }
 0x55e   :  { %2216 = vmatpush.msrb.mxu0 %v2173_v31 }
 0x564   :  { %v1670_v53 = vpop.f32.mrf.mxu3 }
 0x565   :  { %2000 = vrot.lane.b32.xlu0 %v1670_v53, %s6172_s27  ;;  %v2157_v53 = vld [vmem:[%s7632_s11 + $0x48] sm:$0xff] }
 0x566   :  { %2187 = vmatpush.msra.mxu3 %v2157_v53 }
 0x57b   :  { %v1826_v7 = vpop.f32.mrf.mxu0 }
 0x57c   :  { %2014 = vrot.lane.b32.xlu1 %v1826_v7, %s6158_s2 }
 0x583   :  { %v1828_v21 = vpop.f32.mrf.mxu0 }
 0x584   :  { %2016 = vrot.lane.b32.xlu0 %v1828_v21, %s6158_s2 }
 0x58b   :  { %v1984_v22 = vpop.f32.mrf.mxu1 }
 0x58c   :  { %2030 = vrot.lane.b32.xlu2 %v1984_v22, %s6171_s26 }
 0x590   :  { %v1831_v59 = vpop.f32.mrf.mxu0 }
 0x593   :  { %v1986_v45 = vpop.f32.mrf.mxu1 }
 0x594   :  { %2032 = vrot.lane.b32.xlu1 %v1986_v45, %s6171_s26  ;;  %v2172_v45 = vld [vmem:[%s7633_s12 + $0x40] sm:$0xff] }
 0x595   :  { %2217 = vmatpush.msrb.mxu0 %v2172_v45 }
 0x598   :  { %v1833_v51 = vpop.f32.mrf.mxu0 }
 0x599   :  { %v1673_v35 = vpop.f32.mrf.mxu3 }
 0x59a   :  { %2002 = vrot.lane.b32.xlu0 %v1673_v35, %s6172_s27 }
 0x59b   :  { %v1989_v49 = vpop.f32.mrf.mxu1 }
 0x59c   :  { %2018 = vrot.lane.b32.xlu1 %v1831_v59, %s6158_s2  ;;  %v2156_v59 = vld [vmem:[%s7632_s11 + $0x40] sm:$0xff] }
 0x59d   :  { %2188 = vmatpush.msra.mxu3 %v2156_v59 }
 0x5a1   :  { %v1675_v29 = vpop.f32.mrf.mxu3 }
 0x5a2   :  { %2004 = vrot.lane.b32.xlu2 %v1675_v29, %s6172_s27  ;;  %2020 = vrot.lane.b32.xlu0 %v1833_v51, %s6158_s2  ;;  %v2171_v29 = vld [vmem:[%s7633_s12 + $0x38] sm:$0xff] }
 0x5a3   :  { %v1991_v54 = vpop.f32.mrf.mxu1  ;;  %2218 = vmatpush.msrb.mxu0 %v2171_v29 }
 0x5a4   :  { %2036 = vrot.lane.b32.xlu1 %v1991_v54, %s6171_s26  ;;  %v2155_v54 = vld [vmem:[%s7632_s11 + $0x38] sm:$0xff] }
 0x5a5   :  { %2189 = vmatpush.msra.mxu3 %v2155_v54  ;;  %2219 = vmatpush.msrb.mxu0 %v2170_v62 }
 0x5a7   :  { %2190 = vmatpush.msra.mxu3 %v2154_v9  ;;  %2220 = vmatpush.msrb.mxu0 %v2169_v8 }
 0x5a9   :  { %2191 = vmatpush.msra.mxu3 %v2153_v10  ;;  %2221 = vmatpush.msrb.mxu0 %v2168_v60 }
 0x5aa   :  { %2034 = vrot.lane.b32.xlu2 %v1989_v49, %s6171_s26 }
 0x5ae   :  { %v1506_v46 = vpop.f32.mrf.mxu2 }
 0x5b6   :  { %v1508_v19 = vpop.f32.mrf.mxu2 }
 0x5b7   :  { %v1999_v44 = vpop.permute.xlu2 %1998 }
 0x5b8   :  { %v2042_v16 = vsel %vm1432_vm2, %v1506_v46, %v1999_v44  ;;  %v2152_v46 = vld [vmem:[%s7632_s11 + $0x20] sm:$0xff] }
 0x5b9   :  { %2192 = vmatpush.msra.mxu3 %v2152_v46 }
 0x5bb   :  { %2193 = vmatpush.msra.mxu3 %v2151_v6 }
 0x5bd   :  { %2194 = vmatpush.msra.mxu3 %v2150_v28 }
 0x5be   :  { %v1511_v35 = vpop.f32.mrf.mxu2 }
 0x5c6   :  { %v1513_v12 = vpop.f32.mrf.mxu2 }
 0x5d7   :  { %v2001_v2 = vpop.permute.xlu0 %2000 }
 0x5d8   :  { %v2043_v15 = vsel %vm1432_vm2, %v1508_v19, %v2001_v2  ;;  %v2167_v2 = vld [vmem:[%s7633_s12 + $0x18] sm:$0xff] }
 0x5d9   :  { %2222 = vmatpush.msrb.mxu0 %v2167_v2 }
 0x5db   :  { %2223 = vmatpush.msrb.mxu0 %v2166_v42 }
 0x5e6   :  { %v2031_v11 = vpop.permute.xlu2 %2030 }
 0x5ee   :  { %v2015_v1 = vpop.permute.xlu1 %2014 }
 0x5ef   :  { %v2047_v18 = vsel %vm2046_vm1, %v2042_v16, %v2015_v1  ;;  %v2165_v16 = vld [vmem:[%s7633_s12 + $0x8] sm:$0xff] }
 0x5f0   :  { %v2052_v48 = vsel %vm2051_vm3, %v2047_v18, %v2031_v11  ;;  %v2149_v11 = vld [vmem:[%s7632_s11 + $0x8] sm:$0xff]  ;;  %2224 = vmatpush.msrb.mxu0 %v2165_v16  ;;  %s6175_s11 = smov 8  }
 0x5f1   :  { %v2059_v21 = vadd.f32 %v6856_v57, %v2052_v48  ;;  %2195 = vmatpush.msra.mxu3 %v2149_v11 }
 0x5f3   :  { %2196 = vmatpush.msra.mxu3 %v2148_v50  ;;  %v5791_v50 = vld [vmem:[#allocation7 + $0x1f0] sm:$0xff] }
 0x5f6   :  { %v2017_v23 = vpop.permute.xlu0 %2016 }
 0x5f7   :  { %v2048_v30 = vsel %vm2046_vm1, %v2043_v15, %v2017_v23  ;;  %v2164_v23 = vld [vmem:[%s7633_s12] sm:$0xff] }
 0x5f8   :  { %2225 = vmatpush.msrb.mxu0 %v2164_v23  ;;  %v5792_v23 = vld [vmem:[#allocation7 + $0x1f8] sm:$0xff] }
 0x5f9   :  { %2947 = vmatpush.bf16.msrb.mxu3 %v5792_v23 }
 0x5fc   :  { %v2005_v49 = vpop.permute.xlu2 %2004 }
 0x5fd   :  { %v2045_v0 = vsel %vm1432_vm2, %v1513_v12, %v2005_v49  ;;  %2948 = vmatpush.bf16.msrb.mxu3 %v5791_v50  ;;  %v5794_v50 = vld [vmem:[#allocation7 + $0x208] sm:$0xff] }
 0x604   :  { %v2035_v13 = vpop.permute.xlu2 %2034 }
 0x606   :  { %v2033_v43 = vpop.permute.xlu1 %2032 }
 0x607   :  { %v2053_v7 = vsel %vm2051_vm3, %v2048_v30, %v2033_v43 }
 0x608   :  { %v2060_v22 = vadd.f32 %v6856_v57, %v2053_v7 }
 0x60a   :  { %v2063_v51 = vpack.c.bf16 %v2060_v22, %v2059_v21 }
 0x60c   :  { %v2003_v34 = vpop.permute.xlu0 %2002  ;;  %2137 = vmatmul.bf16.vlgmr.msra.gmra.mxu2 %v2063_v51 }
 0x60d   :  { %v2044_v63 = vsel %vm1432_vm2, %v1511_v35, %v2003_v34 }
 0x60e   :  { %v2019_v58 = vpop.permute.xlu1 %2018 }
 0x60f   :  { %v2049_v44 = vsel %vm2046_vm1, %v2044_v63, %v2019_v58 }
 0x610   :  { %v2054_v19 = vsel %vm2051_vm3, %v2049_v44, %v2035_v13 }
 0x611   :  { %v2061_v47 = vadd.f32 %v6856_v57, %v2054_v19 }
 0x614   :  { %v2021_v1 = vpop.permute.xlu0 %2020 }
 0x615   :  { %v2050_v32 = vsel %vm2046_vm1, %v2045_v0, %v2021_v1  ;;  %v6048_v0 = vld [vmem:[%s7647_s19 + $0x8] sm:$0xff]  ;;  %v6049_v1 = vld [vmem:[%s7647_s19] sm:$0xff] }
 0x616   :  { %v2037_v56 = vpop.permute.xlu1 %2036 }
 0x617   :  { %v2055_v18 = vsel %vm2051_vm3, %v2050_v32, %v2037_v56 }
 0x618   :  { %v2062_v33 = vadd.f32 %v6856_v57, %v2055_v18 }
 0x61a   :  { %v2064_v5 = vpack.c.bf16 %v2062_v33, %v2061_v47  ;;  %v5784_v47 = vld [vmem:[#allocation7 + $0x1b8] sm:$0xff] }
 0x61b   :  { %2928 = vmatpush.bf16.msrb.mxu2 %v5784_v47  ;;  %v5808_v47 = vld [vmem:[#allocation7 + $0x278] sm:$0xff] }
 0x61c   :  { %2142 = vmatmul.bf16.gmra.mxu2 %v2064_v5  ;;  %v5783_v5 = vld [vmem:[#allocation7 + $0x1b0] sm:$0xff] }
 0x61f   :  { %2929 = vmatpush.bf16.msrb.mxu2 %v5783_v5 }
 0x68f   :  { %v2138_v15 = vpop.f32.mrf.mxu2 }
 0x690   :  { %2197 = vmatmul.f32.vlgmr.msra.gmra.mxu3 %v2138_v15  ;;  %2226 = vmatmul.f32.vlgmr.msrb.gmra.mxu0 %v2138_v15 }
 0x697   :  { %v2140_v48 = vpop.f32.mrf.mxu2 }
 0x698   :  { %2200 = vmatmul.f32.gmra.mxu3 %v2140_v48  ;;  %2229 = vmatmul.f32.gmra.mxu0 %v2140_v48  ;;  %v2239_v31 = vpack.c.bf16 %v2140_v48, %v2138_v15  ;;  %v5800_v15 = vld [vmem:[#allocation7 + $0x238] sm:$0xff]  ;;  %v5799_v48 = vld [vmem:[#allocation7 + $0x230] sm:$0xff] }
 0x699   :  { %2966 = vmatpush.bf16.msra.mxu0 %v5800_v15  ;;  %v5815_v15 = vld [vmem:[#allocation7 + $0x2b0] sm:$0xff] }
 0x69d   :  { %2967 = vmatpush.bf16.msra.mxu0 %v5799_v48  ;;  %v5823_v48 = vld [vmem:[#allocation7 + $0x2f0] sm:$0xff] }
 0x69f   :  { %v2143_v57 = vpop.f32.mrf.mxu2 }
 0x6a0   :  { %2203 = vmatmul.f32.gmra.mxu3 %v2143_v57  ;;  %2232 = vmatmul.f32.gmra.mxu0 %v2143_v57 }
 0x6a7   :  { %v2145_v30 = vpop.f32.mrf.mxu2 }
 0x6a8   :  { %v2240_v43 = vpack.c.bf16 %v2145_v30, %v2143_v57  ;;  %2206 = vmatmul.f32.gmra.mxu3 %v2145_v30  ;;  %2235 = vmatmul.f32.gmra.mxu0 %v2145_v30  ;;  %v5790_v57 = vld [vmem:[#allocation7 + $0x1e8] sm:$0xff] }
 0x6a9   :  { %2949 = vmatpush.bf16.msrb.mxu3 %v5790_v57  ;;  %v5793_v57 = vld [vmem:[#allocation7 + $0x200] sm:$0xff] }
 0x6aa   :  { %2375 = vmatpush.bf16.msrb.mxu1 %v2240_v43 }
 0x6ae   :  { %2376 = vmatpush.bf16.msrb.mxu1 %v2239_v31  ;;  %v5781_v31 = vld [vmem:[#allocation7 + $0x1a0] sm:$0xff] }
 0x6b2   :  { %2985 = vmatpush.bf16.msra.mxu1 %v5808_v47 }
 0x70d   :  { %v2227_v53 = vpop.f32.mrf.mxu0 }
 0x70e   :  { %2275 = vperm.xlu0 %5869, %v2227_v53   ;;  %v5789_v53 = vld [vmem:[#allocation7 + $0x1e0] sm:$0xff] }
 0x70f   :  { %2950 = vmatpush.bf16.msrb.mxu3 %v5789_v53  ;;  %v5736_v53 = vld [vmem:[#allocation7 + $0x38] sm:$0xff] }
 0x713   :  { %v2198_v45 = vpop.f32.mrf.mxu3 }
 0x715   :  { %v2230_v7 = vpop.f32.mrf.mxu0 }
 0x716   :  { %2280 = vperm.xlu2 %5870, %v2230_v7  }
 0x71b   :  { %v2201_v59 = vpop.f32.mrf.mxu3 }
 0x71d   :  { %v2233_v21 = vpop.f32.mrf.mxu0 }
 0x71e   :  { %2285 = vperm.xlu1 %5868, %v2233_v21  }
 0x723   :  { %v2204_v35 = vpop.f32.mrf.mxu3 }
 0x725   :  { %v2236_v22 = vpop.f32.mrf.mxu0 }
 0x726   :  { %2290 = vperm.xlu0 %5869, %v2236_v22   ;;  %5871 = vset.pattern.permute.xlu1 %v6164_v20  ;;  %v5797_v22 = vld [vmem:[#allocation7 + $0x220] sm:$0xff] }
 0x72b   :  { %v2207_v49 = vpop.f32.mrf.mxu3 }
 0x72e   :  { %5873 = vset.pattern.permute.xlu0 %v6165_v52 }
 0x73c   :  { %2241 = vxpose.xlu2.b32.start [1/4] (short) (narrow) %v2198_v45, 8 }
 0x744   :  { %2242 = vxpose.xlu2.b32.cont [2/4] (short) (narrow) %v2201_v59, 8 }
 0x74c   :  { %2243 = vxpose.xlu2.b32.cont [3/4] (short) (narrow) %v2204_v35, 8  ;;  %v5780_v35 = vld [vmem:[#allocation7 + $0x198] sm:$0xff] }
 0x754   :  { %2244 = vxpose.xlu2.b32.end [4/4] (short) (narrow) %v2207_v49, 8  ;;  %v5788_v49 = vld [vmem:[#allocation7 + $0x1d8] sm:$0xff] }
 0x755   :  { %2951 = vmatpush.bf16.msrb.mxu3 %v5788_v49  ;;  %v5805_v49 = vld [vmem:[#allocation7 + $0x260] sm:$0xff] }
 0x770   :  { %v2281_v51 = vpop.permute.xlu2 %2280 }
 0x780   :  { %v2276_v29 = vpop.permute.xlu0 %2275 }
 0x790   :  { %v2286_v62 = vpop.permute.xlu1 %2285 }
 0x798   :  { %v2291_v9 = vpop.permute.xlu0 %2290 }
 0x7d5   :  { %v2257_v54 = vpop.trf.xlu2 }
 0x7d6   :  { %v2293_v34 = vperm.slane %v2257_v54, 0  ;;  %v5779_v54 = vld [vmem:[#allocation7 + $0x190] sm:$0xff] }
 0x7d8   :  { %v2295_v58 = vadd.f32 %v2293_v34, %v2281_v51  ;;  %v2294_v8 = vadd.f32 %v2293_v34, %v2276_v29  ;;  %v2297_v10 = vadd.f32 %v2293_v34, %v2291_v9  ;;  %v2296_v63 = vadd.f32 %v2293_v34, %v2286_v62  ;;  %v5787_v34 = vld [vmem:[#allocation7 + $0x1d0] sm:$0xff] }
 0x7d9   :  { %2952 = vmatpush.bf16.msrb.mxu3 %v5787_v34  ;;  %v5812_v34 = vld [vmem:[#allocation7 + $0x298] sm:$0xff] }
 0x7da   :  { %vm2299_vm4 = vcmp.gt.f32.partialorder %v2295_v58, 0.0  ;;  %v2303_v60 = vmul.f32 0.2, %v2295_v58  ;;  %vm2298_vm5 = vcmp.gt.f32.partialorder %v2294_v8, 0.0  ;;  %v2302_v46 = vmul.f32 0.2, %v2294_v8 }
 0x7db   :  { %v2305_v6 = vmul.f32 0.2, %v2297_v10  ;;  %v2304_v12 = vmul.f32 0.2, %v2296_v63  ;;  %vm2301_vm6 = vcmp.gt.f32.partialorder %v2297_v10, 0.0  ;;  %vm2300_vm7 = vcmp.gt.f32.partialorder %v2296_v63, 0.0 }
 0x7dc   :  { %v2307_v44 = vsel %vm2299_vm4, %v2295_v58, %v2303_v60  ;;  %v2306_v2 = vsel %vm2298_vm5, %v2294_v8, %v2302_v46 }
 0x7dd   :  { %v2311_v13 = vadd.f32 %v6048_v0, %v2307_v44  ;;  %v2310_v42 = vadd.f32 %v6049_v1, %v2306_v2  ;;  %v2309_v32 = vsel %vm2301_vm6, %v2297_v10, %v2305_v6  ;;  %v2308_v56 = vsel %vm2300_vm7, %v2296_v63, %v2304_v12  ;;  %v5778_v0 = vld [vmem:[#allocation7 + $0x188] sm:$0xff]  ;;  %v5796_v1 = vld [vmem:[#allocation7 + $0x218] sm:$0xff] }
 0x7de   :  { %v2313_v16 = vadd.f32 %v2309_v32, %v6577_v14  ;;  %v2312_v11 = vadd.f32 %v2308_v56, %v6582_v61  ;;  %v5782_v14 = vld [vmem:[#allocation7 + $0x1a8] sm:$0xff]  ;;  %v5117_v32 = vld [vmem:[#allocation2 + $0x30] sm:$0xf]  ;;  %v5604_v56 = vld [vmem:[#allocation2 + $0x74] sm:$0xf0] }
 0x7df   :  { %v2317_v28 = vsel %vm1432_vm2, %v2311_v13, -inf  ;;  %v2314_v19 = vsel %vm1432_vm2, %v2310_v42, -inf  ;;  %v5798_v61 = vld [vmem:[#allocation7 + $0x228] sm:$0xff]  ;;  %2930 = vmatpush.bf16.msrb.mxu2 %v5782_v14  ;;  %v5118_v23 = vor.u32 %v5604_v56, %v5117_v32  ;;  %v5807_v14 = vld [vmem:[#allocation7 + $0x270] sm:$0xff] }
 0x7e0   :  { %2318 = vmax.xlane.f32.xlu0 %v2317_v28  ;;  %2315 = vmax.xlane.f32.xlu1 %v2314_v19  ;;  %v2323_v18 = vsel %vm1432_vm2, %v2313_v16, -inf  ;;  %v2320_v33 = vsel %vm1432_vm2, %v2312_v11, -inf  ;;  %v5785_v28 = vld [vmem:[#allocation7 + $0x1c0] sm:$0xff]  ;;  %v5795_v19 = vld [vmem:[#allocation7 + $0x210] sm:$0xff]  ;;  %v5818_v56 = vld [vmem:[#allocation7 + $0x2c8] sm:$0xff] }
 0x7e1   :  { %2968 = vmatpush.bf16.msra.mxu0 %v5798_v61  ;;  %v5814_v61 = vld [vmem:[#allocation7 + $0x2a8] sm:$0xff]  ;;  %2986 = vmatpush.bf16.msra.mxu1 %v5807_v14  ;;  %v5817_v14 = vld [vmem:[#allocation7 + $0x2c0] sm:$0xff] }
 0x7e3   :  { %2931 = vmatpush.bf16.msrb.mxu2 %v5781_v31  ;;  %v5822_v31 = vld [vmem:[#allocation7 + $0x2e8] sm:$0xff] }
 0x7e5   :  { %2969 = vmatpush.bf16.msra.mxu0 %v5797_v22  ;;  %v5813_v22 = vld [vmem:[#allocation7 + $0x2a0] sm:$0xff] }
 0x7e7   :  { %2932 = vmatpush.bf16.msrb.mxu2 %v5780_v35  ;;  %v5141_v35 = vld [vmem:[#allocation2 + $0xc0] sm:$0xf] }
 0x7e8   :  { %2324 = vmax.xlane.f32.xlu0 %v2323_v18  ;;  %2321 = vmax.xlane.f32.xlu1 %v2320_v33  ;;  %v5119_v18 = vld [vmem:[#allocation2 + $0x78] sm:$0xf0] }
 0x7e9   :  { %2970 = vmatpush.bf16.msra.mxu0 %v5796_v1  ;;  %v5824_v33 = vld [vmem:[#allocation7 + $0x2f8] sm:$0xff]  ;;  %v5803_v1 = vld [vmem:[#allocation7 + $0x250] sm:$0xff] }
 0x7eb   :  { %2933 = vmatpush.bf16.msrb.mxu2 %v5779_v54  ;;  %v5143_v54 = vld [vmem:[#allocation2 + $0x108] sm:$0xf0] }
 0x7ed   :  { %2971 = vmatpush.bf16.msra.mxu0 %v5795_v19  ;;  %v5623_v19 = vld [vmem:[#allocation2 + $0x10c] sm:$0xf0] }
 0x7ef   :  { %2934 = vmatpush.bf16.msrb.mxu2 %v5778_v0  ;;  %v5819_v0 = vld [vmem:[#allocation7 + $0x2d0] sm:$0xff] }
 0x7f1   :  { %2972 = vmatpush.bf16.msra.mxu0 %v5794_v50  ;;  %v5809_v50 = vld [vmem:[#allocation7 + $0x280] sm:$0xff] }
 0x7f5   :  { %2973 = vmatpush.bf16.msra.mxu0 %v5793_v57  ;;  %v5731_v57 = vld [vmem:[#allocation7 + $0x10] sm:$0xff] }
 0x7f9   :  { %3330 = vmatpush.bf16.msrb.mxu0 %v5736_v53  ;;  %v5801_v53 = vld [vmem:[#allocation7 + $0x240] sm:$0xff] }
 0x853   :  { %v2319_v30 = vpop.xlane.xlu0 %2318  ;;  %v2316_v43 = vpop.xlane.xlu1 %2315 }
 0x854   :  { %v2327_v7 = vsub.f32 %v2311_v13, %v2319_v30  ;;  %v2326_v21 = vsub.f32 %v2310_v42, %v2316_v43  ;;  %v5786_v13 = vld [vmem:[#allocation7 + $0x1c8] sm:$0xff]  ;;  %v5777_v42 = vld [vmem:[#allocation7 + $0x180] sm:$0xff]  ;;  %v5125_v30 = vld [vmem:[#allocation2 + $0x38] sm:$0xf] }
 0x855   :  { %2953 = vmatpush.bf16.msrb.mxu3 %v5786_v13  ;;  %2935 = vmatpush.bf16.msrb.mxu2 %v5777_v42  ;;  %v5605_v43 = vld [vmem:[#allocation2 + $0x7c] sm:$0xf0]  ;;  %v5810_v42 = vld [vmem:[#allocation7 + $0x288] sm:$0xff] }
 0x856   :  { %v2332_v45 = vmul.f32 1.442695, %v2327_v7  ;;  %v2330_v59 = vmul.f32 1.442695, %v2326_v21  ;;  %v5806_v7 = vld [vmem:[#allocation7 + $0x268] sm:$0xff]  ;;  %v5126_v21 = vor.u32 %v5605_v43, %v5125_v30  ;;  %v5733_v13 = vld [vmem:[#allocation7 + $0x20] sm:$0xff] }
 0x857   :  { %2987 = vmatpush.bf16.msra.mxu1 %v5806_v7  ;;  %v5752_v30 = vld [vmem:[#allocation7 + $0xb8] sm:$0xff]  ;;  %v5730_v7 = vld [vmem:[#allocation7 + $0x8] sm:$0xff] }
 0x858   :  { %5952 = vpow2.f32 %v2332_v45  ;;  %2936 = vmatmul.bf16.vlgmr.msrb.gmra.mxu2 %v5118_v23  ;;  %v5821_v45 = vld [vmem:[#allocation7 + $0x2e0] sm:$0xff]  ;;  %2974 = vmatmul.bf16.vlgmr.msra.gmra.mxu0 %v5126_v21  ;;  %v5760_v43 = vld [vmem:[#allocation7 + $0xf8] sm:$0xff] }
 0x859   :  { %5954 = vpow2.f32 %v2330_v59  ;;  %2954 = vmatpush.bf16.msrb.mxu3 %v5785_v28  ;;  %v5735_v59 = vld [vmem:[#allocation7 + $0x30] sm:$0xff]  ;;  %v5149_v28 = vld [vmem:[#allocation2 + $0xc8] sm:$0xf]  ;;  %v5744_v21 = vld [vmem:[#allocation7 + $0x78] sm:$0xff] }
 0x85a   :  { %3331 = vmatpush.bf16.msrb.mxu0 %v5735_v59  ;;  %v5150_v47 = vor.u32 %v5623_v19, %v5149_v28  ;;  %v5751_v59 = vld [vmem:[#allocation7 + $0xb0] sm:$0xff]  ;;  %v5159_v28 = vld [vmem:[#allocation2 + $0x118] sm:$0xf0] }
 0x85b   :  { %v2325_v51 = vpop.xlane.xlu0 %2324  ;;  %v2322_v29 = vpop.xlane.xlu1 %2321  ;;  %2988 = vmatpush.bf16.msra.mxu1 %v5805_v49  ;;  %v5748_v19 = vld [vmem:[#allocation7 + $0x98] sm:$0xff] }
 0x85c   :  { %v2329_v62 = vsub.f32 %v2313_v16, %v2325_v51  ;;  %v2328_v9 = vsub.f32 %v2312_v11, %v2322_v29  ;;  %v5816_v16 = vld [vmem:[#allocation7 + $0x2b8] sm:$0xff]  ;;  %v5595_v11 = vld [vmem:[#allocation2 + $0x34] sm:$0xf]  ;;  %v5622_v51 = vld [vmem:[#allocation2 + $0x104] sm:$0xf0] }
 0x85d   :  { %v5122_v5 = vor.u32 %v5595_v11, %v5119_v18  ;;  %3004 = vmatpush.bf16.msra.mxu2 %v5816_v16  ;;  %3023 = vmatpush.bf16.msra.mxu3 %v5824_v33  ;;  %v5613_v29 = vld [vmem:[#allocation2 + $0xc4] sm:$0xf]  ;;  %v5732_v16 = vld [vmem:[#allocation7 + $0x18] sm:$0xff] }
 0x85e   :  { %v6952_v58 = vpop.eup %5952  ;;  %v2336_v8 = vmul.f32 1.442695, %v2329_v62  ;;  %v2334_v10 = vmul.f32 1.442695, %v2328_v9  ;;  %v5820_v62 = vld [vmem:[#allocation7 + $0x2d8] sm:$0xff]  ;;  %v5734_v9 = vld [vmem:[#allocation7 + $0x28] sm:$0xff] }
 0x85f   :  { %v6954_v63 = vpop.eup %5954  ;;  %v2341_v60 = vsel %vm1432_vm2, %v6952_v58, 0.0  ;;  %2955 = vmatmul.bf16.vlgmr.msrb.gmra.mxu3 %v5122_v5  ;;  %3332 = vmatpush.bf16.msrb.mxu0 %v5734_v9  ;;  %v5802_v5 = vld [vmem:[#allocation7 + $0x248] sm:$0xff] }
 0x860   :  { %5956 = vpow2.f32 %v2336_v8  ;;  %2342 = vadd.xlane.f32.xlu0 %v2341_v60  ;;  %v2338_v46 = vsel %vm1432_vm2, %v6954_v63, 0.0  ;;  %v5146_v60 = vor.u32 %v5613_v29, %v5143_v54  ;;  %v5743_v29 = vld [vmem:[#allocation7 + $0x70] sm:$0xff]  ;;  %v5758_v9 = vld [vmem:[#allocation7 + $0xe8] sm:$0xff] }
 0x861   :  { %5958 = vpow2.f32 %v2334_v10  ;;  %2339 = vadd.xlane.f32.xlu1 %v2338_v46  ;;  %3005 = vmatpush.bf16.msra.mxu2 %v5815_v15  ;;  %v5142_v10 = vor.u32 %v5622_v51, %v5141_v35  ;;  %v5759_v35 = vld [vmem:[#allocation7 + $0xf0] sm:$0xff]  ;;  %v5729_v51 = vld [vmem:[#allocation7] sm:$0xff] }
 0x862   :  { %3024 = vmatpush.bf16.msra.mxu3 %v5823_v48 }
 0x863   :  { %3333 = vmatpush.bf16.msrb.mxu0 %v5733_v13  ;;  %v5741_v13 = vld [vmem:[#allocation7 + $0x60] sm:$0xff] }
 0x865   :  { %3006 = vmatpush.bf16.msra.mxu2 %v5814_v61  ;;  %v5133_v61 = vld [vmem:[#allocation2 + $0x40] sm:$0xf] }
 0x866   :  { %v6960_v44 = vpop.eup %5956  ;;  %3025 = vmatpush.bf16.msra.mxu3 %v5822_v31  ;;  %v5135_v31 = vld [vmem:[#allocation2 + $0x88] sm:$0xf0] }
 0x867   :  { %v6962_v2 = vpop.eup %5958  ;;  %v2347_v6 = vsel %vm1432_vm2, %v6960_v44, 0.0  ;;  %3334 = vmatpush.bf16.msrb.mxu0 %v5732_v16 }
 0x868   :  { %v2344_v12 = vsel %vm1432_vm2, %v6962_v2, 0.0  ;;  %2941 = vmatmul.bf16.gmra.mxu2 %v5142_v10  ;;  %2979 = vmatmul.bf16.gmra.mxu0 %v5150_v47  ;;  %v5755_v47 = vld [vmem:[#allocation7 + $0xd0] sm:$0xff] }
 0x869   :  { %2348 = vadd.xlane.f32.xlu1 %v2347_v6  ;;  %2345 = vadd.xlane.f32.xlu2 %v2344_v12  ;;  %v5804_v6 = vld [vmem:[#allocation7 + $0x258] sm:$0xff]  ;;  %v5811_v12 = vld [vmem:[#allocation7 + $0x290] sm:$0xff] }
 0x86a   :  { %3007 = vmatpush.bf16.msra.mxu2 %v5813_v22  ;;  %3026 = vmatpush.bf16.msra.mxu3 %v5821_v45 }
 0x86b   :  { %2989 = vmatpush.bf16.msra.mxu1 %v5804_v6  ;;  %3335 = vmatpush.bf16.msrb.mxu0 %v5731_v57  ;;  %v5749_v6 = vld [vmem:[#allocation7 + $0xa0] sm:$0xff] }
 0x86e   :  { %3008 = vmatpush.bf16.msra.mxu2 %v5812_v34  ;;  %3027 = vmatpush.bf16.msra.mxu3 %v5820_v62  ;;  %v5768_v34 = vld [vmem:[#allocation7 + $0x138] sm:$0xff]  ;;  %v5750_v62 = vld [vmem:[#allocation7 + $0xa8] sm:$0xff] }
 0x86f   :  { %2960 = vmatmul.bf16.gmra.mxu3 %v5146_v60  ;;  %2990 = vmatpush.bf16.msra.mxu1 %v5803_v1  ;;  %v5742_v60 = vld [vmem:[#allocation7 + $0x68] sm:$0xff]  ;;  %v5157_v1 = vld [vmem:[#allocation2 + $0xd0] sm:$0xf] }
 0x870   :  { %3336 = vmatpush.bf16.msrb.mxu0 %v5730_v7  ;;  %v5761_v7 = vld [vmem:[#allocation7 + $0x100] sm:$0xff] }
 0x872   :  { %3009 = vmatpush.bf16.msra.mxu2 %v5811_v12  ;;  %3028 = vmatpush.bf16.msra.mxu3 %v5819_v0  ;;  %v5757_v12 = vld [vmem:[#allocation7 + $0xe0] sm:$0xff] }
 0x873   :  { %2991 = vmatpush.bf16.msra.mxu1 %v5802_v5  ;;  %v5764_v5 = vld [vmem:[#allocation7 + $0x118] sm:$0xff] }
 0x874   :  { %3337 = vmatpush.bf16.msrb.mxu0 %v5729_v51 }
 0x876   :  { %3010 = vmatpush.bf16.msra.mxu2 %v5810_v42  ;;  %3029 = vmatpush.bf16.msra.mxu3 %v5818_v56  ;;  %v5766_v42 = vld [vmem:[#allocation7 + $0x128] sm:$0xff]  ;;  %v5740_v56 = vld [vmem:[#allocation7 + $0x58] sm:$0xff] }
 0x877   :  { %2992 = vmatpush.bf16.msra.mxu1 %v5801_v53  ;;  %v5775_v53 = vld [vmem:[#allocation7 + $0x170] sm:$0xff] }
 0x878   :  { %3406 = vmatpush.bf16.msra.mxu0 %v5768_v34 }
 0x879   :  { %3338 = vmatmul.bf16.vlgmr.msrb.gmra.mxu0 %v6284_v39  ;;  %v5596_v39 = vld [vmem:[#allocation2 + $0x3c] sm:$0xf] }
 0x87a   :  { %3011 = vmatpush.bf16.msra.mxu2 %v5809_v50  ;;  %3030 = vmatpush.bf16.msra.mxu3 %v5817_v14  ;;  %v5127_v50 = vld [vmem:[#allocation2 + $0x80] sm:$0xf0]  ;;  %v5738_v14 = vld [vmem:[#allocation7 + $0x48] sm:$0xff] }
 0x87b   :  { %v5130_v57 = vor.u32 %v5596_v39, %v5127_v50  ;;  %v3469_v39 = vld [vmem:[%s7629_s8 + $0x48] sm:$0xff]  ;;  %v3468_v50 = vld [vmem:[%s7629_s8 + $0x40] sm:$0xff] }
 0x87e   :  { %3368 = vmatpush.bf16.msrb.mxu2 %v5752_v30  ;;  %3387 = vmatpush.bf16.msrb.mxu3 %v5760_v43  ;;  %v5753_v30 = vld [vmem:[#allocation7 + $0xc0] sm:$0xff]  ;;  %v5763_v43 = vld [vmem:[#allocation7 + $0x110] sm:$0xff] }
 0x882   :  { %3369 = vmatpush.bf16.msrb.mxu2 %v5751_v59  ;;  %3388 = vmatpush.bf16.msrb.mxu3 %v5759_v35  ;;  %v5773_v59 = vld [vmem:[#allocation7 + $0x160] sm:$0xff]  ;;  %v5772_v35 = vld [vmem:[#allocation7 + $0x158] sm:$0xff] }
 0x886   :  { %3370 = vmatpush.bf16.msrb.mxu2 %v5750_v62  ;;  %3389 = vmatpush.bf16.msrb.mxu3 %v5758_v9 }
 0x889   :  { %3343 = vmatmul.bf16.gmra.mxu0 %v6290_v3 }
 0x88a   :  { %3371 = vmatpush.bf16.msrb.mxu2 %v5749_v6  ;;  %3390 = vmatpush.bf16.msrb.mxu3 %v5757_v12  ;;  %v3475_v6 = vld [vmem:[%s7629_s8 + $0x78] sm:$0xff]  ;;  %v3458_v12 = vld [vmem:[%s7628_s7 + $0x70] sm:$0xff] }
 0x88e   :  { %3372 = vmatpush.bf16.msrb.mxu2 %v5748_v19  ;;  %v3472_v19 = vld [vmem:[%s7629_s8 + $0x60] sm:$0xff] }
 0x8d3   :  { %v2343_v8 = vpop.xlane.xlu0 %2342 }
 0x8d4   :  { %5960 = vrcp.f32 %v2343_v8  ;;  %v2340_v46 = vpop.xlane.xlu1 %2339 }
 0x8d5   :  { %5962 = vrcp.f32 %v2340_v46  ;;  %v5767_v46 = vld [vmem:[#allocation7 + $0x130] sm:$0xff]  ;;  %v6992_v51 = vpop.f32.mrf.mxu0 }
 0x8d6   :  { %3407 = vmatpush.bf16.msra.mxu0 %v5767_v46 }
 0x8da   :  { %v5961_v32 = vpop.eup %5960  ;;  %3408 = vmatpush.bf16.msra.mxu0 %v5766_v42 }
 0x8db   :  { %v5963_v11 = vpop.eup %5962  ;;  %v2355_v18 = vmul.f32 %v5961_v32, %v6952_v58  ;;  %v5606_v58 = vld [vmem:[#allocation2 + $0x84] sm:$0xf0]  ;;  %v5756_v32 = vld [vmem:[#allocation7 + $0xd8] sm:$0xff] }
 0x8dc   :  { %v2354_v33 = vmul.f32 %v5963_v11, %v6954_v63  ;;  %v2346_v23 = vpop.xlane.xlu2 %2345  ;;  %v2349_v48 = vpop.xlane.xlu1 %2348  ;;  %v5597_v63 = vld [vmem:[#allocation2 + $0x44] sm:$0xf]  ;;  %v5134_v22 = vor.u32 %v5606_v58, %v5133_v61  ;;  %3391 = vmatpush.bf16.msrb.mxu3 %v5756_v32  ;;  %v3455_v32 = vld [vmem:[%s7628_s7 + $0x58] sm:$0xff] }
 0x8dd   :  { %5964 = vrcp.f32 %v2346_v23  ;;  %v5138_v45 = vor.u32 %v5597_v63, %v5135_v31  ;;  %v5739_v23 = vld [vmem:[#allocation7 + $0x50] sm:$0xff]  ;;  %v5745_v61 = vld [vmem:[#allocation7 + $0x80] sm:$0xff]  ;;  %v5776_v63 = vld [vmem:[#allocation7 + $0x178] sm:$0xff] }
 0x8de   :  { %v2358_v15 = vpack.c.bf16 %v2355_v18, %v2354_v33  ;;  %5966 = vrcp.f32 %v2349_v48  ;;  %3012 = vmatmul.bf16.vlgmr.msra.gmra.mxu2 %v5134_v22  ;;  %v5765_v18 = vld [vmem:[#allocation7 + $0x120] sm:$0xff]  ;;  %v5747_v33 = vld [vmem:[#allocation7 + $0x90] sm:$0xff]  ;;  %v5754_v48 = vld [vmem:[#allocation7 + $0xc8] sm:$0xff] }
 0x8df   :  { %3031 = vmatmul.bf16.vlgmr.msra.gmra.mxu3 %v5138_v45  ;;  %3409 = vmatpush.bf16.msra.mxu0 %v5765_v18  ;;  %v5737_v58 = vld [vmem:[#allocation7 + $0x40] sm:$0xff]  ;;  %v5762_v31 = vld [vmem:[#allocation7 + $0x108] sm:$0xff]  ;;  %v5151_v45 = vld [vmem:[#allocation2 + $0x110] sm:$0xf0] }
 0x8e0   :  { %5113 = vmatmul.msk.bf16.vlgmr.msrb.gmra.mxu1 %vm1432_vm2, %v2358_v15  ;;  %3373 = vmatpush.bf16.msrb.mxu2 %v5747_v33  ;;  %v5746_v15 = vld [vmem:[#allocation7 + $0x88] sm:$0xff]  ;;  %v3470_v18 = vld [vmem:[%s7629_s8 + $0x50] sm:$0xff] }
 0x8e1   :  { %3349 = vmatpush.bf16.msrb.mxu1 %v5744_v21  ;;  %3392 = vmatpush.bf16.msrb.mxu3 %v5755_v47  ;;  %v5774_v21 = vld [vmem:[#allocation7 + $0x168] sm:$0xff] }
 0x8e2   :  { %v5614_v22 = vld [vmem:[#allocation2 + $0xcc] sm:$0xf] }
 0x8e3   :  { %v5965_v49 = vpop.eup %5964  ;;  %3410 = vmatpush.bf16.msra.mxu0 %v5764_v5  ;;  %v5154_v3 = vor.u32 %v5614_v22, %v5151_v45  ;;  %v3453_v33 = vld [vmem:[%s7628_s7 + $0x48] sm:$0xff]  ;;  %v3452_v5 = vld [vmem:[%s7628_s7 + $0x40] sm:$0xff]  ;;  %v3463_v22 = vld [vmem:[%s7629_s8 + $0x18] sm:$0xff] }
 0x8e4   :  { %v5967_v54 = vpop.eup %5966  ;;  %v2356_v8 = vmul.f32 %v5965_v49, %v6962_v2  ;;  %v5615_v2 = vld [vmem:[#allocation2 + $0xd4] sm:$0xf]  ;;  %3374 = vmatpush.bf16.msrb.mxu2 %v5746_v15  ;;  %v3451_v15 = vld [vmem:[%s7628_s7 + $0x38] sm:$0xff] }
 0x8e5   :  { %v2357_v10 = vmul.f32 %v5967_v54, %v6960_v44  ;;  %3350 = vmatpush.bf16.msrb.mxu1 %v5743_v29  ;;  %v5624_v44 = vld [vmem:[#allocation2 + $0x114] sm:$0xf0]  ;;  %v5162_v11 = vor.u32 %v5615_v2, %v5159_v28  ;;  %3393 = vmatpush.bf16.msrb.mxu3 %v5754_v48  ;;  %v5771_v49 = vld [vmem:[#allocation7 + $0x150] sm:$0xff]  ;;  %v7000_v54 = vpop.f32.mrf.mxu0  ;;  %v3456_v2 = vld [vmem:[%s7628_s7 + $0x60] sm:$0xff] }
 0x8e6   :  { %v5158_v16 = vor.u32 %v5624_v44, %v5157_v1  ;;  %v3457_v1 = vld [vmem:[%s7628_s7 + $0x68] sm:$0xff]  ;;  %v3446_v45 = vld [vmem:[%s7628_s7 + $0x10] sm:$0xff] }
 0x8e7   :  { %v2359_v0 = vpack.c.bf16 %v2357_v10, %v2356_v8  ;;  %3411 = vmatpush.bf16.msra.mxu0 %v5763_v43  ;;  %v3473_v44 = vld [vmem:[%s7629_s8 + $0x68] sm:$0xff] }
 0x8e8   :  { %3375 = vmatpush.bf16.msrb.mxu2 %v5745_v61  ;;  %v3466_v61 = vld [vmem:[%s7629_s8 + $0x30] sm:$0xff] }
 0x8e9   :  { %3351 = vmatpush.bf16.msrb.mxu1 %v5742_v60  ;;  %3394 = vmatpush.bf16.msrb.mxu3 %v5753_v30  ;;  %v3459_v60 = vld [vmem:[%s7628_s7 + $0x78] sm:$0xff]  ;;  %v3449_v30 = vld [vmem:[%s7628_s7 + $0x28] sm:$0xff] }
 0x8eb   :  { %3412 = vmatpush.bf16.msra.mxu0 %v5762_v31  ;;  %v3448_v31 = vld [vmem:[%s7628_s7 + $0x20] sm:$0xff] }
 0x8ec   :  { %3477 = vmatpush.msra.mxu2 %v3459_v60 }
 0x8ed   :  { %3352 = vmatpush.bf16.msrb.mxu1 %v5741_v13  ;;  %v7010_v62 = vpop.f32.mrf.mxu0  ;;  %3506 = vmatpush.msra.mxu3 %v3475_v6  ;;  %v3474_v13 = vld [vmem:[%s7629_s8 + $0x70] sm:$0xff] }
 0x8ee   :  { %3017 = vmatmul.bf16.gmra.mxu2 %v5158_v16  ;;  %v3454_v16 = vld [vmem:[%s7628_s7 + $0x50] sm:$0xff] }
 0x8ef   :  { %3036 = vmatmul.bf16.gmra.mxu3 %v5162_v11  ;;  %3413 = vmatpush.bf16.msra.mxu0 %v5761_v7  ;;  %v3464_v7 = vld [vmem:[%s7629_s8 + $0x20] sm:$0xff] }
 0x8f0   :  { %5114 = vmatmul.msk.bf16.gmra.mxu1 %vm1432_vm2, %v2359_v0  ;;  %3478 = vmatpush.msra.mxu2 %v3458_v12 }
 0x8f1   :  { %3353 = vmatpush.bf16.msrb.mxu1 %v5740_v56  ;;  %3507 = vmatpush.msra.mxu3 %v3474_v13  ;;  %v3471_v56 = vld [vmem:[%s7629_s8 + $0x58] sm:$0xff]  ;;  %v3460_v13 = vld [vmem:[%s7629_s8] sm:$0xff] }
 0x8f2   :  { %3414 = vmatmul.bf16.vlgmr.msra.gmra.mxu0 %v6300_v26  ;;  %v6986_v26 = vpop.f32.mrf.mxu2  ;;  %3479 = vmatpush.msra.mxu2 %v3457_v1 }
 0x8f3   :  { %3508 = vmatpush.msra.mxu3 %v3473_v44 }
 0x8f4   :  { %3480 = vmatpush.msra.mxu2 %v3456_v2 }
 0x8f5   :  { %3354 = vmatpush.bf16.msrb.mxu1 %v5739_v23  ;;  %v7021_v46 = vpop.f32.mrf.mxu0  ;;  %3509 = vmatpush.msra.mxu3 %v3472_v19 }
 0x8f6   :  { %3481 = vmatpush.msra.mxu2 %v3455_v32 }
 0x8f7   :  { %3510 = vmatpush.msra.mxu3 %v3471_v56 }
 0x8f8   :  { %3482 = vmatpush.msra.mxu2 %v3454_v16 }
 0x8f9   :  { %3355 = vmatpush.bf16.msrb.mxu1 %v5738_v14  ;;  %3511 = vmatpush.msra.mxu3 %v3470_v18  ;;  %v3467_v14 = vld [vmem:[%s7629_s8 + $0x38] sm:$0xff] }
 0x8fa   :  { %3483 = vmatpush.msra.mxu2 %v3453_v33 }
 0x8fb   :  { %3512 = vmatpush.msra.mxu3 %v3469_v39 }
 0x8fc   :  { %3484 = vmatpush.msra.mxu2 %v3452_v5 }
 0x8fd   :  { %3356 = vmatpush.bf16.msrb.mxu1 %v5737_v58  ;;  %v7059_v11 = vpop.f32.mrf.mxu0  ;;  %3513 = vmatpush.msra.mxu3 %v3468_v50 }
 0x8fe   :  { %3376 = vmatmul.bf16.vlgmr.msrb.gmra.mxu2 %v6296_v24  ;;  %v5770_v24 = vld [vmem:[#allocation7 + $0x148] sm:$0xff] }
 0x8ff   :  { %3395 = vmatmul.bf16.vlgmr.msrb.gmra.mxu3 %v6298_v25  ;;  %v5769_v25 = vld [vmem:[#allocation7 + $0x140] sm:$0xff]  ;;  %3485 = vmatpush.msra.mxu2 %v3451_v15 }
 0x900   :  { %2993 = vmatmul.bf16.vlgmr.msra.gmra.mxu1 %v5130_v57  ;;  %v3450_v57 = vld [vmem:[%s7628_s7 + $0x30] sm:$0xff]  ;;  %3514 = vmatpush.msra.mxu3 %v3467_v14 }
 0x901   :  { %3425 = vmatpush.bf16.msra.mxu1 %v5776_v63  ;;  %3486 = vmatpush.msra.mxu2 %v3450_v57  ;;  %v3465_v63 = vld [vmem:[%s7629_s8 + $0x28] sm:$0xff] }
 0x902   :  { %3419 = vmatmul.bf16.gmra.mxu0 %v6310_v37  ;;  %3515 = vmatpush.msra.mxu3 %v3466_v61 }
 0x903   :  { %3487 = vmatpush.msra.mxu2 %v3449_v30 }
 0x904   :  { %3516 = vmatpush.msra.mxu3 %v3465_v63 }
 0x905   :  { %3426 = vmatpush.bf16.msra.mxu1 %v5775_v53  ;;  %v3341_v43 = vpop.f32.mrf.mxu0  ;;  %3488 = vmatpush.msra.mxu2 %v3448_v31 }
 0x906   :  { %3517 = vmatpush.msra.mxu3 %v3464_v7 }
 0x908   :  { %3518 = vmatpush.msra.mxu3 %v3463_v22 }
 0x909   :  { %3427 = vmatpush.bf16.msra.mxu1 %v5774_v21  ;;  %v3447_v21 = vld [vmem:[%s7628_s7 + $0x18] sm:$0xff] }
 0x90a   :  { %3489 = vmatpush.msra.mxu2 %v3447_v21 }
 0x90c   :  { %3490 = vmatpush.msra.mxu2 %v3446_v45 }
 0x90d   :  { %3428 = vmatpush.bf16.msra.mxu1 %v5773_v59 }
 0x90e   :  { %3381 = vmatmul.bf16.gmra.mxu2 %v6308_v36 }
 0x90f   :  { %3400 = vmatmul.bf16.gmra.mxu3 %v6312_v38  ;;  %v6990_v38 = vpop.f32.mrf.mxu3 }
 0x910   :  { %2998 = vmatmul.bf16.gmra.mxu1 %v5154_v3  ;;  %v2957_v59 = vadd.f32 %v6990_v38, %v6986_v26  ;;  %v3461_v26 = vld [vmem:[%s7629_s8 + $0x8] sm:$0xff]  ;;  %v3444_v38 = vld [vmem:[%s7628_s7] sm:$0xff] }
 0x911   :  { %3429 = vmatpush.bf16.msra.mxu1 %v5772_v35  ;;  %v3462_v35 = vld [vmem:[%s7629_s8 + $0x10] sm:$0xff] }
 0x912   :  { %3519 = vmatpush.msra.mxu3 %v3462_v35  ;;  %v2976_v60 = vadd.f32 %v6992_v51, %v2957_v59 }
 0x914   :  { %3520 = vmatpush.msra.mxu3 %v3461_v26 }
 0x915   :  { %3430 = vmatpush.bf16.msra.mxu1 %v5771_v49  ;;  %v3445_v49 = vld [vmem:[%s7628_s7 + $0x8] sm:$0xff] }
 0x916   :  { %3491 = vmatpush.msra.mxu2 %v3445_v49  ;;  %3521 = vmatpush.msra.mxu3 %v3460_v13 }
 0x917   :  { %v6998_v37 = vpop.f32.mrf.mxu3 }
 0x918   :  { %3492 = vmatpush.msra.mxu2 %v3444_v38 }
 0x919   :  { %3431 = vmatpush.bf16.msra.mxu1 %v5770_v24 }
 0x91d   :  { %3432 = vmatpush.bf16.msra.mxu1 %v5769_v25  ;;  %v3344_v25 = vpop.f32.mrf.mxu0 }
 0x920   :  { %3357 = vmatmul.bf16.vlgmr.msrb.gmra.mxu1 %v6286_v40  ;;  %v6996_v40 = vpop.f32.mrf.mxu2 }
 0x921   :  { %v2959_v51 = vadd.f32 %v6998_v37, %v6996_v40 }
 0x923   :  { %v2978_v2 = vadd.f32 %v7000_v54, %v2959_v51 }
 0x925   :  { %v3346_v19 = vpop.f32.mrf.mxu0 }
 0x930   :  { %3362 = vmatmul.bf16.gmra.mxu1 %v6292_v4 }
 0x940   :  { %3433 = vmatmul.bf16.vlgmr.msra.gmra.mxu1 %v6302_v27  ;;  %v7004_v27 = vpop.f32.mrf.mxu2 }
 0x948   :  { %v7012_v9 = vpop.f32.mrf.mxu2 }
 0x950   :  { %3438 = vmatmul.bf16.gmra.mxu1 %v6314_v41  ;;  %v7006_v41 = vpop.f32.mrf.mxu3 }
 0x951   :  { %v2962_v18 = vadd.f32 %v7006_v41, %v7004_v27 }
 0x953   :  { %v2981_v5 = vadd.f32 %v7010_v62, %v2962_v18 }
 0x958   :  { %v7014_v8 = vpop.f32.mrf.mxu3 }
 0x95d   :  { %v6988_v36 = vpop.f32.mrf.mxu1 }
 0x961   :  { %v7029_v0 = vpop.f32.mrf.mxu2 }
 0x962   :  { %v7045_v28 = vpop.f32.mrf.mxu3 }
 0x965   :  { %v6994_v29 = vpop.f32.mrf.mxu1 }
 0x969   :  { %v7067_v47 = vpop.f32.mrf.mxu2 }
 0x96a   :  { %v3034_v48 = vpop.f32.mrf.mxu3 }
 0x96d   :  { %v7002_v4 = vpop.f32.mrf.mxu1 }
 0x96f   :  { %v3415_v15 = vpop.f32.mrf.mxu0 }
 0x971   :  { %v3018_v53 = vpop.f32.mrf.mxu2 }
 0x972   :  { %v3037_v3 = vpop.f32.mrf.mxu3 }
 0x975   :  { %v7008_v34 = vpop.f32.mrf.mxu1 }
 0x979   :  { %v3020_v6 = vpop.f32.mrf.mxu2 }
 0x97a   :  { %v3039_v1 = vpop.f32.mrf.mxu3 }
 0x97d   :  { %v7016_v10 = vpop.f32.mrf.mxu1 }
 0x97e   :  { %v2995_v12 = vadd.f32 %v7016_v10, %v2976_v60 }
 0x980   :  { %v3014_v10 = vadd.f32 %v7029_v0, %v2995_v12 }
 0x981   :  { %v3377_v16 = vpop.f32.mrf.mxu2 }
 0x982   :  { %v3033_v32 = vadd.f32 %v7045_v28, %v3014_v10  ;;  %v3396_v37 = vpop.f32.mrf.mxu3 }
 0x984   :  { %v3340_v39 = vadd.f32 %v7059_v11, %v3033_v32 }
 0x985   :  { %v7037_v42 = vpop.f32.mrf.mxu1 }
 0x986   :  { %v2997_v56 = vadd.f32 %v7037_v42, %v2978_v2  ;;  %v2964_v42 = vadd.f32 %v7014_v8, %v7012_v9 }
 0x988   :  { %v3016_v40 = vadd.f32 %v7067_v47, %v2997_v56  ;;  %v2983_v11 = vadd.f32 %v7021_v46, %v2964_v42 }
 0x989   :  { %v3379_v14 = vpop.f32.mrf.mxu2 }
 0x98a   :  { %v3035_v50 = vadd.f32 %v3034_v48, %v3016_v40  ;;  %v3398_v30 = vpop.f32.mrf.mxu3 }
 0x98c   :  { %v3342_v27 = vadd.f32 %v3341_v43, %v3035_v50 }
 0x98d   :  { %v7069_v23 = vpop.f32.mrf.mxu1 }
 0x98e   :  { %v3000_v54 = vadd.f32 %v7069_v23, %v2981_v5  ;;  %v3417_v23 = vpop.f32.mrf.mxu0 }
 0x990   :  { %v3019_v41 = vadd.f32 %v3018_v53, %v3000_v54 }
 0x991   :  { %v3382_v8 = vpop.f32.mrf.mxu2 }
 0x992   :  { %v3038_v63 = vadd.f32 %v3037_v3, %v3019_v41  ;;  %v3401_v46 = vpop.f32.mrf.mxu3 }
 0x994   :  { %v3345_v21 = vadd.f32 %v3344_v25, %v3038_v63 }
 0x995   :  { %v7095_v58 = vpop.f32.mrf.mxu1 }
 0x996   :  { %v3002_v62 = vadd.f32 %v7095_v58, %v2983_v11  ;;  %v3420_v58 = vpop.f32.mrf.mxu0 }
 0x998   :  { %v3021_v22 = vadd.f32 %v3020_v6, %v3002_v62 }
 0x999   :  { %v3384_v25 = vpop.f32.mrf.mxu2 }
 0x99a   :  { %v3040_v43 = vadd.f32 %v3039_v1, %v3021_v22  ;;  %v3403_v38 = vpop.f32.mrf.mxu3 }
 0x99c   :  { %v3347_v3 = vadd.f32 %v3346_v19, %v3040_v43 }
 0x99d   :  { %v3358_v24 = vpop.f32.mrf.mxu1 }
 0x99e   :  { %v3359_v0 = vadd.f32 %v3358_v24, %v3340_v39  ;;  %v3422_v1 = vpop.f32.mrf.mxu0 }
 0x9a0   :  { %v3378_v28 = vadd.f32 %v3377_v16, %v3359_v0 }
 0x9a2   :  { %v3397_v61 = vadd.f32 %v3396_v37, %v3378_v28 }
 0x9a4   :  { %v3416_v48 = vadd.f32 %v3415_v15, %v3397_v61 }
 0x9a5   :  { %v3360_v44 = vpop.f32.mrf.mxu1 }
 0x9a6   :  { %v3361_v47 = vadd.f32 %v3360_v44, %v3342_v27 }
 0x9a8   :  { %v3380_v31 = vadd.f32 %v3379_v14, %v3361_v47 }
 0x9aa   :  { %v3399_v45 = vadd.f32 %v3398_v30, %v3380_v31 }
 0x9ac   :  { %v3418_v53 = vadd.f32 %v3417_v23, %v3399_v45 }
 0x9ad   :  { %v3363_v33 = vpop.f32.mrf.mxu1 }
 0x9ae   :  { %v3364_v59 = vadd.f32 %v3363_v33, %v3345_v21 }
 0x9b0   :  { %v3383_v35 = vadd.f32 %v3382_v8, %v3364_v59 }
 0x9b2   :  { %v3402_v60 = vadd.f32 %v3401_v46, %v3383_v35 }
 0x9b4   :  { %v3421_v6 = vadd.f32 %v3420_v58, %v3402_v60 }
 0x9b5   :  { %v3365_v57 = vpop.f32.mrf.mxu1 }
 0x9b6   :  { %v3366_v12 = vadd.f32 %v3365_v57, %v3347_v3 }
 0x9b8   :  { %v3385_v26 = vadd.f32 %v3384_v25, %v3366_v12 }
 0x9ba   :  { %v3404_v44 = vadd.f32 %v3403_v38, %v3385_v26 }
 0x9bc   :  { %v3423_v10 = vadd.f32 %v3422_v1, %v3404_v44 }
 0x9bd   :  { %v3434_v7 = vpop.f32.mrf.mxu1 }
 0x9be   :  { %v3435_v9 = vadd.f32 %v3434_v7, %v3416_v48 }
 0x9c0   :  { %3493 = vmatmul.f32.vlgmr.msra.gmra.mxu2 %v3435_v9  ;;  %3522 = vmatmul.f32.vlgmr.msra.gmra.mxu3 %v3435_v9  ;;  %v3535_v18 = vpack.c.bf16 %v3435_v9, %v3435_v9 }
 0x9c2   :  { %v3662_v5 = vunpack.c.l.b16 %v3535_v18 }
 0x9c5   :  { %v3436_v49 = vpop.f32.mrf.mxu1 }
 0x9c6   :  { %v3437_v24 = vadd.f32 %v3436_v49, %v3418_v53 }
 0x9c8   :  { %3496 = vmatmul.f32.gmra.mxu2 %v3437_v24  ;;  %3525 = vmatmul.f32.gmra.mxu3 %v3437_v24  ;;  %v3536_v56 = vpack.c.bf16 %v3437_v24, %v3437_v24 }
 0x9ca   :  { %v3663_v40 = vunpack.c.l.b16 %v3536_v56 }
 0x9cc   :  { %v7153_v0 = vpack.c.b16 %v3663_v40, %v3662_v5 }
 0x9cd   :  { %v3439_v13 = vpop.f32.mrf.mxu1 }
 0x9ce   :  { %v3440_v51 = vadd.f32 %v3439_v13, %v3421_v6 }
 0x9d0   :  { %3499 = vmatmul.f32.gmra.mxu2 %v3440_v51  ;;  %3528 = vmatmul.f32.gmra.mxu3 %v3440_v51  ;;  %v3537_v32 = vpack.c.bf16 %v3440_v51, %v3440_v51  ;;  %v7206_v51 = vld [vmem:[%s7647_s19] sm:$0xff] }
 0x9d2   :  { %v3664_v33 = vunpack.c.l.b16 %v3537_v32 }
 0x9d5   :  { %v3441_v2 = vpop.f32.mrf.mxu1 }
 0x9d6   :  { %v3442_v19 = vadd.f32 %v3441_v2, %v3423_v10 }
 0x9d8   :  { %v3538_v16 = vpack.c.bf16 %v3442_v19, %v3442_v19  ;;  %3502 = vmatmul.f32.gmra.mxu2 %v3442_v19  ;;  %3531 = vmatmul.f32.gmra.mxu3 %v3442_v19 }
 0x9da   :  { %v3665_v39 = vunpack.c.l.b16 %v3538_v16 }
 0x9dc   :  { %v7150_v37 = vpack.c.b16 %v3665_v39, %v3664_v33 }
 0x9de   :  { %3682 = vmatpush.bf16.msrb.mxu0 %v7150_v37 }
 0x9e2   :  { %3683 = vmatpush.bf16.msrb.mxu0 %v7153_v0 }
 0xa43   :  { %v3494_v50 = vpop.f32.mrf.mxu2  ;;  %v7156_v54 = vpop.f32.mrf.mxu3 }
 0xa44   :  { %4015 = vrot.lane.b32.xlu1 %v3494_v50, %s6167_s3  ;;  %3857 = vrot.lane.b32.xlu0 %v3494_v50, %s6168_s4 }
 0xa4b   :  { %v3526_v15 = vpop.f32.mrf.mxu3  ;;  %v3497_v28 = vpop.f32.mrf.mxu2 }
 0xa4c   :  { %3578 = vperm.xlu2 %5870, %v3526_v15   ;;  %3699 = vrot.lane.b32.xlu1 %v3494_v50, %s6169_s6 }
 0xa4d   :  { %3744 = vperm.xlu0 %5873, %v7156_v54  }
 0xa53   :  { %v3529_v42 = vpop.f32.mrf.mxu3  ;;  %v3500_v57 = vpop.f32.mrf.mxu2 }
 0xa54   :  { %3902 = vperm.xlu1 %5871, %v7156_v54   ;;  %5880 = vset.pattern.permute.xlu2 %v6170_v55 }
 0xa55   :  { %3859 = vrot.lane.b32.xlu0 %v3497_v28, %s6168_s4 }
 0xa56   :  { %5874 = vset.pattern.permute.xlu0 %v6164_v20 }
 0xa5b   :  { %v3532_v14 = vpop.f32.mrf.mxu3  ;;  %v3503_v27 = vpop.f32.mrf.mxu2 }
 0xa5c   :  { %4072 = vperm.xlu2 %5880, %v3532_v14   ;;  %5872 = vset.pattern.permute.xlu1 %v6170_v55 }
 0xa5d   :  { %4017 = vrot.lane.b32.xlu0 %v3497_v28, %s6167_s3  ;;  %4060 = vperm.xlu1 %5872, %v7156_v54  }
 0xa65   :  { %3701 = vrot.lane.b32.xlu0 %v3497_v28, %s6169_s6  ;;  %4064 = vperm.xlu1 %5872, %v3526_v15  }
 0xa6d   :  { %3906 = vperm.xlu0 %5874, %v3526_v15   ;;  %5875 = vset.pattern.permute.xlu1 %v6165_v52 }
 0xa6e   :  { %3748 = vperm.xlu1 %5875, %v3526_v15   ;;  %v7227_v15 = vld [vmem:[%s7647_s19 + $0x8] sm:$0xff] }
 0xa75   :  { %3861 = vrot.lane.b32.xlu0 %v3500_v57, %s6168_s4 }
 0xa76   :  { %4019 = vrot.lane.b32.xlu1 %v3500_v57, %s6167_s3 }
 0xa77   :  { %5876 = vset.pattern.permute.xlu1 %v6164_v20 }
 0xa7d   :  { %4021 = vrot.lane.b32.xlu0 %v3503_v27, %s6167_s3 }
 0xa7e   :  { %3703 = vrot.lane.b32.xlu1 %v3500_v57, %s6169_s6 }
 0xa85   :  { %3705 = vrot.lane.b32.xlu0 %v3503_v27, %s6169_s6 }
 0xa86   :  { %3910 = vperm.xlu1 %5876, %v3529_v42  }
 0xa8d   :  { %3914 = vperm.xlu0 %5874, %v3532_v14  }
 0xa8e   :  { %5877 = vset.pattern.permute.xlu1 %v6170_v55 }
 0xa8f   :  { %4068 = vperm.xlu1 %5877, %v3529_v42  }
 0xa95   :  { %5881 = vset.pattern.permute.xlu0 %v6165_v52 }
 0xa96   :  { %3756 = vperm.xlu0 %5881, %v3532_v14  }
 0xa97   :  { %5878 = vset.pattern.permute.xlu1 %v6165_v52 }
 0xa98   :  { %3752 = vperm.xlu1 %5878, %v3529_v42  }
 0xaa0   :  { %5879 = vset.pattern.permute.xlu1 %v6166_v17 }
 0xaa1   :  { %3583 = vperm.xlu1 %5879, %v3529_v42  }
 0xaa6   :  { %v7194_v35 = vpop.permute.xlu2 %3578 }
 0xaa9   :  { %3863 = vrot.lane.b32.xlu1 %v3503_v27, %s6168_s4 }
 0xab1   :  { %3588 = vperm.xlu1 %5879, %v3532_v14  }
 0xab6   :  { %v4016_v20 = vpop.permute.xlu1 %4015  ;;  %v3858_v41 = vpop.permute.xlu0 %3857 }
 0xab7   :  { %v4073_v3 = vpop.permute.xlu2 %4072 }
 0xab8   :  { %3539 = vxpose.xlu0.b32.start [1/4] (short) (narrow) %v3494_v50, 8 }
 0xabe   :  { %v3700_v11 = vpop.permute.xlu1 %3699 }
 0xabf   :  { %v7182_v61 = vpop.permute.xlu0 %3744  ;;  %3711 = vxpose.xlu2.b32.start [1/4] (short) (narrow) %v3700_v11, 8 }
 0xac0   :  { %3540 = vxpose.xlu0.b32.cont [2/4] (short) (narrow) %v3497_v28, 8 }
 0xac6   :  { %v3903_v55 = vpop.permute.xlu1 %3902 }
 0xac7   :  { %v3860_v47 = vpop.permute.xlu0 %3859 }
 0xac8   :  { %3541 = vxpose.xlu0.b32.cont [3/4] (short) (narrow) %v3500_v57, 8 }
 0xacf   :  { %v4018_v30 = vpop.permute.xlu0 %4017  ;;  %v4061_v52 = vpop.permute.xlu1 %4060 }
 0xad0   :  { %3542 = vxpose.xlu0.b32.end [4/4] (short) (narrow) %v3503_v27, 8 }
 0xad7   :  { %v3702_v63 = vpop.permute.xlu0 %3701  ;;  %v4065_v62 = vpop.permute.xlu1 %4064 }
 0xad8   :  { %3712 = vxpose.xlu2.b32.cont [2/4] (short) (narrow) %v3702_v63, 8  ;;  %4027 = vxpose.xlu0.b32.start [1/4] (short) (narrow) %v4016_v20, 8 }
 0xadf   :  { %v3907_v48 = vpop.permute.xlu0 %3906 }
 0xae0   :  { %4028 = vxpose.xlu0.b32.cont [2/4] (short) (narrow) %v4018_v30, 8  ;;  %v7184_v31 = vpop.permute.xlu1 %3748  ;;  %v7242_v30 = vld [vmem:[%s7647_s19 + $0x18] sm:$0xff] }
 0xae6   :  { %3869 = vxpose.xlu1.b32.start [1/4] (short) (narrow) %v3858_v41, 8 }
 0xae7   :  { %v3862_v23 = vpop.permute.xlu0 %3861 }
 0xae8   :  { %v4020_v7 = vpop.permute.xlu1 %4019 }
 0xae9   :  { %4029 = vxpose.xlu0.b32.cont [3/4] (short) (narrow) %v4020_v7, 8 }
 0xaee   :  { %3870 = vxpose.xlu1.b32.cont [2/4] (short) (narrow) %v3860_v47, 8 }
 0xaef   :  { %v4022_v21 = vpop.permute.xlu0 %4021 }
 0xaf0   :  { %v3704_v22 = vpop.permute.xlu1 %3703 }
 0xaf1   :  { %3713 = vxpose.xlu2.b32.cont [3/4] (short) (narrow) %v3704_v22, 8  ;;  %4030 = vxpose.xlu0.b32.end [4/4] (short) (narrow) %v4022_v21, 8 }
 0xaf6   :  { %3871 = vxpose.xlu1.b32.cont [3/4] (short) (narrow) %v3862_v23, 8 }
 0xaf7   :  { %v3706_v9 = vpop.permute.xlu0 %3705 }
 0xaf8   :  { %v7186_v8 = vpop.permute.xlu1 %3910 }
 0xaf9   :  { %3714 = vxpose.xlu2.b32.end [4/4] (short) (narrow) %v3706_v9, 8 }
 0xaff   :  { %v3915_v53 = vpop.permute.xlu0 %3914 }
 0xb01   :  { %v7188_v45 = vpop.permute.xlu1 %4068 }
 0xb08   :  { %v3757_v49 = vpop.permute.xlu0 %3756 }
 0xb0a   :  { %v7190_v59 = vpop.permute.xlu1 %3752 }
 0xb13   :  { %v3584_v43 = vpop.permute.xlu1 %3583 }
 0xb1b   :  { %v3864_v46 = vpop.permute.xlu1 %3863 }
 0xb1c   :  { %3872 = vxpose.xlu1.b32.end [4/4] (short) (narrow) %v3864_v46, 8  ;;  %v7256_v46 = vld [vmem:[%s7647_s19 + $0x10] sm:$0xff] }
 0xb23   :  { %v3589_v10 = vpop.permute.xlu1 %3588 }
 0xb58   :  { %5882 = vset.pattern.permute.xlu0 %v6166_v17 }
 0xb5b   :  { %5883 = vset.pattern.permute.xlu2 %v6166_v17 }
 0xb5c   :  { %v3555_v24 = vpop.trf.xlu0 }
 0xb7a   :  { %v3727_v58 = vpop.trf.xlu2 }
 0xb7b   :  { %v7196_v60 = vperm.slane %v3727_v58, 0 }
 0xb7d   :  { %v4043_v12 = vpop.trf.xlu0  ;;  %v7199_v25 = vadd.f32 %v7196_v60, %v3757_v49  ;;  %v3761_v20 = vadd.f32 %v7196_v60, %v7184_v31 }
 0xb7e   :  { %v4075_v6 = vperm.slane %v4043_v12, 0 }
 0xb7f   :  { %v3769_v47 = vmul.f32 0.2, %v3761_v20  ;;  %vm3765_vm13 = vcmp.gt.f32.partialorder %v3761_v20, 0.0 }
 0xb80   :  { %v4076_v26 = vadd.f32 %v4075_v6, %v4061_v52  ;;  %v7201_v38 = vadd.f32 %v4075_v6, %v4073_v3  ;;  %v4077_v50 = vadd.f32 %v4075_v6, %v4065_v62  ;;  %v4078_v3 = vadd.f32 %v4075_v6, %v7188_v45 }
 0xb81   :  { %v3773_v62 = vsel %vm3765_vm13, %v3761_v20, %v3769_v47 }
 0xb82   :  { %vm4080_vm8 = vcmp.gt.f32.partialorder %v4076_v26, 0.0  ;;  %v4084_v13 = vmul.f32 0.2, %v4076_v26  ;;  %v4085_v28 = vmul.f32 0.2, %v4077_v50  ;;  %vm4081_vm11 = vcmp.gt.f32.partialorder %v4077_v50, 0.0 }
 0xb83   :  { %v3777_v23 = vadd.f32 %v7227_v15, %v3773_v62  ;;  %v4086_v12 = vmul.f32 0.2, %v4078_v3  ;;  %vm4082_vm0 = vcmp.gt.f32.partialorder %v4078_v3, 0.0 }
 0xb84   :  { %v4088_v17 = vsel %vm4080_vm8, %v4076_v26, %v4084_v13  ;;  %v4089_v27 = vsel %vm4081_vm11, %v4077_v50, %v4085_v28  ;;  %vm4083_vm8 = vcmp.gt.f32.partialorder %v7201_v38, 0.0 }
 0xb85   :  { %v7209_v44 = vadd.f32 %v7206_v51, %v4088_v17  ;;  %v7237_v41 = vadd.f32 %v7227_v15, %v4089_v27  ;;  %v3783_v21 = vsel %vm1432_vm2, %v3777_v23, -inf  ;;  %v4090_v13 = vsel %vm4082_vm0, %v4078_v3, %v4086_v12 }
 0xb86   :  { %v7269_v17 = vadd.f32 %v7256_v46, %v4090_v13 }
 0xb87   :  { %v4096_v1 = vsel %vm1432_vm2, %v7209_v44, -inf  ;;  %v4099_v63 = vsel %vm1432_vm2, %v7237_v41, -inf }
 0xb88   :  { %4097 = vmax.xlane.f32.xlu0 %v4096_v1  ;;  %v4102_v1 = vsel %vm1432_vm2, %v7269_v17, -inf }
 0xb9c   :  { %3573 = vperm.xlu0 %5882, %v7156_v54  }
 0xba8   :  { %v3885_v2 = vpop.trf.xlu1 }
 0xba9   :  { %v7214_v32 = vperm.slane %v3885_v2, 0 }
 0xbab   :  { %v3918_v19 = vadd.f32 %v7214_v32, %v3903_v55  ;;  %v3919_v56 = vadd.f32 %v7214_v32, %v3907_v48  ;;  %v3921_v54 = vadd.f32 %v7214_v32, %v3915_v53  ;;  %v3591_v55 = vperm.slane %v3555_v24, 0 }
 0xbac   :  { %v3920_v12 = vadd.f32 %v7214_v32, %v7186_v8 }
 0xbad   :  { %vm3922_vm9 = vcmp.gt.f32.partialorder %v3918_v19, 0.0  ;;  %v3926_v16 = vmul.f32 0.2, %v3918_v19  ;;  %v3927_v33 = vmul.f32 0.2, %v3919_v56  ;;  %vm3923_vm10 = vcmp.gt.f32.partialorder %v3919_v56, 0.0 }
 0xbae   :  { %v3929_v57 = vmul.f32 0.2, %v3921_v54  ;;  %vm3925_vm12 = vcmp.gt.f32.partialorder %v3921_v54, 0.0  ;;  %v3594_v48 = vadd.f32 %v3591_v55, %v3584_v43  ;;  %v3595_v9 = vadd.f32 %v3591_v55, %v3589_v10 }
 0xbaf   :  { %v3930_v18 = vsel %vm3922_vm9, %v3918_v19, %v3926_v16  ;;  %v3931_v5 = vsel %vm3923_vm10, %v3919_v56, %v3927_v33  ;;  %v3593_v2 = vadd.f32 %v3591_v55, %v7194_v35  ;;  %vm3924_vm7 = vcmp.gt.f32.partialorder %v3920_v12, 0.0 }
 0xbb0   :  { %v7219_v39 = vadd.f32 %v7206_v51, %v3930_v18  ;;  %v7230_v42 = vadd.f32 %v7227_v15, %v3931_v5  ;;  %v3933_v11 = vsel %vm3925_vm12, %v3921_v54, %v3929_v57  ;;  %v3602_v7 = vmul.f32 0.2, %v3594_v48 }
 0xbb1   :  { %v7245_v52 = vadd.f32 %v7242_v30, %v3933_v11  ;;  %vm3598_vm14 = vcmp.gt.f32.partialorder %v3594_v48, 0.0  ;;  %v3603_v53 = vmul.f32 0.2, %v3595_v9  ;;  %vm3599_vm15 = vcmp.gt.f32.partialorder %v3595_v9, 0.0 }
 0xbb2   :  { %v3938_v40 = vsel %vm1432_vm2, %v7219_v39, -inf  ;;  %v3941_v14 = vsel %vm1432_vm2, %v7230_v42, -inf  ;;  %v3606_v22 = vsel %vm3598_vm14, %v3594_v48, %v3602_v7  ;;  %v3601_v16 = vmul.f32 0.2, %v3593_v2 }
 0xbb3   :  { %3939 = vmax.xlane.f32.xlu1 %v3938_v40  ;;  %v3947_v31 = vsel %vm1432_vm2, %v7245_v52, -inf  ;;  %v7259_v43 = vadd.f32 %v7256_v46, %v3606_v22  ;;  %v3607_v24 = vsel %vm3599_vm15, %v3595_v9, %v3603_v53  ;;  %vm3597_vm5 = vcmp.gt.f32.partialorder %v3593_v2, 0.0 }
 0xbb4   :  { %v3611_v58 = vadd.f32 %v7242_v30, %v3607_v24  ;;  %v3605_v40 = vsel %vm3597_vm5, %v3593_v2, %v3601_v16  ;;  %v3760_v53 = vadd.f32 %v7196_v60, %v7182_v61  ;;  %v4087_v16 = vmul.f32 0.2, %v7201_v38 }
 0xbb5   :  { %v3618_v49 = vsel %vm1432_vm2, %v7259_v43, -inf  ;;  %v7284_v5 = vadd.f32 %v7227_v15, %v3605_v40  ;;  %vm3767_vm10 = vcmp.gt.f32.partialorder %v7199_v25, 0.0 }
 0xbb6   :  { %v3621_v26 = vsel %vm1432_vm2, %v3611_v58, -inf  ;;  %v3768_v3 = vmul.f32 0.2, %v3760_v53  ;;  %vm3764_vm6 = vcmp.gt.f32.partialorder %v3760_v53, 0.0 }
 0xbb7   :  { %v3615_v50 = vsel %vm1432_vm2, %v7284_v5, -inf }
 0xbb8   :  { %v3772_v24 = vsel %vm3764_vm6, %v3760_v53, %v3768_v3 }
 0xbbb   :  { %3942 = vmax.xlane.f32.xlu1 %v3941_v14 }
 0xbc3   :  { %4100 = vmax.xlane.f32.xlu1 %v4099_v63 }
 0xbc6   :  { %3948 = vmax.xlane.f32.xlu0 %v3947_v31 }
 0xbcb   :  { %3784 = vmax.xlane.f32.xlu1 %v3783_v21 }
 0xbd3   :  { %3619 = vmax.xlane.f32.xlu1 %v3618_v49 }
 0xbda   :  { %4144 = vrot.lane.b32.xlu0 %v7150_v37, %s6172_s27 }
 0xbdb   :  { %3622 = vmax.xlane.f32.xlu1 %v3621_v26 }
 0xbe3   :  { %4103 = vmax.xlane.f32.xlu1 %v4102_v1  ;;  %v7319_v1 = vadd.f32 %v7206_v51, %v3772_v24 }
 0xbe5   :  { %v3780_v61 = vsel %vm1432_vm2, %v7319_v1, -inf }
 0xbfb   :  { %v7275_v45 = vpop.xlane.xlu0 %4097 }
 0xbfc   :  { %3984 = vrot.lane.b32.xlu1 %v7153_v0, %s6158_s2 }
 0xc0e   :  { %v3574_v6 = vpop.permute.xlu0 %3573 }
 0xc0f   :  { %v3592_v10 = vadd.f32 %v3591_v55, %v3574_v6 }
 0xc11   :  { %vm3596_vm4 = vcmp.gt.f32.partialorder %v3592_v10, 0.0  ;;  %v3600_v19 = vmul.f32 0.2, %v3592_v10 }
 0xc13   :  { %v3604_v56 = vsel %vm3596_vm4, %v3592_v10, %v3600_v19 }
 0xc14   :  { %v7279_v18 = vadd.f32 %v7206_v51, %v3604_v56 }
 0xc16   :  { %v3612_v33 = vsel %vm1432_vm2, %v7279_v18, -inf }
 0xc17   :  { %3613 = vmax.xlane.f32.xlu2 %v3612_v33  ;;  %v4091_v33 = vsel %vm4083_vm8, %v7201_v38, %v4087_v16 }
 0xc18   :  { %v4095_v40 = vadd.f32 %v7242_v30, %v4091_v33 }
 0xc1f   :  { %3616 = vmax.xlane.f32.xlu2 %v3615_v50 }
 0xc26   :  { %v7288_v35 = vpop.xlane.xlu1 %3939 }
 0xc2e   :  { %v3943_v54 = vpop.xlane.xlu1 %3942 }
 0xc2f   :  { %v3951_v28 = vsub.f32 %v7230_v42, %v3943_v54  ;;  %v4105_v54 = vsel %vm1432_vm2, %v4095_v40, -inf }
 0xc31   :  { %v3956_v14 = vmul.f32 1.442695, %v3951_v28 }
 0xc33   :  { %5968 = vpow2.f32 %v3956_v14 }
 0xc36   :  { %v4101_v57 = vpop.xlane.xlu1 %4100 }
 0xc37   :  { %v4109_v27 = vsub.f32 %v7237_v41, %v4101_v57  ;;  %3986 = vrot.lane.b32.xlu2 %v7150_v37, %s6158_s2  ;;  %v3771_v57 = vmul.f32 0.2, %v7199_v25 }
 0xc39   :  { %v7294_v20 = vpop.eup %5968  ;;  %v4114_v11 = vmul.f32 1.442695, %v4109_v27  ;;  %v7302_v41 = vpop.xlane.xlu0 %3948  ;;  %v3775_v38 = vsel %vm3767_vm10, %v7199_v25, %v3771_v57 }
 0xc3a   :  { %v3965_v55 = vsel %vm1432_vm2, %v7294_v20, 0.0 }
 0xc3b   :  { %5970 = vpow2.f32 %v4114_v11  ;;  %3966 = vadd.xlane.f32.xlu1 %v3965_v55 }
 0xc3e   :  { %v3785_v47 = vpop.xlane.xlu1 %3784 }
 0xc3f   :  { %v3793_v63 = vsub.f32 %v3777_v23, %v3785_v47 }
 0xc41   :  { %v7298_v62 = vpop.eup %5970  ;;  %v3798_v42 = vmul.f32 1.442695, %v3793_v63 }
 0xc42   :  { %v4123_v48 = vsel %vm1432_vm2, %v7298_v62, 0.0 }
 0xc43   :  { %5972 = vpow2.f32 %v3798_v42  ;;  %4124 = vadd.xlane.f32.xlu1 %v4123_v48 }
 0xc46   :  { %v7304_v31 = vpop.xlane.xlu1 %3619 }
 0xc49   :  { %v7306_v7 = vpop.eup %5972 }
 0xc4a   :  { %v3807_v21 = vsel %vm1432_vm2, %v7306_v7, 0.0 }
 0xc4b   :  { %3808 = vadd.xlane.f32.xlu1 %v3807_v21 }
 0xc4c   :  { %v4145_v22 = vpop.permute.xlu0 %4144 }
 0xc4d   :  { %4160 = vmatpush.bf16.msrb.mxu3 %v4145_v22 }
 0xc4e   :  { %v3623_v23 = vpop.xlane.xlu1 %3622 }
 0xc4f   :  { %v3627_v9 = vsub.f32 %v3611_v58, %v3623_v23  ;;  %v3928_v58 = vmul.f32 0.2, %v3920_v12 }
 0xc51   :  { %v3634_v49 = vmul.f32 1.442695, %v3627_v9  ;;  %v3932_v6 = vsel %vm3924_vm7, %v3920_v12, %v3928_v58 }
 0xc52   :  { %v3936_v10 = vadd.f32 %v7256_v46, %v3932_v6 }
 0xc53   :  { %5974 = vpow2.f32 %v3634_v49  ;;  %v4108_v49 = vsub.f32 %v7209_v44, %v7275_v45 }
 0xc54   :  { %v3944_v8 = vsel %vm1432_vm2, %v3936_v10, -inf }
 0xc55   :  { %v4112_v3 = vmul.f32 1.442695, %v4108_v49 }
 0xc56   :  { %v4104_v2 = vpop.xlane.xlu1 %4103 }
 0xc57   :  { %v4110_v63 = vsub.f32 %v7269_v17, %v4104_v2  ;;  %v3950_v17 = vsub.f32 %v7219_v39, %v7288_v35  ;;  %v3953_v39 = vsub.f32 %v7245_v52, %v7302_v41 }
 0xc59   :  { %v7314_v26 = vpop.eup %5974  ;;  %v4116_v48 = vmul.f32 1.442695, %v4110_v63  ;;  %v3954_v53 = vmul.f32 1.442695, %v3950_v17  ;;  %v3960_v45 = vmul.f32 1.442695, %v3953_v39 }
 0xc5a   :  { %v3645_v13 = vsel %vm1432_vm2, %v7314_v26, 0.0 }
 0xc5b   :  { %3646 = vadd.xlane.f32.xlu0 %v3645_v13 }
 0xc60   :  { %3781 = vmax.xlane.f32.xlu2 %v3780_v61 }
 0xc68   :  { %3945 = vmax.xlane.f32.xlu2 %v3944_v8 }
 0xc6e   :  { %v3985_v56 = vpop.permute.xlu1 %3984 }
 0xc80   :  { %3828 = vrot.lane.b32.xlu2 %v7150_v37, %s6171_s26  ;;  %v3762_v37 = vadd.f32 %v7196_v60, %v7190_v59  ;;  %v7346_v59 = vadd.f32 %v7242_v30, %v3775_v38 }
 0xc82   :  { %v3770_v50 = vmul.f32 0.2, %v3762_v37  ;;  %vm3766_vm9 = vcmp.gt.f32.partialorder %v3762_v37, 0.0  ;;  %v3789_v60 = vsel %vm1432_vm2, %v7346_v59, -inf }
 0xc84   :  { %v3774_v28 = vsel %vm3766_vm9, %v3762_v37, %v3770_v50 }
 0xc85   :  { %v3778_v14 = vadd.f32 %v7256_v46, %v3774_v28 }
 0xc87   :  { %v3786_v27 = vsel %vm1432_vm2, %v3778_v14, -inf }
 0xc88   :  { %4142 = vrot.lane.b32.xlu2 %v7153_v0, %s6172_s27 }
 0xc8a   :  { %v7329_v51 = vpop.xlane.xlu2 %3613 }
 0xc8b   :  { %v3624_v16 = vsub.f32 %v7279_v18, %v7329_v51 }
 0xc8d   :  { %v3628_v50 = vmul.f32 1.442695, %v3624_v16 }
 0xc92   :  { %v7331_v32 = vpop.xlane.xlu2 %3616 }
 0xc9a   :  { %v3987_v19 = vpop.permute.xlu2 %3986 }
 0xc9b   :  { %4002 = vmatpush.bf16.msrb.mxu2 %v3987_v19 }
 0xc9f   :  { %4003 = vmatpush.bf16.msrb.mxu2 %v3985_v56 }
 0xcae   :  { %v3967_v63 = vpop.xlane.xlu1 %3966 }
 0xcb1   :  { %4106 = vmax.xlane.f32.xlu2 %v4105_v54 }
 0xcb9   :  { %3787 = vmax.xlane.f32.xlu2 %v3786_v27 }
 0xcc1   :  { %3790 = vmax.xlane.f32.xlu2 %v3789_v60 }
 0xcd3   :  { %v3782_v11 = vpop.xlane.xlu2 %3781 }
 0xcd4   :  { %v3792_v12 = vsub.f32 %v7319_v1, %v3782_v11 }
 0xcd6   :  { %v3796_v58 = vmul.f32 1.442695, %v3792_v12 }
 0xcd9   :  { %3826 = vrot.lane.b32.xlu2 %v7153_v0, %s6171_s26 }
 0xcdb   :  { %v3946_v55 = vpop.xlane.xlu2 %3945 }
 0xcdc   :  { %v3952_v47 = vsub.f32 %v3936_v10, %v3946_v55 }
 0xcde   :  { %v3958_v42 = vmul.f32 1.442695, %v3952_v47 }
 0xce0   :  { %5976 = vpow2.f32 %v3958_v42 }
 0xce1   :  { %5978 = vpow2.f32 %v4116_v48  ;;  %v4125_v48 = vpop.xlane.xlu1 %4124 }
 0xce2   :  { %5980 = vpow2.f32 %v3954_v53 }
 0xce3   :  { %v3829_v21 = vpop.permute.xlu2 %3828  ;;  %5982 = vpow2.f32 %v4112_v3 }
 0xce4   :  { %3844 = vmatpush.bf16.msrb.mxu1 %v3829_v21  ;;  %5984 = vpow2.f32 %v3796_v58 }
 0xce5   :  { %5986 = vpow2.f32 %v3960_v45 }
 0xce6   :  { %v7353_v25 = vpop.eup %5976 }
 0xce7   :  { %v3968_v22 = vsel %vm1432_vm2, %v7353_v25, 0.0  ;;  %v7357_v9 = vpop.eup %5978 }
 0xce8   :  { %3969 = vadd.xlane.f32.xlu1 %v3968_v22  ;;  %v4126_v0 = vsel %vm1432_vm2, %v7357_v9, 0.0  ;;  %v7365_v24 = vpop.eup %5980 }
 0xce9   :  { %v3962_v13 = vsel %vm1432_vm2, %v7365_v24, 0.0  ;;  %v7370_v61 = vpop.eup %5982  ;;  %v3809_v49 = vpop.xlane.xlu1 %3808 }
 0xcea   :  { %v4120_v44 = vsel %vm1432_vm2, %v7370_v61, 0.0  ;;  %v7376_v35 = vpop.eup %5984 }
 0xceb   :  { %v4143_v23 = vpop.permute.xlu2 %4142  ;;  %v3804_v1 = vsel %vm1432_vm2, %v7376_v35, 0.0  ;;  %v7380_v6 = vpop.eup %5986 }
 0xcec   :  { %4161 = vmatpush.bf16.msrb.mxu3 %v4143_v23  ;;  %v3971_v10 = vsel %vm1432_vm2, %v7380_v6, 0.0 }
 0xcf0   :  { %4127 = vadd.xlane.f32.xlu1 %v4126_v0 }
 0xd02   :  { %3963 = vadd.xlane.f32.xlu2 %v3962_v13 }
 0xd0a   :  { %4121 = vadd.xlane.f32.xlu2 %v4120_v44 }
 0xd12   :  { %3805 = vadd.xlane.f32.xlu2 %v3804_v1 }
 0xd1a   :  { %3972 = vadd.xlane.f32.xlu2 %v3971_v10 }
 0xd24   :  { %v4107_v52 = vpop.xlane.xlu2 %4106 }
 0xd25   :  { %v4111_v41 = vsub.f32 %v4095_v40, %v4107_v52  ;;  %v3626_v40 = vsub.f32 %v7259_v43, %v7304_v31 }
 0xd27   :  { %v4118_v8 = vmul.f32 1.442695, %v4111_v41  ;;  %v3632_v27 = vmul.f32 1.442695, %v3626_v40 }
 0xd29   :  { %5988 = vpow2.f32 %v4118_v8 }
 0xd2c   :  { %v3788_v2 = vpop.xlane.xlu2 %3787 }
 0xd2d   :  { %v3794_v19 = vsub.f32 %v3778_v14, %v3788_v2  ;;  %v3625_v14 = vsub.f32 %v7284_v5, %v7331_v32 }
 0xd2f   :  { %v7384_v56 = vpop.eup %5988  ;;  %v3800_v33 = vmul.f32 1.442695, %v3794_v19  ;;  %v3630_v38 = vmul.f32 1.442695, %v3625_v14 }
 0xd30   :  { %v4129_v37 = vsel %vm1432_vm2, %v7384_v56, 0.0 }
 0xd31   :  { %5990 = vpow2.f32 %v3800_v33  ;;  %4130 = vadd.xlane.f32.xlu2 %v4129_v37 }
 0xd32   :  { %5992 = vpow2.f32 %v3628_v50 }
 0xd34   :  { %v3791_v54 = vpop.xlane.xlu2 %3790 }
 0xd35   :  { %v3795_v28 = vsub.f32 %v7346_v59, %v3791_v54 }
 0xd37   :  { %v7393_v57 = vpop.eup %5990  ;;  %v3802_v18 = vmul.f32 1.442695, %v3795_v28 }
 0xd38   :  { %v3810_v51 = vsel %vm1432_vm2, %v7393_v57, 0.0  ;;  %v7399_v11 = vpop.eup %5992 }
 0xd39   :  { %5994 = vpow2.f32 %v3802_v18  ;;  %3811 = vadd.xlane.f32.xlu1 %v3810_v51  ;;  %v3636_v5 = vsel %vm1432_vm2, %v7399_v11, 0.0 }
 0xd3a   :  { %5996 = vpow2.f32 %v3632_v27 }
 0xd3b   :  { %5998 = vpow2.f32 %v3630_v38 }
 0xd3c   :  { %v3827_v60 = vpop.permute.xlu2 %3826  ;;  %6000 = vrcp.f32 %v3967_v63 }
 0xd3d   :  { %3845 = vmatpush.bf16.msrb.mxu1 %v3827_v60 }
 0xd3f   :  { %v7401_v43 = vpop.eup %5994 }
 0xd40   :  { %v3813_v31 = vsel %vm1432_vm2, %v7401_v43, 0.0  ;;  %v7407_v32 = vpop.eup %5996 }
 0xd41   :  { %3814 = vadd.xlane.f32.xlu2 %v3813_v31  ;;  %3637 = vadd.xlane.f32.xlu1 %v3636_v5  ;;  %v7409_v59 = vpop.eup %5998  ;;  %v3642_v47 = vsel %vm1432_vm2, %v7407_v32, 0.0 }
 0xd42   :  { %v3639_v55 = vsel %vm1432_vm2, %v7409_v59, 0.0  ;;  %v6001_v21 = vpop.eup %6000 }
 0xd43   :  { %v3979_v23 = vmul.f32 %v6001_v21, %v7294_v20 }
 0xd49   :  { %3640 = vadd.xlane.f32.xlu2 %v3639_v55  ;;  %3643 = vadd.xlane.f32.xlu1 %v3642_v47  ;;  %v3647_v47 = vpop.xlane.xlu0 %3646 }
 0xd5b   :  { %v3970_v45 = vpop.xlane.xlu1 %3969 }
 0xd63   :  { %v4128_v16 = vpop.xlane.xlu1 %4127 }
 0xd75   :  { %v3964_v42 = vpop.xlane.xlu2 %3963 }
 0xd76   :  { %6002 = vrcp.f32 %v3964_v42 }
 0xd77   :  { %6004 = vrcp.f32 %v4125_v48 }
 0xd7c   :  { %v6003_v22 = vpop.eup %6002 }
 0xd7d   :  { %v3978_v0 = vmul.f32 %v6003_v22, %v7365_v24  ;;  %v4122_v17 = vpop.xlane.xlu2 %4121  ;;  %v6005_v3 = vpop.eup %6004 }
 0xd7e   :  { %6006 = vrcp.f32 %v4122_v17  ;;  %v4137_v13 = vmul.f32 %v6005_v3, %v7298_v62 }
 0xd7f   :  { %v3982_v53 = vpack.c.bf16 %v3979_v23, %v3978_v0  ;;  %6008 = vrcp.f32 %v3809_v49 }
 0xd81   :  { %5551 = vmatmul.msk.bf16.vlgmr.msrb.gmra.mxu2 %vm1432_vm2, %v3982_v53 }
 0xd84   :  { %v6007_v12 = vpop.eup %6006 }
 0xd85   :  { %v4136_v58 = vmul.f32 %v6007_v12, %v7370_v61  ;;  %v3806_v39 = vpop.xlane.xlu2 %3805  ;;  %v6009_v20 = vpop.eup %6008  ;;  %v5832_v12 = vld [vmem:[%s7635_s14 + $0x38] sm:$0xff] }
 0xd86   :  { %6010 = vrcp.f32 %v3806_v39  ;;  %v3821_v1 = vmul.f32 %v6009_v20, %v7306_v7  ;;  %4306 = vmatpush.bf16.msra.mxu0 %v5832_v12  ;;  %v5829_v39 = vld [vmem:[%s7635_s14 + $0x20] sm:$0xff]  ;;  %v5826_v20 = vld [vmem:[%s7635_s14 + $0x8] sm:$0xff] }
 0xd87   :  { %v4140_v44 = vpack.c.bf16 %v4137_v13, %v4136_v58  ;;  %6012 = vrcp.f32 %v3970_v45  ;;  %v5831_v13 = vld [vmem:[%s7635_s14 + $0x30] sm:$0xff]  ;;  %v5830_v58 = vld [vmem:[%s7635_s14 + $0x28] sm:$0xff] }
 0xd88   :  { %v5827_v45 = vld [vmem:[%s7635_s14 + $0x10] sm:$0xff] }
 0xd89   :  { %5553 = vmatmul.msk.bf16.vlgmr.msrb.gmra.mxu3 %vm1432_vm2, %v4140_v44  ;;  %v5828_v44 = vld [vmem:[%s7635_s14 + $0x18] sm:$0xff] }
 0xd8a   :  { %4307 = vmatpush.bf16.msra.mxu0 %v5831_v13 }
 0xd8c   :  { %v6011_v24 = vpop.eup %6010 }
 0xd8d   :  { %v3820_v10 = vmul.f32 %v6011_v24, %v7376_v35  ;;  %v3973_v52 = vpop.xlane.xlu2 %3972  ;;  %v6013_v62 = vpop.eup %6012  ;;  %v5825_v24 = vld [vmem:[%s7635_s14] sm:$0xff] }
 0xd8e   :  { %6014 = vrcp.f32 %v3973_v52  ;;  %v3980_v8 = vmul.f32 %v6013_v62, %v7353_v25  ;;  %4308 = vmatpush.bf16.msra.mxu0 %v5830_v58 }
 0xd8f   :  { %v3824_v41 = vpack.c.bf16 %v3821_v1, %v3820_v10  ;;  %6016 = vrcp.f32 %v4128_v16  ;;  %v7480_v16 = vld [vmem:[%s7630_s9] ss:$0 sm:$0xff] }
 0xd91   :  { %5549 = vmatmul.msk.bf16.vlgmr.msrb.gmra.mxu1 %vm1432_vm2, %v3824_v41 }
 0xd92   :  { %4309 = vmatpush.bf16.msra.mxu0 %v5829_v39 }
 0xd94   :  { %v6015_v61 = vpop.eup %6014 }
 0xd95   :  { %v3981_v2 = vmul.f32 %v6015_v61, %v7380_v6  ;;  %v6017_v7 = vpop.eup %6016 }
 0xd96   :  { %v4138_v37 = vmul.f32 %v6017_v7, %v7357_v9  ;;  %4310 = vmatpush.bf16.msra.mxu0 %v5828_v44  ;;  %v4343_v44 = vld [vmem:[%s7637_s16 + $0x10] sm:$0xff] }
 0xd97   :  { %v3983_v19 = vpack.c.bf16 %v3981_v2, %v3980_v8 }
 0xd99   :  { %5552 = vmatmul.msk.bf16.gmra.mxu2 %vm1432_vm2, %v3983_v19 }
 0xd9a   :  { %4311 = vmatpush.bf16.msra.mxu0 %v5827_v45  ;;  %v4327_v45 = vld [vmem:[%s7636_s15 + $0x10] sm:$0xff] }
 0xd9e   :  { %4312 = vmatpush.bf16.msra.mxu0 %v5826_v20 }
 0xda2   :  { %4313 = vmatpush.bf16.msra.mxu0 %v5825_v24 }
 0xda4   :  { %v4131_v33 = vpop.xlane.xlu2 %4130 }
 0xda5   :  { %6018 = vrcp.f32 %v4131_v33 }
 0xdab   :  { %v6019_v35 = vpop.eup %6018 }
 0xdac   :  { %v4139_v50 = vmul.f32 %v6019_v35, %v7384_v56  ;;  %v3812_v54 = vpop.xlane.xlu1 %3811 }
 0xdad   :  { %6020 = vrcp.f32 %v3812_v54 }
 0xdae   :  { %v4141_v28 = vpack.c.bf16 %v4139_v50, %v4138_v37 }
 0xdb0   :  { %5554 = vmatmul.msk.bf16.gmra.mxu3 %vm1432_vm2, %v4141_v28 }
 0xdb3   :  { %v6021_v40 = vpop.eup %6020 }
 0xdb4   :  { %v3815_v25 = vpop.xlane.xlu2 %3814  ;;  %v3638_v6 = vpop.xlane.xlu1 %3637  ;;  %v3822_v18 = vmul.f32 %v6021_v40, %v7393_v57  ;;  %v4340_v40 = vld [vmem:[%s7636_s15 + $0x78] sm:$0xff] }
 0xdb5   :  { %6022 = vrcp.f32 %v3815_v25  ;;  %4358 = vmatpush.msra.mxu1 %v4340_v40 }
 0xdb6   :  { %6024 = vrcp.f32 %v3638_v6  ;;  %v4356_v6 = vld [vmem:[%s7637_s16 + $0x78] sm:$0xff] }
 0xdb7   :  { %4387 = vmatpush.msra.mxu2 %v4356_v6 }
 0xdbb   :  { %v6023_v14 = vpop.eup %6022 }
 0xdbc   :  { %v3823_v51 = vmul.f32 %v6023_v14, %v7401_v43  ;;  %v3641_v27 = vpop.xlane.xlu2 %3640  ;;  %v6025_v56 = vpop.eup %6024  ;;  %v4355_v14 = vld [vmem:[%s7637_s16 + $0x70] sm:$0xff] }
 0xdbd   :  { %6026 = vrcp.f32 %v3641_v27  ;;  %v3652_v60 = vmul.f32 %v6025_v56, %v7399_v11  ;;  %v3644_v55 = vpop.xlane.xlu1 %3643  ;;  %v4338_v27 = vld [vmem:[%s7636_s15 + $0x68] sm:$0xff]  ;;  %4388 = vmatpush.msra.mxu2 %v4355_v14  ;;  %v4337_v56 = vld [vmem:[%s7636_s15 + $0x60] sm:$0xff] }
 0xdbe   :  { %v3825_v9 = vpack.c.bf16 %v3823_v51, %v3822_v18  ;;  %6028 = vrcp.f32 %v3644_v55  ;;  %v4339_v18 = vld [vmem:[%s7636_s15 + $0x70] sm:$0xff]  ;;  %v4354_v51 = vld [vmem:[%s7637_s16 + $0x68] sm:$0xff] }
 0xdbf   :  { %6030 = vrcp.f32 %v3647_v47  ;;  %4359 = vmatpush.msra.mxu1 %v4339_v18  ;;  %4389 = vmatpush.msra.mxu2 %v4354_v51  ;;  %v4335_v55 = vld [vmem:[%s7636_s15 + $0x50] sm:$0xff]  ;;  %v4350_v47 = vld [vmem:[%s7637_s16 + $0x48] sm:$0xff] }
 0xdc0   :  { %5550 = vmatmul.msk.bf16.gmra.mxu1 %vm1432_vm2, %v3825_v9  ;;  %v4353_v9 = vld [vmem:[%s7637_s16 + $0x60] sm:$0xff] }
 0xdc1   :  { %4360 = vmatpush.msra.mxu1 %v4338_v27  ;;  %4390 = vmatpush.msra.mxu2 %v4353_v9 }
 0xdc3   :  { %v6027_v38 = vpop.eup %6026  ;;  %4361 = vmatpush.msra.mxu1 %v4337_v56 }
 0xdc4   :  { %v3653_v31 = vmul.f32 %v6027_v38, %v7409_v59  ;;  %v6029_v57 = vpop.eup %6028 }
 0xdc5   :  { %v6031_v43 = vpop.eup %6030  ;;  %v3654_v63 = vmul.f32 %v6029_v57, %v7407_v32  ;;  %v4334_v57 = vld [vmem:[%s7636_s15 + $0x48] sm:$0xff] }
 0xdc6   :  { %v3656_v5 = vpack.c.bf16 %v3653_v31, %v3652_v60  ;;  %v3655_v42 = vmul.f32 %v6031_v43, %v7314_v26  ;;  %v4352_v60 = vld [vmem:[%s7637_s16 + $0x58] sm:$0xff] }
 0xdc7   :  { %v4336_v31 = vld [vmem:[%s7636_s15 + $0x58] sm:$0xff]  ;;  %4391 = vmatpush.msra.mxu2 %v4352_v60 }
 0xdc8   :  { %5547 = vmatmul.msk.bf16.vlgmr.msrb.gmra.mxu0 %vm1432_vm2, %v3656_v5  ;;  %v3657_v48 = vpack.c.bf16 %v3655_v42, %v3654_v63  ;;  %v4351_v5 = vld [vmem:[%s7637_s16 + $0x50] sm:$0xff]  ;;  %4362 = vmatpush.msra.mxu1 %v4336_v31  ;;  %v4349_v63 = vld [vmem:[%s7637_s16 + $0x40] sm:$0xff] }
 0xdc9   :  { %4392 = vmatpush.msra.mxu2 %v4351_v5  ;;  %v4333_v42 = vld [vmem:[%s7636_s15 + $0x40] sm:$0xff] }
 0xdca   :  { %4363 = vmatpush.msra.mxu1 %v4335_v55 }
 0xdcb   :  { %4393 = vmatpush.msra.mxu2 %v4350_v47 }
 0xdcc   :  { %4364 = vmatpush.msra.mxu1 %v4334_v57 }
 0xdcd   :  { %4394 = vmatpush.msra.mxu2 %v4349_v63 }
 0xdce   :  { %4365 = vmatpush.msra.mxu1 %v4333_v42 }
 0xdd8   :  { %5548 = vmatmul.msk.bf16.gmra.mxu0 %vm1432_vm2, %v3657_v48 }
 0xe04   :  { %v4005_v11 = vpop.f32.mrf.mxu2 }
 0xe0c   :  { %v4163_v22 = vpop.f32.mrf.mxu3  ;;  %v4007_v23 = vpop.f32.mrf.mxu2 }
 0xe0e   :  { %v3847_v21 = vpop.f32.mrf.mxu1 }
 0xe0f   :  { %4177 = vrot.lane.b32.xlu2 %v3847_v21, %s6172_s27  ;;  %v4348_v21 = vld [vmem:[%s7637_s16 + $0x38] sm:$0xff] }
 0xe10   :  { %4395 = vmatpush.msra.mxu2 %v4348_v21 }
 0xe14   :  { %v4165_v32 = vpop.f32.mrf.mxu3 }
 0xe16   :  { %v3849_v59 = vpop.f32.mrf.mxu1 }
 0xe17   :  { %4193 = vrot.lane.b32.xlu2 %v4005_v11, %s6158_s2  ;;  %4179 = vrot.lane.b32.xlu1 %v3849_v59, %s6172_s27  ;;  %v4332_v11 = vld [vmem:[%s7636_s15 + $0x38] sm:$0xff] }
 0xe18   :  { %4366 = vmatpush.msra.mxu1 %v4332_v11 }
 0xe1c   :  { %v4010_v26 = vpop.f32.mrf.mxu2 }
 0xe1f   :  { %4209 = vrot.lane.b32.xlu2 %v4163_v22, %s6171_s26  ;;  %4195 = vrot.lane.b32.xlu1 %v4007_v23, %s6158_s2  ;;  %v4347_v22 = vld [vmem:[%s7637_s16 + $0x30] sm:$0xff] }
 0xe20   :  { %v4331_v23 = vld [vmem:[%s7636_s15 + $0x30] sm:$0xff]  ;;  %4396 = vmatpush.msra.mxu2 %v4347_v22 }
 0xe21   :  { %4367 = vmatpush.msra.mxu1 %v4331_v23  ;;  %v6054_v23 = vld [vmem:[%s7647_s19] sm:$0xff] }
 0xe24   :  { %v4012_v53 = vpop.f32.mrf.mxu2 }
 0xe27   :  { %4211 = vrot.lane.b32.xlu1 %v4165_v32, %s6171_s26  ;;  %v4346_v32 = vld [vmem:[%s7637_s16 + $0x28] sm:$0xff] }
 0xe28   :  { %4397 = vmatpush.msra.mxu2 %v4346_v32 }
 0xe2f   :  { %4197 = vrot.lane.b32.xlu1 %v4010_v26, %s6158_s2  ;;  %v4330_v26 = vld [vmem:[%s7636_s15 + $0x28] sm:$0xff] }
 0xe30   :  { %4368 = vmatpush.msra.mxu1 %v4330_v26 }
 0xe33   :  { %v4168_v0 = vpop.f32.mrf.mxu3 }
 0xe37   :  { %4213 = vrot.lane.b32.xlu1 %v4168_v0, %s6171_s26  ;;  %v4345_v0 = vld [vmem:[%s7637_s16 + $0x20] sm:$0xff] }
 0xe38   :  { %4398 = vmatpush.msra.mxu2 %v4345_v0 }
 0xe3b   :  { %v4170_v3 = vpop.f32.mrf.mxu3 }
 0xe3d   :  { %v3852_v17 = vpop.f32.mrf.mxu1 }
 0xe3e   :  { %4181 = vrot.lane.b32.xlu2 %v3852_v17, %s6172_s27  ;;  %v4329_v17 = vld [vmem:[%s7636_s15 + $0x20] sm:$0xff] }
 0xe3f   :  { %4369 = vmatpush.msra.mxu1 %v4329_v17 }
 0xe45   :  { %v3854_v49 = vpop.f32.mrf.mxu1  ;;  %v3685_v41 = vpop.f32.mrf.mxu0 }
 0xe46   :  { %4199 = vrot.lane.b32.xlu2 %v4012_v53, %s6158_s2  ;;  %4183 = vrot.lane.b32.xlu0 %v3854_v49, %s6172_s27  ;;  %v4344_v49 = vld [vmem:[%s7637_s16 + $0x18] sm:$0xff] }
 0xe47   :  { %4399 = vmatpush.msra.mxu2 %v4344_v49 }
 0xe49   :  { %4400 = vmatpush.msra.mxu2 %v4343_v44 }
 0xe4d   :  { %v3687_v2 = vpop.f32.mrf.mxu0 }
 0xe4e   :  { %4215 = vrot.lane.b32.xlu2 %v4170_v3, %s6171_s26  ;;  %v4328_v3 = vld [vmem:[%s7636_s15 + $0x18] sm:$0xff] }
 0xe4f   :  { %4370 = vmatpush.msra.mxu1 %v4328_v3 }
 0xe51   :  { %4371 = vmatpush.msra.mxu1 %v4327_v45 }
 0xe55   :  { %v3690_v48 = vpop.f32.mrf.mxu0 }
 0xe5d   :  { %v3692_v13 = vpop.f32.mrf.mxu0 }
 0xe69   :  { %v4178_v1 = vpop.permute.xlu2 %4177 }
 0xe6a   :  { %v4221_v8 = vsel %vm1432_vm2, %v3685_v41, %v4178_v1  ;;  %v4326_v41 = vld [vmem:[%s7636_s15 + $0x8] sm:$0xff] }
 0xe6b   :  { %4372 = vmatpush.msra.mxu1 %v4326_v41 }
 0xe71   :  { %v4194_v52 = vpop.permute.xlu2 %4193 }
 0xe72   :  { %v4225_v19 = vsel %vm2046_vm1, %v4221_v8, %v4194_v52  ;;  %v4342_v52 = vld [vmem:[%s7637_s16 + $0x8] sm:$0xff] }
 0xe73   :  { %4401 = vmatpush.msra.mxu2 %v4342_v52 }
 0xe79   :  { %v4210_v61 = vpop.permute.xlu2 %4209 }
 0xe7a   :  { %v4229_v33 = vsel %vm2051_vm3, %v4225_v19, %v4210_v61 }
 0xe7b   :  { %v4236_v54 = vadd.f32 %v7480_v16, %v4229_v33  ;;  %v4325_v33 = vld [vmem:[%s7636_s15] sm:$0xff] }
 0xe7c   :  { %4373 = vmatpush.msra.mxu1 %v4325_v33 }
 0xe89   :  { %v4180_v10 = vpop.permute.xlu1 %4179 }
 0xe8a   :  { %v4222_v7 = vsel %vm1432_vm2, %v3687_v2, %v4180_v10  ;;  %v4341_v2 = vld [vmem:[%s7637_s16] sm:$0xff] }
 0xe8b   :  { %4402 = vmatpush.msra.mxu2 %v4341_v2 }
 0xe91   :  { %v4196_v62 = vpop.permute.xlu1 %4195 }
 0xe92   :  { %v4226_v35 = vsel %vm2046_vm1, %v4222_v7, %v4196_v62 }
 0xe98   :  { %v4182_v38 = vpop.permute.xlu2 %4181 }
 0xe99   :  { %v4212_v37 = vpop.permute.xlu1 %4211  ;;  %v4223_v12 = vsel %vm1432_vm2, %v3690_v48, %v4182_v38 }
 0xe9a   :  { %v4230_v50 = vsel %vm2051_vm3, %v4226_v35, %v4212_v37 }
 0xe9b   :  { %v4237_v28 = vadd.f32 %v7480_v16, %v4230_v50 }
 0xe9d   :  { %v4240_v25 = vpack.c.bf16 %v4237_v28, %v4236_v54 }
 0xe9f   :  { %4314 = vmatmul.bf16.vlgmr.msra.gmra.mxu0 %v4240_v25 }
 0xea0   :  { %v4200_v59 = vpop.permute.xlu2 %4199 }
 0xea1   :  { %v4198_v43 = vpop.permute.xlu1 %4197 }
 0xea2   :  { %v4227_v58 = vsel %vm2046_vm1, %v4223_v12, %v4198_v43 }
 0xea8   :  { %v4216_v1 = vpop.permute.xlu2 %4215 }
 0xea9   :  { %v4214_v53 = vpop.permute.xlu1 %4213 }
 0xeaa   :  { %v4231_v20 = vsel %vm2051_vm3, %v4227_v58, %v4214_v53 }
 0xeab   :  { %v4238_v61 = vadd.f32 %v7480_v16, %v4231_v20 }
 0xeb8   :  { %v4184_v39 = vpop.permute.xlu0 %4183 }
 0xeb9   :  { %v4224_v24 = vsel %vm1432_vm2, %v3692_v13, %v4184_v39 }
 0xeba   :  { %v4228_v10 = vsel %vm2046_vm1, %v4224_v24, %v4200_v59 }
 0xebb   :  { %v4232_v62 = vsel %vm2051_vm3, %v4228_v10, %v4216_v1 }
 0xebc   :  { %v4239_v8 = vadd.f32 %v7480_v16, %v4232_v62 }
 0xebe   :  { %v4241_v19 = vpack.c.bf16 %v4239_v8, %v4238_v61 }
 0xec0   :  { %4319 = vmatmul.bf16.gmra.mxu0 %v4241_v19 }
 0xf1c   :  { %v4315_v7 = vpop.f32.mrf.mxu0 }
 0xf1d   :  { %4374 = vmatmul.f32.vlgmr.msra.gmra.mxu1 %v4315_v7  ;;  %4403 = vmatmul.f32.vlgmr.msra.gmra.mxu2 %v4315_v7 }
 0xf24   :  { %v4317_v35 = vpop.f32.mrf.mxu0 }
 0xf25   :  { %4377 = vmatmul.f32.gmra.mxu1 %v4317_v35  ;;  %4406 = vmatmul.f32.gmra.mxu2 %v4317_v35  ;;  %v4416_v54 = vpack.c.bf16 %v4317_v35, %v4315_v7 }
 0xf3d   :  { %v4320_v16 = vpop.f32.mrf.mxu0 }
 0xf3e   :  { %4380 = vmatmul.f32.gmra.mxu1 %v4320_v16  ;;  %4409 = vmatmul.f32.gmra.mxu2 %v4320_v16 }
 0xf45   :  { %v4322_v37 = vpop.f32.mrf.mxu0 }
 0xf46   :  { %v4417_v50 = vpack.c.bf16 %v4322_v37, %v4320_v16  ;;  %4383 = vmatmul.f32.gmra.mxu1 %v4322_v37  ;;  %4412 = vmatmul.f32.gmra.mxu2 %v4322_v37 }
 0xf48   :  { %4552 = vmatpush.bf16.msra.mxu3 %v4417_v50 }
 0xf4c   :  { %4553 = vmatpush.bf16.msra.mxu3 %v4416_v54 }
 0xf9a   :  { %v4375_v14 = vpop.f32.mrf.mxu1 }
 0xfa0   :  { %v4404_v28 = vpop.f32.mrf.mxu2 }
 0xfa1   :  { %4452 = vperm.xlu0 %5882, %v4404_v28  }
 0xfa2   :  { %v4378_v18 = vpop.f32.mrf.mxu1 }
 0xfa8   :  { %v4407_v25 = vpop.f32.mrf.mxu2 }
 0xfa9   :  { %4457 = vperm.xlu1 %5879, %v4407_v25  }
 0xfbb   :  { %v4381_v51 = vpop.f32.mrf.mxu1 }
 0xfc1   :  { %v4410_v6 = vpop.f32.mrf.mxu2 }
 0xfc2   :  { %4462 = vperm.xlu2 %5883, %v4410_v6  }
 0xfc3   :  { %v4384_v27 = vpop.f32.mrf.mxu1 }
 0xfc9   :  { %v4413_v40 = vpop.f32.mrf.mxu2 }
 0xfca   :  { %4467 = vperm.xlu0 %5882, %v4413_v40  }
 0xfde   :  { %4418 = vxpose.xlu1.b32.start [1/4] (short) (narrow) %v4375_v14, 8 }
 0xfe6   :  { %4419 = vxpose.xlu1.b32.cont [2/4] (short) (narrow) %v4378_v18, 8 }
 0xfee   :  { %4420 = vxpose.xlu1.b32.cont [3/4] (short) (narrow) %v4381_v51, 8 }
 0xff6   :  { %4421 = vxpose.xlu1.b32.end [4/4] (short) (narrow) %v4384_v27, 8 }
0x1013   :  { %v4453_v56 = vpop.permute.xlu0 %4452 }
0x101b   :  { %v4458_v9 = vpop.permute.xlu1 %4457 }
0x101c   :  { %v4463_v31 = vpop.permute.xlu2 %4462 }
0x103c   :  { %v4468_v5 = vpop.permute.xlu0 %4467 }
0x1082   :  { %v4434_v38 = vpop.trf.xlu1 }
0x1083   :  { %v4470_v60 = vperm.slane %v4434_v38, 0  ;;  %v5887_v38 = vld [vmem:[%s7638_s17] ss:$0 sm:$0xff] }
0x1085   :  { %v4471_v55 = vadd.f32 %v4470_v60, %v4453_v56  ;;  %v4472_v47 = vadd.f32 %v4470_v60, %v4458_v9  ;;  %v4473_v57 = vadd.f32 %v4470_v60, %v4463_v31  ;;  %v4474_v43 = vadd.f32 %v4470_v60, %v4468_v5  ;;  %v5885_v56 = vld [vmem:[%s7634_s13] ss:$0 sm:$0xff]  ;;  %s6173_s13 = smov [#allocation8]  }
0x1086   :  { %v2379_v31 = vadd.f32 %v5885_v56, %v6988_v36  ;;  %s4577_s17 = sshll.u32 %s6173_s13, 4  ;;  %s4578_s17 = int_to_ptr.vmem [resolvable:$true] %s4577_s17 }
0x1087   :  { %vm4476_vm1 = vcmp.gt.f32.partialorder %v4472_v47, 0.0  ;;  %v4480_v63 = vmul.f32 0.2, %v4472_v47  ;;  %vm4475_vm3 = vcmp.gt.f32.partialorder %v4471_v55, 0.0  ;;  %v4479_v42 = vmul.f32 0.2, %v4471_v55 }
0x1088   :  { %v4482_v11 = vmul.f32 0.2, %v4474_v43  ;;  %v4481_v59 = vmul.f32 0.2, %v4473_v57  ;;  %vm4478_vm11 = vcmp.gt.f32.partialorder %v4474_v43, 0.0  ;;  %vm4477_vm12 = vcmp.gt.f32.partialorder %v4473_v57, 0.0 }
0x1089   :  { %v4484_v48 = vsel %vm4476_vm1, %v4472_v47, %v4480_v63  ;;  %v4483_v21 = vsel %vm4475_vm3, %v4471_v55, %v4479_v42 }
0x108a   :  { %v4488_v22 = vadd.f32 %v7227_v15, %v4484_v48  ;;  %v4487_v32 = vadd.f32 %v6054_v23, %v4483_v21  ;;  %v4486_v17 = vsel %vm4478_vm11, %v4474_v43, %v4482_v11  ;;  %v4485_v53 = vsel %vm4477_vm12, %v4473_v57, %v4481_v59 }
0x108b   :  { %v4490_v49 = vadd.f32 %v7242_v30, %v4486_v17  ;;  %v4489_v3 = vadd.f32 %v7256_v46, %v4485_v53  ;;  %v2381_v57 = vadd.f32 %v5885_v56, %v6994_v29  ;;  %v2384_v48 = vadd.f32 %v5885_v56, %v7002_v4 }
0x108c   :  { %v4494_v26 = vsel %vm1432_vm2, %v4488_v22, -inf  ;;  %v4491_v0 = vsel %vm1432_vm2, %v4487_v32, -inf  ;;  %v2386_v59 = vadd.f32 %v5885_v56, %v7008_v34 }
0x108d   :  { %4495 = vmax.xlane.f32.xlu0 %v4494_v26  ;;  %4492 = vmax.xlane.f32.xlu2 %v4491_v0  ;;  %v4500_v15 = vsel %vm1432_vm2, %v4490_v49, -inf  ;;  %v4497_v12 = vsel %vm1432_vm2, %v4489_v3, -inf }
0x1095   :  { %4501 = vmax.xlane.f32.xlu0 %v4500_v15  ;;  %4498 = vmax.xlane.f32.xlu2 %v4497_v12 }
0x1100   :  { %v4496_v13 = vpop.xlane.xlu0 %4495  ;;  %v4493_v58 = vpop.xlane.xlu2 %4492 }
0x1101   :  { %v4504_v39 = vsub.f32 %v4488_v22, %v4496_v13  ;;  %v4503_v44 = vsub.f32 %v4487_v32, %v4493_v58 }
0x1103   :  { %v4509_v45 = vmul.f32 1.442695, %v4504_v39  ;;  %v4507_v20 = vmul.f32 1.442695, %v4503_v44 }
0x1105   :  { %6032 = vpow2.f32 %v4509_v45 }
0x1106   :  { %6034 = vpow2.f32 %v4507_v20 }
0x1108   :  { %v4502_v24 = vpop.xlane.xlu0 %4501  ;;  %v4499_v1 = vpop.xlane.xlu2 %4498 }
0x1109   :  { %v4506_v10 = vsub.f32 %v4490_v49, %v4502_v24  ;;  %v4505_v30 = vsub.f32 %v4489_v3, %v4499_v1 }
0x110b   :  { %v6033_v52 = vpop.eup %6032  ;;  %v4513_v46 = vmul.f32 1.442695, %v4506_v10  ;;  %v4511_v41 = vmul.f32 1.442695, %v4505_v30 }
0x110c   :  { %v6035_v62 = vpop.eup %6034  ;;  %v4518_v61 = vsel %vm1432_vm2, %v6033_v52, 0.0 }
0x110d   :  { %6036 = vpow2.f32 %v4513_v46  ;;  %4519 = vadd.xlane.f32.xlu0 %v4518_v61  ;;  %v4515_v8 = vsel %vm1432_vm2, %v6035_v62, 0.0 }
0x110e   :  { %6038 = vpow2.f32 %v4511_v41  ;;  %4516 = vadd.xlane.f32.xlu2 %v4515_v8 }
0x1113   :  { %v6037_v2 = vpop.eup %6036 }
0x1114   :  { %v6039_v19 = vpop.eup %6038  ;;  %v4524_v33 = vsel %vm1432_vm2, %v6037_v2, 0.0 }
0x1115   :  { %4525 = vadd.xlane.f32.xlu0 %v4524_v33  ;;  %v4521_v7 = vsel %vm1432_vm2, %v6039_v19, 0.0 }
0x1116   :  { %4522 = vadd.xlane.f32.xlu2 %v4521_v7 }
0x1180   :  { %v4520_v35 = vpop.xlane.xlu0 %4519 }
0x1181   :  { %6040 = vrcp.f32 %v4520_v35  ;;  %v4517_v16 = vpop.xlane.xlu2 %4516 }
0x1182   :  { %6042 = vrcp.f32 %v4517_v16 }
0x1187   :  { %v6041_v37 = vpop.eup %6040 }
0x1188   :  { %v6043_v50 = vpop.eup %6042  ;;  %v4532_v54 = vmul.f32 %v6041_v37, %v6033_v52  ;;  %v4526_v25 = vpop.xlane.xlu0 %4525 }
0x1189   :  { %v4531_v28 = vmul.f32 %v6043_v50, %v6035_v62  ;;  %v4523_v40 = vpop.xlane.xlu2 %4522  ;;  %6044 = vrcp.f32 %v4526_v25 }
0x118a   :  { %6046 = vrcp.f32 %v4523_v40 }
0x118b   :  { %v4535_v6 = vpack.c.bf16 %v4532_v54, %v4531_v28 }
0x118d   :  { %5587 = vmatmul.msk.bf16.vlgmr.msra.gmra.mxu3 %vm1432_vm2, %v4535_v6 }
0x118f   :  { %v6045_v14 = vpop.eup %6044 }
0x1190   :  { %v6047_v18 = vpop.eup %6046  ;;  %v4534_v51 = vmul.f32 %v6045_v14, %v6037_v2 }
0x1191   :  { %v4533_v27 = vmul.f32 %v6047_v18, %v6039_v19 }
0x1193   :  { %v4536_v9 = vpack.c.bf16 %v4534_v51, %v4533_v27 }
0x119d   :  { %5588 = vmatmul.msk.bf16.gmra.mxu3 %vm1432_vm2, %v4536_v9 }
0x1210   :  { %v4555_v60 = vpop.f32.mrf.mxu3 }
0x1211   :  { %v4556_v5 = vadd.f32 %v5887_v38, %v4555_v60 }
0x1213   :  { %v4565_v55 = vadd.f32 %v4556_v5, %v2379_v31 }
0x1215   :  { %4569 = vst [vmem:[#allocation8] sm:$0xff] %v4565_v55 }
0x1218   :  { %v4557_v47 = vpop.f32.mrf.mxu3 }
0x1219   :  { %v4558_v43 = vadd.f32 %v5887_v38, %v4557_v47 }
0x121b   :  { %v4566_v63 = vadd.f32 %v4558_v43, %v2381_v57 }
0x121d   :  { %4570 = vst [vmem:[#allocation8 + $0x8] sm:$0xff] %v4566_v63 }
0x1220   :  { %v4560_v42 = vpop.f32.mrf.mxu3 }
0x1221   :  { %v4561_v21 = vadd.f32 %v5887_v38, %v4560_v42 }
0x1223   :  { %v4567_v11 = vadd.f32 %v4561_v21, %v2384_v48 }
0x1225   :  { %4571 = vst [vmem:[#allocation8 + $0x10] sm:$0xff] %v4567_v11 }
0x1228   :  { %v4562_v36 = vpop.f32.mrf.mxu3 }
0x1229   :  { %v4563_v22 = vadd.f32 %v5887_v38, %v4562_v36 }
0x122b   :  { %v4568_v29 = vadd.f32 %v4563_v22, %v2386_v59 }
0x122d   :  { %4572 = vst [vmem:[#allocation8 + $0x18] sm:$0xff] %v4568_v29 }
0x122e   :  { %4585 = dma.vmem_to_hbm [thread:$0]  %s4578_s17, 512, %s4580_s28, [#allocation4], %s6174_s29, %s6174_s29, %s6175_s11  }
0x122f   :  { %6155 = dma.done.wait [#allocation4], 512  }
0x1230   :  { %6156 = vsyncadd [#allocation4], 4294966784 }
0x1231   :  { %4590 = vsyncpa [#allocation3], 1 }
0x1232   :  { %4591 = vsyncpa [#allocation6], 1 }
0x1233   :  { %4592 = vsyncpa [#allocation4], 1 }

</bundles_post_ra>
